<compile_context>
chip_gen: v6e
topology: v6e:2x2x1
jax: 0.10.0
libtpu: 0.0.40
codegen_flags: <defaults>
</compile_context>

<pallas_src>
import functools
import math

import jax
import jax.numpy as jnp
from jax.experimental import pallas as pl
from jax.experimental.pallas import tpu as pltpu

HIGHEST = jax.lax.Precision.HIGHEST


# ----------------------------------------------------------------------------
# Pallas kernel: whole sequence in one grid-free invocation, 2D slabs only.
# ----------------------------------------------------------------------------
def afrnn_kernel(
    x_ref,       # (T*Bp, I)  flattened input sequence (batch padded to Bp)
    wi_ref,      # (I, H)     input2h.weight^T
    wstack_ref,  # (2H, H)    [h2h.weight^T ; W_fc^T @ W_f2h^T] stacked
    wo_ref,      # (H, O)     fc.weight^T
    bias_ref,    # (1, H)     b_i2h + b_h2h + b_f2h
    bcomb_ref,   # (1, H)     b_fc @ W_f2h^T
    bo_ref,      # (1, O)     b_fc
    alpha_ref,   # (1, H)     per-unit adaptation rate
    oma_ref,     # (1, H)     1 - alpha
    out_ref,     # (T*Bp, O)  output 0: fc(hidden) per step
    rnn_ref,     # (T*Bp, H)  output 1: hidden per step
    *,
    T,
    B,           # padded batch (multiple of 8)
    feedback_delay,
):
    H = rnn_ref.shape[1]

    # Hoisted input projection for all timesteps + all time-invariant biases:
    # one batched (T*Bp, I) x (I, H) matmul.
    xproj = (
        jnp.dot(x_ref[...], wi_ref[...], precision=HIGHEST,
                preferred_element_type=jnp.float32)
        + bias_ref[...]
    )  # (T*Bp, H)

    wstack = wstack_ref[...]          # (2H, H)
    wh = wstack[:H, :]                # (H, H), used while feedback is zero
    bcomb = bcomb_ref[...]
    alpha = alpha_ref[...]
    oma = oma_ref[...]

    # Fully unrolled static-T time loop. Hidden state and the delayed-feedback
    # history are plain values (vregs); only the last `feedback_delay` states
    # are kept live. Each step's hidden is streamed straight to rnn_ref.
    h = jnp.zeros((B, H), jnp.float32)
    hist = []
    for i in range(T):
        pre = xproj[i * B:(i + 1) * B, :]      # sublane-aligned static slice
        if i >= feedback_delay:
            # Fused h2h + folded fc->f2h feedback: single MXU pass per step.
            lhs = jnp.concatenate([h, hist[0]], axis=1)   # (Bp, 2H)
            pre = pre + jnp.dot(lhs, wstack, precision=HIGHEST,
                                preferred_element_type=jnp.float32) + bcomb
        else:
            # Feedback is the zero-initialized vector; its bias b_f2h is
            # already folded into bias_ref.
            pre = pre + jnp.dot(h, wh, precision=HIGHEST,
                                preferred_element_type=jnp.float32)
        h_new = jnp.tanh(pre)
        h = oma * h + alpha * h_new            # (1-a)*h + a*h_new
        rnn_ref[i * B:(i + 1) * B, :] = h      # aligned streaming store
        hist.append(h)
        if len(hist) > feedback_delay:
            hist.pop(0)

    # fc projection hoisted out of the loop: one batched matmul, one slab store.
    hidden_all = rnn_ref[...]                  # (T*Bp, H)
    out_ref[...] = (
        jnp.dot(hidden_all, wo_ref[...], precision=HIGHEST,
                preferred_element_type=jnp.float32)
        + bo_ref[...]
    )


def afrnn_forward(x, p, feedback_delay):
    """x: (T, B, I) float32.  Returns (out (T,B,O), rnn_output (T,B,H))."""
    assert feedback_delay >= 1, "feedback_delay must be >= 1"
    T, B, I = x.shape
    H = p["wstack"].shape[1]
    O = p["wo"].shape[1]

    # Pad batch to the 8-row sublane tile so all per-step slices/stores are
    # sublane-aligned inside the kernel; unpad after the call.
    Bp = max(8, ((B + 7) // 8) * 8)
    if Bp != B:
        x = jnp.pad(x, ((0, 0), (0, Bp - B), (0, 0)))
    x2d = x.reshape(T * Bp, I)

    kernel = functools.partial(afrnn_kernel, T=T, B=Bp,
                               feedback_delay=feedback_delay)
    vmem = lambda: pl.BlockSpec(memory_space=pltpu.MemorySpace.VMEM)

    out2d, rnn2d = pl.pallas_call(
        kernel,
        out_shape=(
            jax.ShapeDtypeStruct((T * Bp, O), jnp.float32),
            jax.ShapeDtypeStruct((T * Bp, H), jnp.float32),
        ),
        in_specs=[vmem() for _ in range(9)],
        out_specs=(vmem(), vmem()),
    )(x2d, p["wi"], p["wstack"], p["wo"],
      p["bias"], p["bcomb"], p["bo"], p["alpha"], p["one_minus_alpha"])

    out = out2d.reshape(T, Bp, O)[:, :B, :]
    rnn = rnn2d.reshape(T, Bp, H)[:, :B, :]
    return out, rnn


# ----------------------------------------------------------------------------
# Deterministic parameter construction (mirrors the module's layer shapes).
# ----------------------------------------------------------------------------
def _uniform(key, shape, bound):
    return jax.random.uniform(key, shape, jnp.float32, -bound, bound)


def make_params(key, input_size, hidden_size, output_size):
    I, H, O = input_size, hidden_size, output_size
    ks = jax.random.split(key, 9)
    # nn.Linear default-style init: U(-1/sqrt(fan_in), 1/sqrt(fan_in)).
    w_i2h = _uniform(ks[0], (H, I), 1.0 / math.sqrt(I))
    b_i2h = _uniform(ks[1], (H,), 1.0 / math.sqrt(I))
    w_h2h = _uniform(ks[2], (H, H), 1.0 / math.sqrt(H))
    b_h2h = _uniform(ks[3], (H,), 1.0 / math.sqrt(H))
    w_f2h = _uniform(ks[4], (H, O), 1.0 / math.sqrt(O))
    b_f2h = _uniform(ks[5], (H,), 1.0 / math.sqrt(O))
    w_fc = _uniform(ks[6], (O, H), 1.0 / math.sqrt(H))
    b_fc = _uniform(ks[7], (O,), 1.0 / math.sqrt(H))
    # alpha: per-unit adaptation rate drawn from a small set of unique values
    # (mirrors the randint-over-unique-alphas construction in __init__).
    unique_alphas = jnp.array([0.1, 0.3, 0.9], jnp.float32)
    idx = jax.random.randint(ks[8], (1, H), 0, unique_alphas.shape[0])
    alpha = unique_alphas[idx]
    return {"w_i2h": w_i2h, "b_i2h": b_i2h,
            "w_h2h": w_h2h, "b_h2h": b_h2h,
            "w_f2h": w_f2h, "b_f2h": b_f2h,
            "w_fc": w_fc, "b_fc": b_fc,
            "alpha": alpha}


def pack_params(raw):
    """Transpose + fold weights into the kernel-friendly layout."""
    wi = raw["w_i2h"].T                                        # (I, H)
    wh = raw["w_h2h"].T                                        # (H, H)
    wf = raw["w_f2h"].T                                        # (O, H)
    wo = raw["w_fc"].T                                         # (H, O)
    wcomb = jnp.dot(wo, wf, precision=HIGHEST)                 # (H, H) f2h(fc(.))
    wstack = jnp.concatenate([wh, wcomb], axis=0)              # (2H, H)
    bias = (raw["b_i2h"] + raw["b_h2h"] + raw["b_f2h"])[None, :]   # (1, H)
    bcomb = jnp.dot(raw["b_fc"][None, :], wf, precision=HIGHEST)   # (1, H)
    bo = raw["b_fc"][None, :]                                  # (1, O)
    alpha = raw["alpha"]                                       # (1, H)
    return {"wi": wi, "wstack": wstack, "wo": wo,
            "bias": bias, "bcomb": bcomb, "bo": bo,
            "alpha": alpha, "one_minus_alpha": 1.0 - alpha}


# ----------------------------------------------------------------------------
# Pure-JAX reference mirroring the PyTorch forward loop (un-folded math), so
# the allclose check validates the in-kernel weight folds / fusions.
# ----------------------------------------------------------------------------
def reference_forward(x, raw, feedback_delay):
    T, B, _ = x.shape
    H = raw["w_h2h"].shape[0]
    O = raw["w_fc"].shape[0]
    dot = lambda a, b: jnp.dot(a, b, precision=HIGHEST)
    h = jnp.zeros((B, H), jnp.float32)
    fb0 = jnp.zeros((B, O), jnp.float32)
    outs, hiddens = [], []
    for i in range(T):
        fb = fb0 if i < feedback_delay else outs[i - feedback_delay]
        pre = (dot(x[i], raw["w_i2h"].T) + raw["b_i2h"]
               + dot(h, raw["w_h2h"].T) + raw["b_h2h"]
               + dot(fb, raw["w_f2h"].T) + raw["b_f2h"])
        h_new = jnp.tanh(pre)
        h = raw["alpha"] * (h_new - h) + h
        hiddens.append(h)
        outs.append(dot(h, raw["w_fc"].T) + raw["b_fc"])
    return jnp.stack(outs, axis=0), jnp.stack(hiddens, axis=0)


if __name__ == "__main__":
    T, B, INPUT, HIDDEN, OUTPUT = 12, 2, 8, 32, 4
    FS = 100.0  # TODO(synk): FS is external/undefined in the source; assume 100 Hz.
    feedback_delay = int(50 * FS / 1000)  # = 5

    key = jax.random.PRNGKey(0)
    kx, kp = jax.random.split(key)
    x = jax.random.normal(kx, (T, B, INPUT), jnp.float32)
    raw = make_params(kp, INPUT, HIDDEN, OUTPUT)
    packed = pack_params(raw)

    out, rnn_out = jax.block_until_ready(
        afrnn_forward(x, packed, feedback_delay))
    out_ref, rnn_ref_ = reference_forward(x, raw, feedback_delay)

    assert out.shape == (T, B, OUTPUT) and rnn_out.shape == (T, B, HIDDEN)
    assert jnp.allclose(out, out_ref, atol=1e-4, rtol=1e-4)
    assert jnp.allclose(rnn_out, rnn_ref_, atol=1e-4, rtol=1e-4)

    print("KERNEL_OK")
</pallas_src>

<mosaic_0001>
module attributes {stable_mosaic.version = 11 : i64} {
  func.func @afrnn_kernel(%arg0: memref<96x8xf32, #tpu.memory_space<vmem>>, %arg1: memref<8x32xf32, #tpu.memory_space<vmem>>, %arg2: memref<64x32xf32, #tpu.memory_space<vmem>>, %arg3: memref<32x4xf32, #tpu.memory_space<vmem>>, %arg4: memref<1x32xf32, #tpu.memory_space<vmem>>, %arg5: memref<1x32xf32, #tpu.memory_space<vmem>>, %arg6: memref<1x4xf32, #tpu.memory_space<vmem>>, %arg7: memref<1x32xf32, #tpu.memory_space<vmem>>, %arg8: memref<1x32xf32, #tpu.memory_space<vmem>>, %arg9: memref<96x4xf32, #tpu.memory_space<vmem>>, %arg10: memref<96x32xf32, #tpu.memory_space<vmem>>) attributes {dimension_semantics = [], scalar_prefetch = 0 : i64, scratch_operands = 0 : i64, tpu.core_type = #tpu.core_type<tc>} {
    %c0 = arith.constant 0 : index
    %c0_0 = arith.constant 0 : index
    %0 = vector.load %arg0[%c0, %c0_0] : memref<96x8xf32, #tpu.memory_space<vmem>>, vector<96x8xf32>
    %c0_1 = arith.constant 0 : index
    %c0_2 = arith.constant 0 : index
    %1 = vector.load %arg1[%c0_1, %c0_2] : memref<8x32xf32, #tpu.memory_space<vmem>>, vector<8x32xf32>
    %cst = arith.constant dense<0.000000e+00> : vector<96x32xf32>
    %2 = tpu.matmul %0, %1, %cst {dimension_numbers = #tpu.dot_dimension_numbers<[1], [0], [0], [1], [0, 0, 1, 1], [], []>, precision = #tpu.contract_precision<fp32>} : vector<96x8xf32>, vector<8x32xf32>, vector<96x32xf32> -> vector<96x32xf32>
    %c0_3 = arith.constant 0 : index
    %c0_4 = arith.constant 0 : index
    %3 = vector.load %arg4[%c0_3, %c0_4] : memref<1x32xf32, #tpu.memory_space<vmem>>, vector<1x32xf32>
    %4 = vector.broadcast %3 : vector<1x32xf32> to vector<96x32xf32>
    %5 = arith.addf %2, %4 : vector<96x32xf32>
    %c0_5 = arith.constant 0 : index
    %c0_6 = arith.constant 0 : index
    %6 = vector.load %arg2[%c0_5, %c0_6] : memref<64x32xf32, #tpu.memory_space<vmem>>, vector<64x32xf32>
    %7 = vector.extract_strided_slice %6 {offsets = [0, 0], sizes = [32, 32], strides = [1, 1]} : vector<64x32xf32> to vector<32x32xf32>
    %c0_7 = arith.constant 0 : index
    %c0_8 = arith.constant 0 : index
    %8 = vector.load %arg5[%c0_7, %c0_8] : memref<1x32xf32, #tpu.memory_space<vmem>>, vector<1x32xf32>
    %c0_9 = arith.constant 0 : index
    %c0_10 = arith.constant 0 : index
    %9 = vector.load %arg7[%c0_9, %c0_10] : memref<1x32xf32, #tpu.memory_space<vmem>>, vector<1x32xf32>
    %c0_11 = arith.constant 0 : index
    %c0_12 = arith.constant 0 : index
    %10 = vector.load %arg8[%c0_11, %c0_12] : memref<1x32xf32, #tpu.memory_space<vmem>>, vector<1x32xf32>
    %cst_13 = arith.constant 0.000000e+00 : f32
    %11 = vector.broadcast %cst_13 : f32 to vector<8x32xf32>
    %12 = vector.extract_strided_slice %5 {offsets = [0, 0], sizes = [8, 32], strides = [1, 1]} : vector<96x32xf32> to vector<8x32xf32>
    %cst_14 = arith.constant dense<0.000000e+00> : vector<8x32xf32>
    %13 = tpu.matmul %11, %7, %cst_14 {dimension_numbers = #tpu.dot_dimension_numbers<[1], [0], [0], [1], [0, 0, 1, 1], [], []>, precision = #tpu.contract_precision<fp32>} : vector<8x32xf32>, vector<32x32xf32>, vector<8x32xf32> -> vector<8x32xf32>
    %14 = arith.addf %12, %13 : vector<8x32xf32>
    %15 = math.tanh %14 : vector<8x32xf32>
    %16 = vector.broadcast %10 : vector<1x32xf32> to vector<8x32xf32>
    %17 = arith.mulf %16, %11 : vector<8x32xf32>
    %18 = vector.broadcast %9 : vector<1x32xf32> to vector<8x32xf32>
    %19 = arith.mulf %18, %15 : vector<8x32xf32>
    %20 = arith.addf %17, %19 : vector<8x32xf32>
    %c0_15 = arith.constant 0 : index
    %c0_16 = arith.constant 0 : index
    %21 = vector.load %arg10[%c0_15, %c0_16] : memref<96x32xf32, #tpu.memory_space<vmem>>, vector<8x32xf32>
    tpu.vector_store %arg10[%c0_15, %c0_16], %20 {strides = array<i32>} : memref<96x32xf32, #tpu.memory_space<vmem>>, vector<8x32xf32>,
    %22 = vector.extract_strided_slice %5 {offsets = [8, 0], sizes = [8, 32], strides = [1, 1]} : vector<96x32xf32> to vector<8x32xf32>
    %cst_17 = arith.constant dense<0.000000e+00> : vector<8x32xf32>
    %23 = tpu.matmul %20, %7, %cst_17 {dimension_numbers = #tpu.dot_dimension_numbers<[1], [0], [0], [1], [0, 0, 1, 1], [], []>, precision = #tpu.contract_precision<fp32>} : vector<8x32xf32>, vector<32x32xf32>, vector<8x32xf32> -> vector<8x32xf32>
    %24 = arith.addf %22, %23 : vector<8x32xf32>
    %25 = math.tanh %24 : vector<8x32xf32>
    %26 = vector.broadcast %10 : vector<1x32xf32> to vector<8x32xf32>
    %27 = arith.mulf %26, %20 : vector<8x32xf32>
    %28 = vector.broadcast %9 : vector<1x32xf32> to vector<8x32xf32>
    %29 = arith.mulf %28, %25 : vector<8x32xf32>
    %30 = arith.addf %27, %29 : vector<8x32xf32>
    %c8 = arith.constant 8 : index
    %c0_18 = arith.constant 0 : index
    %31 = vector.load %arg10[%c8, %c0_18] : memref<96x32xf32, #tpu.memory_space<vmem>>, vector<8x32xf32>
    tpu.vector_store %arg10[%c8, %c0_18], %30 {strides = array<i32>} : memref<96x32xf32, #tpu.memory_space<vmem>>, vector<8x32xf32>,
    %32 = vector.extract_strided_slice %5 {offsets = [16, 0], sizes = [8, 32], strides = [1, 1]} : vector<96x32xf32> to vector<8x32xf32>
    %cst_19 = arith.constant dense<0.000000e+00> : vector<8x32xf32>
    %33 = tpu.matmul %30, %7, %cst_19 {dimension_numbers = #tpu.dot_dimension_numbers<[1], [0], [0], [1], [0, 0, 1, 1], [], []>, precision = #tpu.contract_precision<fp32>} : vector<8x32xf32>, vector<32x32xf32>, vector<8x32xf32> -> vector<8x32xf32>
    %34 = arith.addf %32, %33 : vector<8x32xf32>
    %35 = math.tanh %34 : vector<8x32xf32>
    %36 = vector.broadcast %10 : vector<1x32xf32> to vector<8x32xf32>
    %37 = arith.mulf %36, %30 : vector<8x32xf32>
    %38 = vector.broadcast %9 : vector<1x32xf32> to vector<8x32xf32>
    %39 = arith.mulf %38, %35 : vector<8x32xf32>
    %40 = arith.addf %37, %39 : vector<8x32xf32>
    %c16 = arith.constant 16 : index
    %c0_20 = arith.constant 0 : index
    %41 = vector.load %arg10[%c16, %c0_20] : memref<96x32xf32, #tpu.memory_space<vmem>>, vector<8x32xf32>
    tpu.vector_store %arg10[%c16, %c0_20], %40 {strides = array<i32>} : memref<96x32xf32, #tpu.memory_space<vmem>>, vector<8x32xf32>,
    %42 = vector.extract_strided_slice %5 {offsets = [24, 0], sizes = [8, 32], strides = [1, 1]} : vector<96x32xf32> to vector<8x32xf32>
    %cst_21 = arith.constant dense<0.000000e+00> : vector<8x32xf32>
    %43 = tpu.matmul %40, %7, %cst_21 {dimension_numbers = #tpu.dot_dimension_numbers<[1], [0], [0], [1], [0, 0, 1, 1], [], []>, precision = #tpu.contract_precision<fp32>} : vector<8x32xf32>, vector<32x32xf32>, vector<8x32xf32> -> vector<8x32xf32>
    %44 = arith.addf %42, %43 : vector<8x32xf32>
    %45 = math.tanh %44 : vector<8x32xf32>
    %46 = vector.broadcast %10 : vector<1x32xf32> to vector<8x32xf32>
    %47 = arith.mulf %46, %40 : vector<8x32xf32>
    %48 = vector.broadcast %9 : vector<1x32xf32> to vector<8x32xf32>
    %49 = arith.mulf %48, %45 : vector<8x32xf32>
    %50 = arith.addf %47, %49 : vector<8x32xf32>
    %c24 = arith.constant 24 : index
    %c0_22 = arith.constant 0 : index
    %51 = vector.load %arg10[%c24, %c0_22] : memref<96x32xf32, #tpu.memory_space<vmem>>, vector<8x32xf32>
    tpu.vector_store %arg10[%c24, %c0_22], %50 {strides = array<i32>} : memref<96x32xf32, #tpu.memory_space<vmem>>, vector<8x32xf32>,
    %52 = vector.extract_strided_slice %5 {offsets = [32, 0], sizes = [8, 32], strides = [1, 1]} : vector<96x32xf32> to vector<8x32xf32>
    %cst_23 = arith.constant dense<0.000000e+00> : vector<8x32xf32>
    %53 = tpu.matmul %50, %7, %cst_23 {dimension_numbers = #tpu.dot_dimension_numbers<[1], [0], [0], [1], [0, 0, 1, 1], [], []>, precision = #tpu.contract_precision<fp32>} : vector<8x32xf32>, vector<32x32xf32>, vector<8x32xf32> -> vector<8x32xf32>
    %54 = arith.addf %52, %53 : vector<8x32xf32>
    %55 = math.tanh %54 : vector<8x32xf32>
    %56 = vector.broadcast %10 : vector<1x32xf32> to vector<8x32xf32>
    %57 = arith.mulf %56, %50 : vector<8x32xf32>
    %58 = vector.broadcast %9 : vector<1x32xf32> to vector<8x32xf32>
    %59 = arith.mulf %58, %55 : vector<8x32xf32>
    %60 = arith.addf %57, %59 : vector<8x32xf32>
    %c32 = arith.constant 32 : index
    %c0_24 = arith.constant 0 : index
    %61 = vector.load %arg10[%c32, %c0_24] : memref<96x32xf32, #tpu.memory_space<vmem>>, vector<8x32xf32>
    tpu.vector_store %arg10[%c32, %c0_24], %60 {strides = array<i32>} : memref<96x32xf32, #tpu.memory_space<vmem>>, vector<8x32xf32>,
    %62 = vector.extract_strided_slice %5 {offsets = [40, 0], sizes = [8, 32], strides = [1, 1]} : vector<96x32xf32> to vector<8x32xf32>
    %63 = tpu.concatenate %60, %20 in 1 : vector<8x32xf32>, vector<8x32xf32> -> vector<8x64xf32>
    %cst_25 = arith.constant dense<0.000000e+00> : vector<8x32xf32>
    %64 = tpu.matmul %63, %6, %cst_25 {dimension_numbers = #tpu.dot_dimension_numbers<[1], [0], [0], [1], [0, 0, 1, 1], [], []>, precision = #tpu.contract_precision<fp32>} : vector<8x64xf32>, vector<64x32xf32>, vector<8x32xf32> -> vector<8x32xf32>
    %65 = arith.addf %62, %64 : vector<8x32xf32>
    %66 = vector.broadcast %8 : vector<1x32xf32> to vector<8x32xf32>
    %67 = arith.addf %65, %66 : vector<8x32xf32>
    %68 = math.tanh %67 : vector<8x32xf32>
    %69 = vector.broadcast %10 : vector<1x32xf32> to vector<8x32xf32>
    %70 = arith.mulf %69, %60 : vector<8x32xf32>
    %71 = vector.broadcast %9 : vector<1x32xf32> to vector<8x32xf32>
    %72 = arith.mulf %71, %68 : vector<8x32xf32>
    %73 = arith.addf %70, %72 : vector<8x32xf32>
    %c40 = arith.constant 40 : index
    %c0_26 = arith.constant 0 : index
    %74 = vector.load %arg10[%c40, %c0_26] : memref<96x32xf32, #tpu.memory_space<vmem>>, vector<8x32xf32>
    tpu.vector_store %arg10[%c40, %c0_26], %73 {strides = array<i32>} : memref<96x32xf32, #tpu.memory_space<vmem>>, vector<8x32xf32>,
    %75 = vector.extract_strided_slice %5 {offsets = [48, 0], sizes = [8, 32], strides = [1, 1]} : vector<96x32xf32> to vector<8x32xf32>
    %76 = tpu.concatenate %73, %30 in 1 : vector<8x32xf32>, vector<8x32xf32> -> vector<8x64xf32>
    %cst_27 = arith.constant dense<0.000000e+00> : vector<8x32xf32>
    %77 = tpu.matmul %76, %6, %cst_27 {dimension_numbers = #tpu.dot_dimension_numbers<[1], [0], [0], [1], [0, 0, 1, 1], [], []>, precision = #tpu.contract_precision<fp32>} : vector<8x64xf32>, vector<64x32xf32>, vector<8x32xf32> -> vector<8x32xf32>
    %78 = arith.addf %75, %77 : vector<8x32xf32>
    %79 = vector.broadcast %8 : vector<1x32xf32> to vector<8x32xf32>
    %80 = arith.addf %78, %79 : vector<8x32xf32>
    %81 = math.tanh %80 : vector<8x32xf32>
    %82 = vector.broadcast %10 : vector<1x32xf32> to vector<8x32xf32>
    %83 = arith.mulf %82, %73 : vector<8x32xf32>
    %84 = vector.broadcast %9 : vector<1x32xf32> to vector<8x32xf32>
    %85 = arith.mulf %84, %81 : vector<8x32xf32>
    %86 = arith.addf %83, %85 : vector<8x32xf32>
    %c48 = arith.constant 48 : index
    %c0_28 = arith.constant 0 : index
    %87 = vector.load %arg10[%c48, %c0_28] : memref<96x32xf32, #tpu.memory_space<vmem>>, vector<8x32xf32>
    tpu.vector_store %arg10[%c48, %c0_28], %86 {strides = array<i32>} : memref<96x32xf32, #tpu.memory_space<vmem>>, vector<8x32xf32>,
    %88 = vector.extract_strided_slice %5 {offsets = [56, 0], sizes = [8, 32], strides = [1, 1]} : vector<96x32xf32> to vector<8x32xf32>
    %89 = tpu.concatenate %86, %40 in 1 : vector<8x32xf32>, vector<8x32xf32> -> vector<8x64xf32>
    %cst_29 = arith.constant dense<0.000000e+00> : vector<8x32xf32>
    %90 = tpu.matmul %89, %6, %cst_29 {dimension_numbers = #tpu.dot_dimension_numbers<[1], [0], [0], [1], [0, 0, 1, 1], [], []>, precision = #tpu.contract_precision<fp32>} : vector<8x64xf32>, vector<64x32xf32>, vector<8x32xf32> -> vector<8x32xf32>
    %91 = arith.addf %88, %90 : vector<8x32xf32>
    %92 = vector.broadcast %8 : vector<1x32xf32> to vector<8x32xf32>
    %93 = arith.addf %91, %92 : vector<8x32xf32>
    %94 = math.tanh %93 : vector<8x32xf32>
    %95 = vector.broadcast %10 : vector<1x32xf32> to vector<8x32xf32>
    %96 = arith.mulf %95, %86 : vector<8x32xf32>
    %97 = vector.broadcast %9 : vector<1x32xf32> to vector<8x32xf32>
    %98 = arith.mulf %97, %94 : vector<8x32xf32>
    %99 = arith.addf %96, %98 : vector<8x32xf32>
    %c56 = arith.constant 56 : index
    %c0_30 = arith.constant 0 : index
    %100 = vector.load %arg10[%c56, %c0_30] : memref<96x32xf32, #tpu.memory_space<vmem>>, vector<8x32xf32>
    tpu.vector_store %arg10[%c56, %c0_30], %99 {strides = array<i32>} : memref<96x32xf32, #tpu.memory_space<vmem>>, vector<8x32xf32>,
    %101 = vector.extract_strided_slice %5 {offsets = [64, 0], sizes = [8, 32], strides = [1, 1]} : vector<96x32xf32> to vector<8x32xf32>
    %102 = tpu.concatenate %99, %50 in 1 : vector<8x32xf32>, vector<8x32xf32> -> vector<8x64xf32>
    %cst_31 = arith.constant dense<0.000000e+00> : vector<8x32xf32>
    %103 = tpu.matmul %102, %6, %cst_31 {dimension_numbers = #tpu.dot_dimension_numbers<[1], [0], [0], [1], [0, 0, 1, 1], [], []>, precision = #tpu.contract_precision<fp32>} : vector<8x64xf32>, vector<64x32xf32>, vector<8x32xf32> -> vector<8x32xf32>
    %104 = arith.addf %101, %103 : vector<8x32xf32>
    %105 = vector.broadcast %8 : vector<1x32xf32> to vector<8x32xf32>
    %106 = arith.addf %104, %105 : vector<8x32xf32>
    %107 = math.tanh %106 : vector<8x32xf32>
    %108 = vector.broadcast %10 : vector<1x32xf32> to vector<8x32xf32>
    %109 = arith.mulf %108, %99 : vector<8x32xf32>
    %110 = vector.broadcast %9 : vector<1x32xf32> to vector<8x32xf32>
    %111 = arith.mulf %110, %107 : vector<8x32xf32>
    %112 = arith.addf %109, %111 : vector<8x32xf32>
    %c64 = arith.constant 64 : index
    %c0_32 = arith.constant 0 : index
    %113 = vector.load %arg10[%c64, %c0_32] : memref<96x32xf32, #tpu.memory_space<vmem>>, vector<8x32xf32>
    tpu.vector_store %arg10[%c64, %c0_32], %112 {strides = array<i32>} : memref<96x32xf32, #tpu.memory_space<vmem>>, vector<8x32xf32>,
    %114 = vector.extract_strided_slice %5 {offsets = [72, 0], sizes = [8, 32], strides = [1, 1]} : vector<96x32xf32> to vector<8x32xf32>
    %115 = tpu.concatenate %112, %60 in 1 : vector<8x32xf32>, vector<8x32xf32> -> vector<8x64xf32>
    %cst_33 = arith.constant dense<0.000000e+00> : vector<8x32xf32>
    %116 = tpu.matmul %115, %6, %cst_33 {dimension_numbers = #tpu.dot_dimension_numbers<[1], [0], [0], [1], [0, 0, 1, 1], [], []>, precision = #tpu.contract_precision<fp32>} : vector<8x64xf32>, vector<64x32xf32>, vector<8x32xf32> -> vector<8x32xf32>
    %117 = arith.addf %114, %116 : vector<8x32xf32>
    %118 = vector.broadcast %8 : vector<1x32xf32> to vector<8x32xf32>
    %119 = arith.addf %117, %118 : vector<8x32xf32>
    %120 = math.tanh %119 : vector<8x32xf32>
    %121 = vector.broadcast %10 : vector<1x32xf32> to vector<8x32xf32>
    %122 = arith.mulf %121, %112 : vector<8x32xf32>
    %123 = vector.broadcast %9 : vector<1x32xf32> to vector<8x32xf32>
    %124 = arith.mulf %123, %120 : vector<8x32xf32>
    %125 = arith.addf %122, %124 : vector<8x32xf32>
    %c72 = arith.constant 72 : index
    %c0_34 = arith.constant 0 : index
    %126 = vector.load %arg10[%c72, %c0_34] : memref<96x32xf32, #tpu.memory_space<vmem>>, vector<8x32xf32>
    tpu.vector_store %arg10[%c72, %c0_34], %125 {strides = array<i32>} : memref<96x32xf32, #tpu.memory_space<vmem>>, vector<8x32xf32>,
    %127 = vector.extract_strided_slice %5 {offsets = [80, 0], sizes = [8, 32], strides = [1, 1]} : vector<96x32xf32> to vector<8x32xf32>
    %128 = tpu.concatenate %125, %73 in 1 : vector<8x32xf32>, vector<8x32xf32> -> vector<8x64xf32>
    %cst_35 = arith.constant dense<0.000000e+00> : vector<8x32xf32>
    %129 = tpu.matmul %128, %6, %cst_35 {dimension_numbers = #tpu.dot_dimension_numbers<[1], [0], [0], [1], [0, 0, 1, 1], [], []>, precision = #tpu.contract_precision<fp32>} : vector<8x64xf32>, vector<64x32xf32>, vector<8x32xf32> -> vector<8x32xf32>
    %130 = arith.addf %127, %129 : vector<8x32xf32>
    %131 = vector.broadcast %8 : vector<1x32xf32> to vector<8x32xf32>
    %132 = arith.addf %130, %131 : vector<8x32xf32>
    %133 = math.tanh %132 : vector<8x32xf32>
    %134 = vector.broadcast %10 : vector<1x32xf32> to vector<8x32xf32>
    %135 = arith.mulf %134, %125 : vector<8x32xf32>
    %136 = vector.broadcast %9 : vector<1x32xf32> to vector<8x32xf32>
    %137 = arith.mulf %136, %133 : vector<8x32xf32>
    %138 = arith.addf %135, %137 : vector<8x32xf32>
    %c80 = arith.constant 80 : index
    %c0_36 = arith.constant 0 : index
    %139 = vector.load %arg10[%c80, %c0_36] : memref<96x32xf32, #tpu.memory_space<vmem>>, vector<8x32xf32>
    tpu.vector_store %arg10[%c80, %c0_36], %138 {strides = array<i32>} : memref<96x32xf32, #tpu.memory_space<vmem>>, vector<8x32xf32>,
    %140 = vector.extract_strided_slice %5 {offsets = [88, 0], sizes = [8, 32], strides = [1, 1]} : vector<96x32xf32> to vector<8x32xf32>
    %141 = tpu.concatenate %138, %86 in 1 : vector<8x32xf32>, vector<8x32xf32> -> vector<8x64xf32>
    %cst_37 = arith.constant dense<0.000000e+00> : vector<8x32xf32>
    %142 = tpu.matmul %141, %6, %cst_37 {dimension_numbers = #tpu.dot_dimension_numbers<[1], [0], [0], [1], [0, 0, 1, 1], [], []>, precision = #tpu.contract_precision<fp32>} : vector<8x64xf32>, vector<64x32xf32>, vector<8x32xf32> -> vector<8x32xf32>
    %143 = arith.addf %140, %142 : vector<8x32xf32>
    %144 = vector.broadcast %8 : vector<1x32xf32> to vector<8x32xf32>
    %145 = arith.addf %143, %144 : vector<8x32xf32>
    %146 = math.tanh %145 : vector<8x32xf32>
    %147 = vector.broadcast %10 : vector<1x32xf32> to vector<8x32xf32>
    %148 = arith.mulf %147, %138 : vector<8x32xf32>
    %149 = vector.broadcast %9 : vector<1x32xf32> to vector<8x32xf32>
    %150 = arith.mulf %149, %146 : vector<8x32xf32>
    %151 = arith.addf %148, %150 : vector<8x32xf32>
    %c88 = arith.constant 88 : index
    %c0_38 = arith.constant 0 : index
    %152 = vector.load %arg10[%c88, %c0_38] : memref<96x32xf32, #tpu.memory_space<vmem>>, vector<8x32xf32>
    tpu.vector_store %arg10[%c88, %c0_38], %151 {strides = array<i32>} : memref<96x32xf32, #tpu.memory_space<vmem>>, vector<8x32xf32>,
    %c0_39 = arith.constant 0 : index
    %c0_40 = arith.constant 0 : index
    %153 = vector.load %arg10[%c0_39, %c0_40] : memref<96x32xf32, #tpu.memory_space<vmem>>, vector<96x32xf32>
    %c0_41 = arith.constant 0 : index
    %c0_42 = arith.constant 0 : index
    %154 = vector.load %arg3[%c0_41, %c0_42] : memref<32x4xf32, #tpu.memory_space<vmem>>, vector<32x4xf32>
    %cst_43 = arith.constant dense<0.000000e+00> : vector<96x4xf32>
    %155 = tpu.matmul %153, %154, %cst_43 {dimension_numbers = #tpu.dot_dimension_numbers<[1], [0], [0], [1], [0, 0, 1, 1], [], []>, precision = #tpu.contract_precision<fp32>} : vector<96x32xf32>, vector<32x4xf32>, vector<96x4xf32> -> vector<96x4xf32>
    %c0_44 = arith.constant 0 : index
    %c0_45 = arith.constant 0 : index
    %156 = vector.load %arg6[%c0_44, %c0_45] : memref<1x4xf32, #tpu.memory_space<vmem>>, vector<1x4xf32>
    %157 = vector.broadcast %156 : vector<1x4xf32> to vector<96x4xf32>
    %158 = arith.addf %155, %157 : vector<96x4xf32>
    %c0_46 = arith.constant 0 : index
    %c0_47 = arith.constant 0 : index
    %159 = vector.load %arg9[%c0_46, %c0_47] : memref<96x4xf32, #tpu.memory_space<vmem>>, vector<96x4xf32>
    tpu.vector_store %arg9[%c0_46, %c0_47], %158 {strides = array<i32>} : memref<96x4xf32, #tpu.memory_space<vmem>>, vector<96x4xf32>,
    return
  }
}

</mosaic_0001>

<bundles_post_ra>
// kernel: tpu_custom_call.1
= control target key start
LH: loop header
LB: loop body
LE: loop exit
PB: predicated region body
PF: predicated region fallthrough
CT: control target
= control target key end

     0   :  { %vm54_vm0 = vcmask 64512   ;;  %vm10554_vm1 = vmmov 0   ;;  %vm1021_vm2 = vcmask 261120   ;;  %s10555_s30 = smov 32   ;;  %vm3508_vm3 = vcmask 523264   ;;  %s12843_s1 = inlined_call_operand.vmem [shape: f32[8,32], index: 1, kind: input, shape index: {}]   ;;  %s12844_s0 = inlined_call_operand.vmem [shape: f32[96,8], index: 0, kind: input, shape index: {}]   ;;  %s12845_s2 = inlined_call_operand.vmem [shape: f32[64,32], index: 2, kind: input, shape index: {}]   ;;  %s12846_s4 = inlined_call_operand.vmem [shape: f32[1,32], index: 4, kind: input, shape index: {}]   ;;  %s12847_s8 = inlined_call_operand.vmem [shape: f32[1,32], index: 8, kind: input, shape index: {}]   ;;  %s12848_s7 = inlined_call_operand.vmem [shape: f32[1,32], index: 7, kind: input, shape index: {}]   ;;  %s12849_s10 = inlined_call_operand.vmem [shape: f32[96,32], index: 10, kind: output, shape index: {1}]   ;;  %s12850_s5 = inlined_call_operand.vmem [shape: f32[1,32], index: 5, kind: input, shape index: {}]   ;;  %s12851_s3 = inlined_call_operand.vmem [shape: f32[32,4], index: 3, kind: input, shape index: {}]   ;;  %s12852_s6 = inlined_call_operand.vmem [shape: f32[1,4], index: 6, kind: input, shape index: {}]   ;;  %s12853_s9 = inlined_call_operand.vmem [shape: f32[96,4], index: 9, kind: output, shape index: {0}]  }
   0x1   :  { %v46_v0 = vld [vmem:[%s12843_s1] sm:$0xff]  ;;  %v35_v2 = vld [vmem:[%s12844_s0 + $0x8] sm:$0xff]  ;;  %v36_v6 = vld [vmem:[%s12844_s0 + $0x10] sm:$0xff]  ;;  %vm8388_vm4 = vcmask 31744  }
   0x2   :  { %v34_v1 = vld [vmem:[%s12844_s0] sm:$0xff]  ;;  %v10620_v3 = vand.u32 4294901760, %v46_v0  ;;  %v59_v5 = vsel %vm54_vm0, %v35_v2, 0  ;;  %v37_v7 = vld [vmem:[%s12844_s0 + $0x18] sm:$0xff]  ;;  %v62_v11 = vsel %vm54_vm0, %v36_v6, 0  ;;  %v39_v13 = vld [vmem:[%s12844_s0 + $0x28] sm:$0xff] }
   0x3   :  { %v56_v4 = vsel %vm54_vm0, %v34_v1, 0  ;;  %v38_v8 = vld [vmem:[%s12844_s0 + $0x20] sm:$0xff]  ;;  %v10635_v10 = vand.u32 4294901760, %v59_v5  ;;  %v65_v12 = vsel %vm54_vm0, %v37_v7, 0  ;;  %v10644_v15 = vand.u32 4294901760, %v62_v11  ;;  %v40_v18 = vld [vmem:[%s12844_s0 + $0x30] sm:$0xff] }
   0x4   :  { %v10633_v9 = vand.u32 4294901760, %v56_v4  ;;  %9116 = vmatprep.subr.mxu0 %v10620_v3  ;;  %v309_v14 = vsub.f32 %v46_v0, %v10620_v3  ;;  %v10646_v16 = vand.u32 4294901760, %v65_v12  ;;  %v68_v17 = vsel %vm54_vm0, %v38_v8, 0  ;;  %v41_v39 = vld [vmem:[%s12844_s0 + $0x38] sm:$0xff]  ;;  %v42_v44 = vld [vmem:[%s12844_s0 + $0x40] sm:$0xff]  ;;  %v43_v49 = vld [vmem:[%s12844_s0 + $0x48] sm:$0xff] }
   0x5   :  { %9117 = vmatpush3.msra.mxu0 %v10620_v3  ;;  %v10658_v20 = vsub.f32 %v59_v5, %v10635_v10  ;;  %v10660_v21 = vand.u32 4294901760, %v68_v17  ;;  %v71_v22 = vsel %vm54_vm0, %v39_v13, 0  ;;  %v10666_v24 = vsub.f32 %v62_v11, %v10644_v15  ;;  %v44_v50 = vld [vmem:[%s12844_s0 + $0x50] sm:$0xff]  ;;  %v45_v58 = vld [vmem:[%s12844_s0 + $0x58] sm:$0xff] }
   0x6   :  { %v10654_v19 = vsub.f32 %v56_v4, %v10633_v9  ;;  %9138 = vmatprep.mubr.f32.mxu1 %v10633_v9  ;;  %v10663_v23 = vand.u32 4294901760, %v309_v14  ;;  %9156 = vmatprep.subr.mxu0 %v309_v14  ;;  %v10669_v25 = vsub.f32 %v65_v12, %v10646_v16  ;;  %v10671_v26 = vand.u32 4294901760, %v71_v22 }
   0x7   :  { %v169_v28 = vand.u32 4294901760, %v10658_v20  ;;  %v10676_v29 = vsub.f32 %v68_v17, %v10660_v21  ;;  %v74_v30 = vsel %vm54_vm0, %v40_v18, 0  ;;  %v179_v32 = vand.u32 4294901760, %v10666_v24 }
   0x8   :  { %v159_v27 = vand.u32 4294901760, %v10654_v19  ;;  %v311_v31 = vsub.f32 %v309_v14, %v10663_v23  ;;  %v189_v33 = vand.u32 4294901760, %v10669_v25  ;;  %v10683_v34 = vsub.f32 %v71_v22, %v10671_v26 }
   0x9   :  { %v170_v36 = vsub.f32 %v10658_v20, %v169_v28  ;;  %v199_v37 = vand.u32 4294901760, %v10676_v29  ;;  %v10692_v38 = vand.u32 4294901760, %v74_v30  ;;  %v180_v41 = vsub.f32 %v10666_v24, %v179_v32 }
   0xa   :  { %v160_v35 = vsub.f32 %v10654_v19, %v159_v27  ;;  %v312_v40 = vand.u32 4294901760, %v311_v31  ;;  %v190_v42 = vsub.f32 %v10669_v25, %v189_v33  ;;  %v209_v43 = vand.u32 4294901760, %v10683_v34 }
   0xb   :  { %v171_v46 = vand.u32 4294901760, %v170_v36  ;;  %v200_v47 = vsub.f32 %v10676_v29, %v199_v37  ;;  %v10711_v48 = vsub.f32 %v74_v30, %v10692_v38  ;;  %v181_v51 = vand.u32 4294901760, %v180_v41 }
   0xc   :  { %v161_v45 = vand.u32 4294901760, %v160_v35  ;;  %9136 = vmatprep.subr.mxu1 %v312_v40  ;;  %v191_v52 = vand.u32 4294901760, %v190_v42  ;;  %v77_v53 = vsel %vm54_vm0, %v41_v39, 0  ;;  %v210_v54 = vsub.f32 %v10683_v34, %v209_v43 }
   0xd   :  { %9137 = vmatpush3.msra.mxu1 %v312_v40  ;;  %v219_v55 = vand.u32 4294901760, %v10711_v48  ;;  %v10724_v56 = vand.u32 4294901760, %v77_v53  ;;  %v80_v57 = vsel %vm54_vm0, %v42_v44, 0  ;;  %v201_v59 = vand.u32 4294901760, %v200_v47  ;;  %v1013_v47 = vld [vmem:[%s12845_s2 + $0x18] sm:$0xff] }
   0xe   :  { %9118 = vmatprep.mubr.f32.mxu0 %v161_v45  ;;  %9139 = vmatmul.mubr.f32.vlgmr.msra.gmra.mxu1 %v10635_v10  ;;  %v10731_v60 = vand.u32 4294901760, %v80_v57  ;;  %v83_v61 = vsel %vm54_vm0, %v43_v49, 0  ;;  %v86_v62 = vsel %vm54_vm0, %v44_v50, 0  ;;  %v89_v5 = vsel %vm54_vm0, %v45_v58, 0 }
   0xf   :  { %9119 = vmatmul.mubr.f32.vlgmr.msra.gmra.mxu0 %v171_v46  ;;  %9176 = vmatprep.subr.mxu1 %v10620_v3  ;;  %v220_v63 = vsub.f32 %v10711_v48, %v219_v55  ;;  %v10740_v0 = vsub.f32 %v77_v53, %v10724_v56  ;;  %v10742_v1 = vand.u32 4294901760, %v83_v61  ;;  %v10744_v2 = vand.u32 4294901760, %v86_v62 }
  0x10   :  { %9157 = vmatpush3.msra.mxu0 %v309_v14  ;;  %9177 = vmatpush3.msra.mxu1 %v10620_v3  ;;  %v10748_v4 = vsub.f32 %v80_v57, %v10731_v60  ;;  %v211_v11 = vand.u32 4294901760, %v210_v54  ;;  %v10762_v13 = vand.u32 4294901760, %v89_v5 }
  0x11   :  { %9121 = vmatprep.mubr.f32.mxu0 %v181_v51  ;;  %9141 = vmatprep.mubr.f32.mxu1 %v10644_v15  ;;  %v229_v6 = vand.u32 4294901760, %v10740_v0  ;;  %v10754_v7 = vsub.f32 %v83_v61, %v10742_v1  ;;  %v10757_v8 = vsub.f32 %v86_v62, %v10744_v2  ;;  %v221_v14 = vand.u32 4294901760, %v220_v63 }
  0x12   :  { %9196 = vmatprep.subr.mxu0 %v10663_v23  ;;  %9142 = vmatmul.mubr.f32.gmra.mxu1 %v10646_v16  ;;  %v239_v12 = vand.u32 4294901760, %v10748_v4  ;;  %v10772_v31 = vsub.f32 %v89_v5, %v10762_v13 }
  0x13   :  { %9122 = vmatmul.mubr.f32.gmra.mxu0 %v191_v52  ;;  %9144 = vmatprep.mubr.f32.mxu1 %v10660_v21  ;;  %v230_v17 = vsub.f32 %v10740_v0, %v229_v6  ;;  %v249_v18 = vand.u32 4294901760, %v10754_v7  ;;  %v259_v22 = vand.u32 4294901760, %v10757_v8 }
  0x14   :  { %9124 = vmatprep.mubr.f32.mxu0 %v201_v59  ;;  %v240_v30 = vsub.f32 %v10748_v4, %v239_v12  ;;  %9216 = vmatprep.subr.mxu1 %v10620_v3  ;;  %v269_v39 = vand.u32 4294901760, %v10772_v31 }
  0x15   :  { %v231_v35 = vand.u32 4294901760, %v230_v17  ;;  %v250_v36 = vsub.f32 %v10754_v7, %v249_v18  ;;  %v260_v41 = vsub.f32 %v10757_v8, %v259_v22 }
  0x16   :  { %9145 = vmatmul.mubr.f32.gmra.mxu1 %v10671_v26  ;;  %v241_v40 = vand.u32 4294901760, %v240_v30  ;;  %v270_v44 = vsub.f32 %v10772_v31, %v269_v39 }
  0x17   :  { %9125 = vmatmul.mubr.f32.gmra.mxu0 %v211_v11  ;;  %9147 = vmatprep.mubr.f32.mxu1 %v10692_v38  ;;  %v251_v42 = vand.u32 4294901760, %v250_v36  ;;  %v261_v45 = vand.u32 4294901760, %v260_v41 }
  0x18   :  { %9127 = vmatprep.mubr.f32.mxu0 %v221_v14  ;;  %v271_v46 = vand.u32 4294901760, %v270_v44 }
  0x1a   :  { %9148 = vmatmul.mubr.f32.gmra.mxu1 %v10724_v56 }
  0x1b   :  { %9128 = vmatmul.mubr.f32.gmra.mxu0 %v231_v35  ;;  %9150 = vmatprep.mubr.f32.mxu1 %v10731_v60 }
  0x1c   :  { %9130 = vmatprep.mubr.f32.mxu0 %v241_v40 }
  0x1e   :  { %9151 = vmatmul.mubr.f32.gmra.mxu1 %v10742_v1 }
  0x1f   :  { %9131 = vmatmul.mubr.f32.gmra.mxu0 %v251_v42  ;;  %9153 = vmatprep.mubr.f32.mxu1 %v10744_v2 }
  0x20   :  { %9133 = vmatprep.mubr.f32.mxu0 %v261_v45 }
  0x22   :  { %9154 = vmatmul.mubr.f32.gmra.mxu1 %v10762_v13 }
  0x23   :  { %9134 = vmatmul.mubr.f32.gmra.mxu0 %v271_v46  ;;  %9178 = vmatprep.mubr.f32.mxu1 %v159_v27 }
  0x24   :  { %9158 = vmatprep.mubr.f32.mxu0 %v10654_v19  ;;  %v12854_v19 = vmov 0.0  }
  0x26   :  { %9179 = vmatmul.mubr.f32.vlgmr.msra.gmra.mxu1 %v169_v28 }
  0x27   :  { %9159 = vmatmul.mubr.f32.vlgmr.msra.gmra.mxu0 %v10658_v20  ;;  %9217 = vmatpush3.msra.mxu1 %v10620_v3  ;;  %v10810_v3 = vand.u32 4294901760, %v1013_v47  ;;  %v1012_v20 = vld [vmem:[%s12845_s2 + $0x10] sm:$0xff] }
  0x28   :  { %9197 = vmatpush3.msra.mxu0 %v10663_v23  ;;  %9161 = vmatprep.mubr.f32.mxu0 %v10666_v24  ;;  %v10824_v24 = vand.u32 4294901760, %v1012_v20 }
  0x29   :  { %9181 = vmatprep.mubr.f32.mxu1 %v179_v32  ;;  %9236 = vmatprep.subr.mxu0 %v12854_v19  ;;  %v10822_v23 = vsub.f32 %v1013_v47, %v10810_v3  ;;  %v1010_v32 = vld [vmem:[%s12845_s2] sm:$0xff] }
  0x2a   :  { %9247 = vmatprep.subr.mxu1 %v12854_v19  ;;  %9182 = vmatmul.mubr.f32.gmra.mxu1 %v189_v33  ;;  %v10837_v28 = vsub.f32 %v1012_v20, %v10824_v24 }
  0x2b   :  { %9162 = vmatmul.mubr.f32.gmra.mxu0 %v10669_v25  ;;  %9184 = vmatprep.mubr.f32.mxu1 %v199_v37  ;;  %v1011_v25 = vld [vmem:[%s12845_s2 + $0x8] sm:$0xff]  ;;  %v10834_v27 = vand.u32 4294901760, %v10822_v23 }
  0x2c   :  { %9164 = vmatprep.mubr.f32.mxu0 %v10676_v29  ;;  %v10839_v29 = vand.u32 4294901760, %v1011_v25 }
  0x2d   :  { %v1132_v33 = vsub.f32 %v10822_v23, %v10834_v27 }
  0x2e   :  { %9185 = vmatmul.mubr.f32.gmra.mxu1 %v209_v43  ;;  %v10854_v37 = vsub.f32 %v1011_v25, %v10839_v29  ;;  %v10856_v43 = vand.u32 4294901760, %v1010_v32 }
  0x2f   :  { %9165 = vmatmul.mubr.f32.gmra.mxu0 %v10683_v34  ;;  %9187 = vmatprep.mubr.f32.mxu1 %v219_v55  ;;  %v10851_v34 = vand.u32 4294901760, %v10837_v28 }
  0x30   :  { %9167 = vmatprep.mubr.f32.mxu0 %v10711_v48  ;;  %v10861_v48 = vand.u32 4294901760, %v1132_v33  ;;  %v10866_v50 = vand.u32 4294901760, %v10854_v37  ;;  %v10869_v51 = vsub.f32 %v1010_v32, %v10856_v43 }
  0x31   :  { %v1139_v49 = vsub.f32 %v10837_v28, %v10851_v34 }
  0x32   :  { %9188 = vmatmul.mubr.f32.gmra.mxu1 %v229_v6  ;;  %v1146_v52 = vsub.f32 %v10854_v37, %v10866_v50  ;;  %v10882_v53 = vand.u32 4294901760, %v10869_v51 }
  0x33   :  { %9168 = vmatmul.mubr.f32.gmra.mxu0 %v10740_v0  ;;  %9190 = vmatprep.mubr.f32.mxu1 %v239_v12 }
  0x34   :  { %9170 = vmatprep.mubr.f32.mxu0 %v10748_v4 }
  0x36   :  { %9191 = vmatmul.mubr.f32.gmra.mxu1 %v249_v18 }
  0x37   :  { %9171 = vmatmul.mubr.f32.gmra.mxu0 %v10754_v7  ;;  %9193 = vmatprep.mubr.f32.mxu1 %v259_v22 }
  0x38   :  { %9173 = vmatprep.mubr.f32.mxu0 %v10757_v8 }
  0x3a   :  { %9194 = vmatmul.mubr.f32.gmra.mxu1 %v269_v39 }
  0x3b   :  { %9174 = vmatmul.mubr.f32.gmra.mxu0 %v10772_v31  ;;  %9218 = vmatprep.mubr.f32.mxu1 %v10633_v9 }
  0x3c   :  { %9198 = vmatprep.mubr.f32.mxu0 %v10633_v9  ;;  %v10877_v9 = vand.u32 4294901760, %v1139_v49 }
  0x3e   :  { %9219 = vmatmul.mubr.f32.vlgmr.msra.gmra.mxu1 %v10635_v10 }
  0x3f   :  { %9199 = vmatmul.mubr.f32.vlgmr.msra.gmra.mxu0 %v10635_v10  ;;  %9248 = vmatpush3.msra.mxu1 %v10861_v48  ;;  %v10892_v10 = vand.u32 4294901760, %v1146_v52 }
  0x40   :  { %9237 = vmatpush3.msra.mxu0 %v10810_v3  ;;  %9201 = vmatprep.mubr.f32.mxu0 %v10644_v15 }
  0x41   :  { %9221 = vmatprep.mubr.f32.mxu1 %v10644_v15  ;;  %9238 = vmatprep.subr.mxu0 %v12854_v19  ;;  %v1153_v15 = vsub.f32 %v10869_v51, %v10882_v53 }
  0x42   :  { %9249 = vmatprep.subr.mxu1 %v12854_v19  ;;  %9222 = vmatmul.mubr.f32.gmra.mxu1 %v10646_v16 }
  0x43   :  { %9202 = vmatmul.mubr.f32.gmra.mxu0 %v10646_v16  ;;  %9224 = vmatprep.mubr.f32.mxu1 %v10660_v21  ;;  %v10904_v16 = vand.u32 4294901760, %v1153_v15 }
  0x44   :  { %9239 = vmatpush3.msra.mxu0 %v10824_v24  ;;  %9204 = vmatprep.mubr.f32.mxu0 %v10660_v21  ;;  %v10995_v21 = vld [vmem:[%s12846_s4] ss:$0 sm:$0xff] }
  0x45   :  { %9250 = vmatpush3.msra.mxu1 %v10877_v9  ;;  %9240 = vmatprep.subr.mxu0 %v12854_v19 }
  0x46   :  { %9251 = vmatprep.subr.mxu1 %v12854_v19  ;;  %9225 = vmatmul.mubr.f32.gmra.mxu1 %v10671_v26 }
  0x47   :  { %9205 = vmatmul.mubr.f32.gmra.mxu0 %v10671_v26  ;;  %9227 = vmatprep.mubr.f32.mxu1 %v10692_v38 }
  0x48   :  { %9207 = vmatprep.mubr.f32.mxu0 %v10692_v38  ;;  %9241 = vmatpush3.msra.mxu0 %v10839_v29 }
  0x49   :  { %9252 = vmatpush3.msra.mxu1 %v10892_v10  ;;  %9242 = vmatprep.subr.mxu0 %v12854_v19 }
  0x4a   :  { %9253 = vmatprep.subr.mxu1 %v12854_v19  ;;  %9228 = vmatmul.mubr.f32.gmra.mxu1 %v10724_v56 }
  0x4b   :  { %9208 = vmatmul.mubr.f32.gmra.mxu0 %v10724_v56  ;;  %9230 = vmatprep.mubr.f32.mxu1 %v10731_v60 }
  0x4c   :  { %9210 = vmatprep.mubr.f32.mxu0 %v10731_v60  ;;  %9243 = vmatpush3.msra.mxu0 %v10856_v43 }
  0x4d   :  { %9254 = vmatpush3.msra.mxu1 %v10904_v16  ;;  %9258 = vmatprep.subr.mxu0 %v12854_v19 }
  0x4e   :  { %9269 = vmatprep.subr.mxu1 %v12854_v19  ;;  %9231 = vmatmul.mubr.f32.gmra.mxu1 %v10742_v1 }
  0x4f   :  { %9211 = vmatmul.mubr.f32.gmra.mxu0 %v10742_v1  ;;  %9233 = vmatprep.mubr.f32.mxu1 %v10744_v2 }
  0x50   :  { %9213 = vmatprep.mubr.f32.mxu0 %v10744_v2 }
  0x52   :  { %9234 = vmatmul.mubr.f32.gmra.mxu1 %v10762_v13 }
  0x53   :  { %9214 = vmatmul.mubr.f32.gmra.mxu0 %v10762_v13  ;;  %9255 = vmatprep.mubr.msk.f32.mxu1 %vm10554_vm1, %v12854_v19 }
  0x54   :  { %9244 = vmatprep.mubr.msk.f32.mxu0 %vm10554_vm1, %v12854_v19 }
  0x56   :  { %9256 = vmatmul.mubr.f32.vlgmr.msra.gmra.mxu1 %v12854_v19 }
  0x57   :  { %9245 = vmatmul.mubr.f32.vlgmr.msra.gmra.mxu0 %v12854_v19  ;;  %9270 = vmatpush3.msra.mxu1 %v10810_v3 }
  0x58   :  { %9259 = vmatpush3.msra.mxu0 %v10822_v23  ;;  %9271 = vmatprep.subr.mxu1 %v12854_v19 }
  0x59   :  { %9260 = vmatprep.subr.mxu0 %v12854_v19  ;;  %9272 = vmatpush3.msra.mxu1 %v10824_v24 }
  0x5a   :  { %9261 = vmatpush3.msra.mxu0 %v10837_v28  ;;  %9273 = vmatprep.subr.mxu1 %v12854_v19 }
  0x5b   :  { %9262 = vmatprep.subr.mxu0 %v12854_v19  ;;  %9274 = vmatpush3.msra.mxu1 %v10839_v29 }
  0x5c   :  { %9263 = vmatpush3.msra.mxu0 %v10854_v37  ;;  %9275 = vmatprep.subr.mxu1 %v12854_v19 }
  0x5d   :  { %9264 = vmatprep.subr.mxu0 %v12854_v19  ;;  %9266 = vmatprep.mubr.msk.f32.mxu0 %vm10554_vm1, %v12854_v19 }
  0x5e   :  { %9265 = vmatpush3.msra.mxu0 %v10869_v51  ;;  %9276 = vmatpush3.msra.mxu1 %v10856_v43 }
  0x5f   :  { %9267 = vmatmul.mubr.f32.vlgmr.msra.gmra.mxu0 %v12854_v19  ;;  %9277 = vmatprep.mubr.msk.f32.mxu1 %vm10554_vm1, %v12854_v19 }
  0x60   :  { %9280 = vmatprep.subr.mxu0 %v12854_v19  ;;  %9291 = vmatprep.subr.mxu1 %v12854_v19 }
  0x61   :  { %9278 = vmatmul.mubr.f32.vlgmr.msra.gmra.mxu1 %v12854_v19  ;;  %9281 = vmatpush3.msra.mxu0 %v10834_v27 }
  0x62   :  { %9292 = vmatpush3.msra.mxu1 %v10810_v3  ;;  %9282 = vmatprep.subr.mxu0 %v12854_v19 }
  0x63   :  { %9293 = vmatprep.subr.mxu1 %v12854_v19  ;;  %9283 = vmatpush3.msra.mxu0 %v10851_v34 }
  0x64   :  { %9294 = vmatpush3.msra.mxu1 %v10824_v24  ;;  %9284 = vmatprep.subr.mxu0 %v12854_v19 }
  0x65   :  { %9295 = vmatprep.subr.mxu1 %v12854_v19  ;;  %9285 = vmatpush3.msra.mxu0 %v10866_v50 }
  0x66   :  { %9296 = vmatpush3.msra.mxu1 %v10839_v29  ;;  %9286 = vmatprep.subr.mxu0 %v12854_v19 }
  0x67   :  { %9297 = vmatprep.subr.mxu1 %v12854_v19  ;;  %9287 = vmatpush3.msra.mxu0 %v10882_v53 }
  0x68   :  { %9288 = vmatprep.mubr.msk.f32.mxu0 %vm10554_vm1, %v12854_v19  ;;  %9298 = vmatpush3.msra.mxu1 %v10856_v43 }
  0x69   :  { %9299 = vmatprep.mubr.msk.f32.mxu1 %vm10554_vm1, %v12854_v19  ;;  %9289 = vmatmul.mubr.f32.vlgmr.msra.gmra.mxu0 %v12854_v19 }
  0x6a   :  { %9300 = vmatmul.mubr.f32.vlgmr.msra.gmra.mxu1 %v12854_v19  ;;  %9313 = vmatprep.subr.mxu1 %v12854_v19 }
  0x6b   :  { %9302 = vmatprep.subr.mxu0 %v12854_v19  ;;  %9314 = vmatpush3.msra.mxu1 %v10861_v48 }
  0x6c   :  { %9321 = vmatprep.mubr.msk.f32.mxu1 %vm10554_vm1, %v12854_v19  ;;  %9315 = vmatprep.subr.mxu1 %v12854_v19 }
  0x6d   :  { %9303 = vmatpush3.msra.mxu0 %v10810_v3  ;;  %9316 = vmatpush3.msra.mxu1 %v10877_v9 }
  0x6e   :  { %9304 = vmatprep.subr.mxu0 %v12854_v19  ;;  %9317 = vmatprep.subr.mxu1 %v12854_v19 }
  0x6f   :  { %9305 = vmatpush3.msra.mxu0 %v10824_v24  ;;  %9318 = vmatpush3.msra.mxu1 %v10892_v10 }
  0x70   :  { %9306 = vmatprep.subr.mxu0 %v12854_v19  ;;  %9319 = vmatprep.subr.mxu1 %v12854_v19 }
  0x71   :  { %9307 = vmatpush3.msra.mxu0 %v10839_v29  ;;  %9320 = vmatpush3.msra.mxu1 %v10904_v16 }
  0x72   :  { %9308 = vmatprep.subr.mxu0 %v12854_v19  ;;  %9335 = vmatprep.subr.mxu1 %v12854_v19 }
  0x73   :  { %9309 = vmatpush3.msra.mxu0 %v10856_v43  ;;  %9310 = vmatprep.mubr.msk.f32.mxu0 %vm10554_vm1, %v12854_v19 }
  0x74   :  { %9324 = vmatprep.subr.mxu0 %v12854_v19 }
  0xce   :  { %v9140_v38 = vpop.f32.mrf.mxu1 }
  0xcf   :  { %v9120_v26 = vpop.f32.mrf.mxu0 }
  0xd0   :  { %v174_v54 = vadd.f32 %v9120_v26, %v10995_v21  ;;  %v11000_v56 = vpop.f32.mrf.mxu1 }
  0xd1   :  { %v10998_v55 = vpop.f32.mrf.mxu0 }
  0xd2   :  { %v356_v57 = vadd.f32 %v9140_v38, %v174_v54  ;;  %v9143_v59 = vpop.f32.mrf.mxu1 }
  0xd3   :  { %v9123_v58 = vpop.f32.mrf.mxu0 }
  0xd4   :  { %v194_v60 = vadd.f32 %v9123_v58, %v10995_v21  ;;  %v11005_v62 = vpop.f32.mrf.mxu1 }
  0xd5   :  { %v11003_v61 = vpop.f32.mrf.mxu0 }
  0xd6   :  { %v368_v63 = vadd.f32 %v9143_v59, %v194_v60  ;;  %v9146_v1 = vpop.f32.mrf.mxu1 }
  0xd7   :  { %v9126_v0 = vpop.f32.mrf.mxu0 }
  0xd8   :  { %v214_v2 = vadd.f32 %v9126_v0, %v10995_v21  ;;  %v11010_v5 = vpop.f32.mrf.mxu1 }
  0xd9   :  { %v11008_v4 = vpop.f32.mrf.mxu0 }
  0xda   :  { %v380_v6 = vadd.f32 %v9146_v1, %v214_v2  ;;  %v9149_v8 = vpop.f32.mrf.mxu1 }
  0xdb   :  { %v9129_v7 = vpop.f32.mrf.mxu0 }
  0xdc   :  { %v234_v11 = vadd.f32 %v9129_v7, %v10995_v21  ;;  %v11015_v13 = vpop.f32.mrf.mxu1 }
  0xdd   :  { %v11013_v12 = vpop.f32.mrf.mxu0  ;;  %12858 = vst [vmem:[#allocation3_spill] sm:$0xff] %v11015_v13 }
  0xde   :  { %12857 = vst [vmem:[#allocation2_spill] sm:$0xff] %v11013_v12  ;;  %v392_v14 = vadd.f32 %v9149_v8, %v234_v11  ;;  %v9152_v18 = vpop.f32.mrf.mxu1 }
  0xdf   :  { %v9132_v17 = vpop.f32.mrf.mxu0 }
  0xe0   :  { %v254_v22 = vadd.f32 %v9132_v17, %v10995_v21  ;;  %v397_v31 = vpop.f32.mrf.mxu1 }
  0xe1   :  { %v243_v30 = vpop.f32.mrf.mxu0 }
  0xe2   :  { %v404_v35 = vadd.f32 %v9152_v18, %v254_v22  ;;  %v9155_v39 = vpop.f32.mrf.mxu1 }
  0xe3   :  { %v9135_v36 = vpop.f32.mrf.mxu0 }
  0xe4   :  { %v274_v40 = vadd.f32 %v9135_v36, %v10995_v21  ;;  %v11019_v42 = vpop.f32.mrf.mxu1 }
  0xe5   :  { %v263_v41 = vpop.f32.mrf.mxu0 }
  0xe6   :  { %v416_v44 = vadd.f32 %v9155_v39, %v274_v40  ;;  %v9180_v46 = vpop.f32.mrf.mxu1 }
  0xe7   :  { %v9160_v45 = vpop.f32.mrf.mxu0 }
  0xe8   :  { %v497_v47 = vadd.f32 %v9160_v45, %v356_v57  ;;  %v11023_v25 = vpop.f32.mrf.mxu1 }
  0xe9   :  { %v11021_v20 = vpop.f32.mrf.mxu0 }
  0xea   :  { %v649_v32 = vadd.f32 %v9180_v46, %v497_v47  ;;  %v9183_v49 = vpop.f32.mrf.mxu1 }
  0xeb   :  { %v9163_v33 = vpop.f32.mrf.mxu0 }
  0xec   :  { %v511_v52 = vadd.f32 %v9163_v33, %v368_v63  ;;  %v11027_v26 = vpop.f32.mrf.mxu1 }
  0xed   :  { %v11025_v15 = vpop.f32.mrf.mxu0 }
  0xee   :  { %v665_v38 = vadd.f32 %v9183_v49, %v511_v52  ;;  %v9186_v58 = vpop.f32.mrf.mxu1 }
  0xef   :  { %v9166_v54 = vpop.f32.mrf.mxu0 }
  0xf0   :  { %v525_v59 = vadd.f32 %v9166_v54, %v380_v6  ;;  %v11031_v0 = vpop.f32.mrf.mxu1 }
  0xf1   :  { %v11029_v60 = vpop.f32.mrf.mxu0 }
  0xf2   :  { %v681_v57 = vadd.f32 %v9186_v58, %v525_v59  ;;  %v9189_v2 = vpop.f32.mrf.mxu1 }
  0xf3   :  { %v9169_v1 = vpop.f32.mrf.mxu0 }
  0xf4   :  { %v539_v7 = vadd.f32 %v9169_v1, %v392_v14  ;;  %v11035_v11 = vpop.f32.mrf.mxu1 }
  0xf5   :  { %v11033_v8 = vpop.f32.mrf.mxu0  ;;  %12860 = vst [vmem:[#allocation5_spill] sm:$0xff] %v11035_v11 }
  0xf6   :  { %12859 = vst [vmem:[#allocation4_spill] sm:$0xff] %v11033_v8  ;;  %v697_v63 = vadd.f32 %v9189_v2, %v539_v7  ;;  %v9192_v18 = vpop.f32.mrf.mxu1 }
  0xf7   :  { %v9172_v17 = vpop.f32.mrf.mxu0 }
  0xf8   :  { %v553_v22 = vadd.f32 %v9172_v17, %v404_v35  ;;  %v704_v39 = vpop.f32.mrf.mxu1 }
  0xf9   :  { %v545_v36 = vpop.f32.mrf.mxu0 }
  0xfa   :  { %v713_v40 = vadd.f32 %v9192_v18, %v553_v22  ;;  %v9195_v45 = vpop.f32.mrf.mxu1 }
  0xfb   :  { %v9175_v6 = vpop.f32.mrf.mxu0 }
  0xfc   :  { %v567_v46 = vadd.f32 %v9175_v6, %v416_v44  ;;  %v720_v33 = vpop.f32.mrf.mxu1  ;;  %v244_v44 = vadd.f32 %v10995_v21, %v243_v30 }
  0xfd   :  { %v559_v47 = vpop.f32.mrf.mxu0 }
  0xfe   :  { %v729_v49 = vadd.f32 %v9195_v45, %v567_v46  ;;  %v9220_v54 = vpop.f32.mrf.mxu1 }
  0xff   :  { %v9200_v52 = vpop.f32.mrf.mxu0 }
 0x100   :  { %v809_v14 = vadd.f32 %v9200_v52, %v649_v32  ;;  %v11037_v59 = vpop.f32.mrf.mxu1 }
 0x101   :  { %v802_v58 = vpop.f32.mrf.mxu0 }
 0x102   :  { %v11039_v1 = vadd.f32 %v9220_v54, %v809_v14  ;;  %v9223_v7 = vpop.f32.mrf.mxu1  ;;  %v398_v54 = vadd.f32 %v397_v31, %v244_v44  ;;  %v264_v14 = vadd.f32 %v10995_v21, %v263_v41 }
 0x103   :  { %v9203_v2 = vpop.f32.mrf.mxu0 }
 0x104   :  { %v821_v35 = vadd.f32 %v9203_v2, %v665_v38  ;;  %v11043_v18 = vpop.f32.mrf.mxu1  ;;  %v546_v11 = vadd.f32 %v545_v36, %v398_v54 }
 0x105   :  { %v11041_v17 = vpop.f32.mrf.mxu0 }
 0x106   :  { %v11046_v22 = vadd.f32 %v9223_v7, %v821_v35  ;;  %v9226_v45 = vpop.f32.mrf.mxu1  ;;  %v410_v7 = vadd.f32 %v11019_v42, %v264_v14  ;;  %v705_v12 = vadd.f32 %v704_v39, %v546_v11 }
 0x107   :  { %v9206_v6 = vpop.f32.mrf.mxu0 }
 0x108   :  { %v833_v46 = vadd.f32 %v9206_v6, %v681_v57  ;;  %v11050_v52 = vpop.f32.mrf.mxu1  ;;  %v560_v31 = vadd.f32 %v559_v47, %v410_v7 }
 0x109   :  { %v11048_v32 = vpop.f32.mrf.mxu0 }
 0x10a   :  { %v11053_v19 = vadd.f32 %v9226_v45, %v833_v46  ;;  %v9229_v2 = vpop.f32.mrf.mxu1  ;;  %v721_v54 = vadd.f32 %v720_v33, %v560_v31 }
 0x10b   :  { %v9209_v38 = vpop.f32.mrf.mxu0 }
 0x10c   :  { %12861 = vst [vmem:[#allocation6_spill] sm:$0xff] %v11053_v19  ;;  %v845_v8 = vadd.f32 %v9209_v38, %v697_v63  ;;  %v11057_v30 = vpop.f32.mrf.mxu1 }
 0x10d   :  { %v11055_v13 = vpop.f32.mrf.mxu0  ;;  %12863 = vst [vmem:[#allocation8_spill] sm:$0xff] %v11057_v30 }
 0x10e   :  { %12862 = vst [vmem:[#allocation7_spill] sm:$0xff] %v11055_v13  ;;  %v11060_v57 = vadd.f32 %v9229_v2, %v845_v8  ;;  %v9232_v6 = vpop.f32.mrf.mxu1 }
 0x10f   :  { %v9212_v35 = vpop.f32.mrf.mxu0 }
 0x110   :  { %v857_v44 = vadd.f32 %v9212_v35, %v713_v40  ;;  %v988_v45 = vpop.f32.mrf.mxu1 }
 0x111   :  { %v850_v41 = vpop.f32.mrf.mxu0 }
 0x112   :  { %v11062_v46 = vadd.f32 %v9232_v6, %v857_v44  ;;  %v851_v19 = vadd.f32 %v850_v41, %v705_v12  ;;  %v9235_v63 = vpop.f32.mrf.mxu1  ;;  %v164_v12 = vadd.f32 %v10995_v21, %v10998_v55 }
 0x113   :  { %v9215_v36 = vpop.f32.mrf.mxu0 }
 0x114   :  { %12864 = vst [vmem:[#allocation9_spill] sm:$0xff] %v11062_v46  ;;  %v11064_v38 = vadd.f32 %v988_v45, %v851_v19  ;;  %v869_v30 = vadd.f32 %v9215_v36, %v729_v49  ;;  %v1000_v42 = vpop.f32.mrf.mxu1  ;;  %v350_v33 = vadd.f32 %v11000_v56, %v164_v12 }
 0x115   :  { %v862_v13 = vpop.f32.mrf.mxu0 }
 0x116   :  { %12865 = vst [vmem:[#allocation10_spill] sm:$0xff] %v11064_v38  ;;  %v11066_v8 = vadd.f32 %v9235_v63, %v869_v30  ;;  %v863_v14 = vadd.f32 %v862_v13, %v721_v54  ;;  %v1191_v11 = vpop.f32.mrf.mxu1  ;;  %v490_v49 = vadd.f32 %v11021_v20, %v350_v33  ;;  %v11079_v20 = vld [vmem:[%s12847_s8] ss:$0 sm:$0xff] }
 0x117   :  { %v1100_v2 = vpop.f32.mrf.mxu0 }
 0x118   :  { %12866 = vst [vmem:[#allocation11_spill] sm:$0xff] %v11066_v8  ;;  %v11068_v39 = vadd.f32 %v1000_v42, %v863_v14  ;;  %v9257_v47 = vpop.f32.mrf.mxu1  ;;  %v1192_v6 = vadd.f32 %v1191_v11, %v1100_v2  ;;  %v641_v13 = vadd.f32 %v11023_v25, %v490_v49  ;;  %v11084_v25 = vld [vmem:[%s12848_s7] ss:$0 sm:$0xff] }
 0x119   :  { %v9246_v40 = vpop.f32.mrf.mxu0 }
 0x11a   :  { %12867 = vst [vmem:[#allocation12_spill] sm:$0xff] %v11068_v39  ;;  %v803_v44 = vadd.f32 %v802_v58, %v641_v13  ;;  %v1518_v58 = vmul.f32 0.0, %v11079_v20 }
 0x11c   :  { %v941_v55 = vadd.f32 %v11037_v59, %v803_v44 }
 0x11f   :  { %v1271_v7 = vpop.f32.mrf.mxu0 }
 0x120   :  { %v1272_v31 = vadd.f32 %v1271_v7, %v1192_v6  ;;  %v12868_v7 = vmov 0.0  }
 0x121   :  { %v1348_v19 = vpop.f32.mrf.mxu1  ;;  %v9268_v35 = vpop.f32.mrf.mxu0 }
 0x122   :  { %v1349_v41 = vadd.f32 %v1348_v19, %v1272_v31 }
 0x123   :  { %v9279_v30 = vpop.f32.mrf.mxu1 }
 0x129   :  { %v1431_v45 = vpop.f32.mrf.mxu0 }
 0x12a   :  { %v1506_v36 = vpop.f32.mrf.mxu1  ;;  %v1432_v63 = vadd.f32 %v1431_v45, %v1349_v41 }
 0x12b   :  { %v9290_v54 = vpop.f32.mrf.mxu0 }
 0x12c   :  { %v9301_v42 = vpop.f32.mrf.mxu1  ;;  %v1507_v14 = vadd.f32 %v1506_v36, %v1432_v63 }
 0x12e   :  { %v1510_v56 = vadd.f32 %v1507_v14, %v941_v55 }
 0x130   :  { %10523 = vtanh.f32 %v1510_v56 }
 0x13d   :  { %v10524_v2 = vpop.eup %10523 }
 0x13e   :  { %v1525_v11 = vmul.f32 %v10524_v2, %v11084_v25 }
 0x140   :  { %v11088_v59 = vadd.f32 %v1525_v11, %v1518_v58 }
 0x142   :  { %3504 = vrot.lane.b32.xlu0 %v11088_v59, %s10555_s30  ;;  %1527 = vst.msk [vmem:[%s12849_s10] sm:$0xff] %vm1021_vm2, %v11088_v59  ;;  %v1529_v40 = vsel %vm1021_vm2, %v11088_v59, 0 }
 0x143   :  { %v1600_v47 = vand.u32 4294901760, %v1529_v40 }
 0x145   :  { %v1601_v12 = vsub.f32 %v1529_v40, %v1600_v47  ;;  %9322 = vmatmul.mubr.f32.vlgmr.msra.gmra.mxu1 %v1600_v47 }
 0x146   :  { %9336 = vmatpush3.msra.mxu1 %v10810_v3  ;;  %9343 = vmatprep.mubr.msk.f32.mxu1 %vm10554_vm1, %v12868_v7 }
 0x147   :  { %9337 = vmatprep.subr.mxu1 %v12868_v7  ;;  %v1602_v33 = vand.u32 4294901760, %v1601_v12 }
 0x148   :  { %9338 = vmatpush3.msra.mxu1 %v10824_v24 }
 0x149   :  { %9339 = vmatprep.subr.mxu1 %v12868_v7  ;;  %v1603_v19 = vsub.f32 %v1601_v12, %v1602_v33 }
 0x14a   :  { %9340 = vmatpush3.msra.mxu1 %v10839_v29 }
 0x14b   :  { %9341 = vmatprep.subr.mxu1 %v12868_v7  ;;  %v1604_v35 = vand.u32 4294901760, %v1603_v19 }
 0x14c   :  { %9342 = vmatpush3.msra.mxu1 %v10856_v43 }
 0x14d   :  { %9344 = vmatmul.mubr.f32.vlgmr.msra.gmra.mxu1 %v1602_v33  ;;  %9357 = vmatprep.subr.mxu1 %v12868_v7 }
 0x14e   :  { %9311 = vmatmul.mubr.f32.vlgmr.msra.gmra.mxu0 %v1604_v35  ;;  %9358 = vmatpush3.msra.mxu1 %v10810_v3 }
 0x14f   :  { %9325 = vmatpush3.msra.mxu0 %v10822_v23  ;;  %9359 = vmatprep.subr.mxu1 %v12868_v7 }
 0x150   :  { %9326 = vmatprep.subr.mxu0 %v12868_v7  ;;  %9360 = vmatpush3.msra.mxu1 %v10824_v24 }
 0x151   :  { %9327 = vmatpush3.msra.mxu0 %v10837_v28  ;;  %9361 = vmatprep.subr.mxu1 %v12868_v7 }
 0x152   :  { %9328 = vmatprep.subr.mxu0 %v12868_v7  ;;  %9362 = vmatpush3.msra.mxu1 %v10839_v29 }
 0x153   :  { %9329 = vmatpush3.msra.mxu0 %v10854_v37  ;;  %9363 = vmatprep.subr.mxu1 %v12868_v7 }
 0x154   :  { %9330 = vmatprep.subr.mxu0 %v12868_v7  ;;  %9332 = vmatprep.mubr.msk.f32.mxu0 %vm10554_vm1, %v12868_v7 }
 0x155   :  { %9331 = vmatpush3.msra.mxu0 %v10869_v51  ;;  %9364 = vmatpush3.msra.mxu1 %v10856_v43 }
 0x156   :  { %9365 = vmatprep.mubr.msk.f32.mxu1 %vm10554_vm1, %v12868_v7  ;;  %9333 = vmatmul.mubr.f32.vlgmr.msra.gmra.mxu0 %v1601_v12 }
 0x157   :  { %9346 = vmatprep.subr.mxu0 %v12868_v7  ;;  %9366 = vmatmul.mubr.f32.vlgmr.msra.gmra.mxu1 %v1600_v47 }
 0x158   :  { %9347 = vmatpush3.msra.mxu0 %v10834_v27  ;;  %9354 = vmatprep.mubr.msk.f32.mxu0 %vm10554_vm1, %v12868_v7 }
 0x159   :  { %9348 = vmatprep.subr.mxu0 %v12868_v7  ;;  %9379 = vmatprep.subr.mxu1 %v12868_v7 }
 0x15a   :  { %9349 = vmatpush3.msra.mxu0 %v10851_v34  ;;  %9380 = vmatpush3.msra.mxu1 %v10861_v48 }
 0x15b   :  { %9350 = vmatprep.subr.mxu0 %v12868_v7  ;;  %9381 = vmatprep.subr.mxu1 %v12868_v7 }
 0x15c   :  { %9351 = vmatpush3.msra.mxu0 %v10866_v50  ;;  %9382 = vmatpush3.msra.mxu1 %v10877_v9 }
 0x15d   :  { %9352 = vmatprep.subr.mxu0 %v12868_v7  ;;  %9383 = vmatprep.subr.mxu1 %v12868_v7 }
 0x15e   :  { %9353 = vmatpush3.msra.mxu0 %v10882_v53  ;;  %9384 = vmatpush3.msra.mxu1 %v10892_v10 }
 0x15f   :  { %9355 = vmatmul.mubr.f32.vlgmr.msra.gmra.mxu0 %v1600_v47  ;;  %9385 = vmatprep.subr.mxu1 %v12868_v7  ;;  %v2018_v47 = vmul.f32 %v11079_v20, %v11088_v59 }
 0x160   :  { %9386 = vmatpush3.msra.mxu1 %v10904_v16  ;;  %9368 = vmatprep.subr.mxu0 %v12868_v7 }
 0x161   :  { %9387 = vmatprep.mubr.msk.f32.mxu1 %vm10554_vm1, %v12868_v7  ;;  %9401 = vmatprep.subr.mxu1 %v12868_v7 }
 0x162   :  { %9369 = vmatpush3.msra.mxu0 %v10810_v3  ;;  %9376 = vmatprep.mubr.msk.f32.mxu0 %vm10554_vm1, %v12868_v7 }
 0x163   :  { %9370 = vmatprep.subr.mxu0 %v12868_v7 }
 0x164   :  { %9371 = vmatpush3.msra.mxu0 %v10824_v24 }
 0x165   :  { %9372 = vmatprep.subr.mxu0 %v12868_v7 }
 0x166   :  { %9373 = vmatpush3.msra.mxu0 %v10839_v29 }
 0x167   :  { %9374 = vmatprep.subr.mxu0 %v12868_v7 }
 0x168   :  { %9375 = vmatpush3.msra.mxu0 %v10856_v43 }
 0x169   :  { %9390 = vmatprep.subr.mxu0 %v12868_v7 }
 0x205   :  { %v1697_v49 = vpop.f32.mrf.mxu1 }
 0x207   :  { %v9323_v6 = vpop.f32.mrf.mxu1 }
 0x20d   :  { %v1854_v30 = vpop.f32.mrf.mxu1 }
 0x20e   :  { %v1606_v31 = vpop.f32.mrf.mxu0 }
 0x20f   :  { %v9345_v13 = vpop.f32.mrf.mxu1  ;;  %v1698_v36 = vadd.f32 %v1697_v49, %v1606_v31 }
 0x210   :  { %v9312_v44 = vpop.f32.mrf.mxu0 }
 0x216   :  { %v1777_v41 = vpop.f32.mrf.mxu0 }
 0x217   :  { %v2012_v45 = vpop.f32.mrf.mxu1  ;;  %v1778_v42 = vadd.f32 %v1777_v41, %v1698_v36  ;;  %v184_v36 = vadd.f32 %v10995_v21, %v11003_v61 }
 0x218   :  { %v9334_v63 = vpop.f32.mrf.mxu0 }
 0x219   :  { %v9367_v54 = vpop.f32.mrf.mxu1  ;;  %v1855_v55 = vadd.f32 %v1854_v30, %v1778_v42  ;;  %v362_v63 = vadd.f32 %v11005_v62, %v184_v36 }
 0x21f   :  { %v1937_v14 = vpop.f32.mrf.mxu0 }
 0x220   :  { %v1938_v56 = vadd.f32 %v1937_v14, %v1855_v55  ;;  %v504_v55 = vadd.f32 %v11025_v15, %v362_v63 }
 0x221   :  { %v9356_v58 = vpop.f32.mrf.mxu0 }
 0x222   :  { %v2013_v2 = vadd.f32 %v2012_v45, %v1938_v56 }
 0x224   :  { %v2016_v11 = vadd.f32 %v2013_v2, %v11039_v1 }
 0x226   :  { %10525 = vtanh.f32 %v2016_v11  ;;  %v657_v11 = vadd.f32 %v11027_v26, %v504_v55 }
 0x233   :  { %v10526_v40 = vpop.eup %10525 }
 0x234   :  { %v2019_v12 = vmul.f32 %v10526_v40, %v11084_v25  ;;  %v815_v40 = vadd.f32 %v11041_v17, %v657_v11 }
 0x236   :  { %v11163_v33 = vadd.f32 %v2019_v12, %v2018_v47  ;;  %v953_v21 = vadd.f32 %v11043_v18, %v815_v40 }
 0x238   :  { %4062 = vrot.lane.b32.xlu0 %v11163_v33, %s10555_s30  ;;  %2021 = vst.msk [vmem:[%s12849_s10 + $0x8] sm:$0xff] %vm1021_vm2, %v11163_v33  ;;  %v2023_v1 = vsel %vm1021_vm2, %v11163_v33, 0  ;;  %v2512_v15 = vmul.f32 %v11079_v20, %v11163_v33 }
 0x239   :  { %v2094_v19 = vand.u32 4294901760, %v2023_v1 }
 0x23b   :  { %v2095_v35 = vsub.f32 %v2023_v1, %v2094_v19  ;;  %9388 = vmatmul.mubr.f32.vlgmr.msra.gmra.mxu1 %v2094_v19 }
 0x23c   :  { %9402 = vmatpush3.msra.mxu1 %v10810_v3  ;;  %9409 = vmatprep.mubr.msk.f32.mxu1 %vm10554_vm1, %v12868_v7 }
 0x23d   :  { %9403 = vmatprep.subr.mxu1 %v12868_v7  ;;  %v2096_v59 = vand.u32 4294901760, %v2095_v35 }
 0x23e   :  { %9404 = vmatpush3.msra.mxu1 %v10824_v24 }
 0x23f   :  { %9405 = vmatprep.subr.mxu1 %v12868_v7  ;;  %v2097_v49 = vsub.f32 %v2095_v35, %v2096_v59 }
 0x240   :  { %9406 = vmatpush3.msra.mxu1 %v10839_v29 }
 0x241   :  { %9407 = vmatprep.subr.mxu1 %v12868_v7  ;;  %v2098_v6 = vand.u32 4294901760, %v2097_v49 }
 0x242   :  { %9408 = vmatpush3.msra.mxu1 %v10856_v43 }
 0x243   :  { %9410 = vmatmul.mubr.f32.vlgmr.msra.gmra.mxu1 %v2096_v59  ;;  %9423 = vmatprep.subr.mxu1 %v12868_v7 }
 0x244   :  { %9377 = vmatmul.mubr.f32.vlgmr.msra.gmra.mxu0 %v2098_v6  ;;  %9424 = vmatpush3.msra.mxu1 %v10810_v3 }
 0x245   :  { %9391 = vmatpush3.msra.mxu0 %v10822_v23  ;;  %9425 = vmatprep.subr.mxu1 %v12868_v7 }
 0x246   :  { %9392 = vmatprep.subr.mxu0 %v12868_v7  ;;  %9426 = vmatpush3.msra.mxu1 %v10824_v24 }
 0x247   :  { %9393 = vmatpush3.msra.mxu0 %v10837_v28  ;;  %9427 = vmatprep.subr.mxu1 %v12868_v7 }
 0x248   :  { %9394 = vmatprep.subr.mxu0 %v12868_v7  ;;  %9428 = vmatpush3.msra.mxu1 %v10839_v29 }
 0x249   :  { %9395 = vmatpush3.msra.mxu0 %v10854_v37  ;;  %9429 = vmatprep.subr.mxu1 %v12868_v7 }
 0x24a   :  { %9396 = vmatprep.subr.mxu0 %v12868_v7  ;;  %9398 = vmatprep.mubr.msk.f32.mxu0 %vm10554_vm1, %v12868_v7 }
 0x24b   :  { %9397 = vmatpush3.msra.mxu0 %v10869_v51  ;;  %9430 = vmatpush3.msra.mxu1 %v10856_v43 }
 0x24c   :  { %9431 = vmatprep.mubr.msk.f32.mxu1 %vm10554_vm1, %v12868_v7  ;;  %9399 = vmatmul.mubr.f32.vlgmr.msra.gmra.mxu0 %v2095_v35 }
 0x24d   :  { %9412 = vmatprep.subr.mxu0 %v12868_v7  ;;  %9432 = vmatmul.mubr.f32.vlgmr.msra.gmra.mxu1 %v2094_v19 }
 0x24e   :  { %9413 = vmatpush3.msra.mxu0 %v10834_v27  ;;  %9420 = vmatprep.mubr.msk.f32.mxu0 %vm10554_vm1, %v12868_v7 }
 0x24f   :  { %9414 = vmatprep.subr.mxu0 %v12868_v7  ;;  %9445 = vmatprep.subr.mxu1 %v12868_v7 }
 0x250   :  { %9415 = vmatpush3.msra.mxu0 %v10851_v34  ;;  %9446 = vmatpush3.msra.mxu1 %v10861_v48 }
 0x251   :  { %9416 = vmatprep.subr.mxu0 %v12868_v7  ;;  %9447 = vmatprep.subr.mxu1 %v12868_v7 }
 0x252   :  { %9417 = vmatpush3.msra.mxu0 %v10866_v50  ;;  %9448 = vmatpush3.msra.mxu1 %v10877_v9 }
 0x253   :  { %9418 = vmatprep.subr.mxu0 %v12868_v7  ;;  %9449 = vmatprep.subr.mxu1 %v12868_v7 }
 0x254   :  { %9419 = vmatpush3.msra.mxu0 %v10882_v53  ;;  %9450 = vmatpush3.msra.mxu1 %v10892_v10 }
 0x255   :  { %9421 = vmatmul.mubr.f32.vlgmr.msra.gmra.mxu0 %v2094_v19  ;;  %9451 = vmatprep.subr.mxu1 %v12868_v7 }
 0x256   :  { %9452 = vmatpush3.msra.mxu1 %v10904_v16  ;;  %9434 = vmatprep.subr.mxu0 %v12868_v7 }
 0x257   :  { %9453 = vmatprep.mubr.msk.f32.mxu1 %vm10554_vm1, %v12868_v7  ;;  %9467 = vmatprep.subr.mxu1 %v12868_v7 }
 0x258   :  { %9435 = vmatpush3.msra.mxu0 %v10810_v3  ;;  %9442 = vmatprep.mubr.msk.f32.mxu0 %vm10554_vm1, %v12868_v7 }
 0x259   :  { %9436 = vmatprep.subr.mxu0 %v12868_v7 }
 0x25a   :  { %9437 = vmatpush3.msra.mxu0 %v10824_v24 }
 0x25b   :  { %9438 = vmatprep.subr.mxu0 %v12868_v7 }
 0x25c   :  { %9439 = vmatpush3.msra.mxu0 %v10839_v29 }
 0x25d   :  { %9440 = vmatprep.subr.mxu0 %v12868_v7 }
 0x25e   :  { %9441 = vmatpush3.msra.mxu0 %v10856_v43 }
 0x25f   :  { %9456 = vmatprep.subr.mxu0 %v12868_v7 }
 0x2fb   :  { %v2191_v30 = vpop.f32.mrf.mxu1 }
 0x2fd   :  { %v9389_v31 = vpop.f32.mrf.mxu1 }
 0x303   :  { %v2348_v13 = vpop.f32.mrf.mxu1 }
 0x304   :  { %v2100_v44 = vpop.f32.mrf.mxu0 }
 0x305   :  { %v9411_v41 = vpop.f32.mrf.mxu1  ;;  %v2192_v14 = vadd.f32 %v2191_v30, %v2100_v44 }
 0x306   :  { %v9378_v45 = vpop.f32.mrf.mxu0 }
 0x30c   :  { %v2271_v54 = vpop.f32.mrf.mxu0 }
 0x30d   :  { %v2506_v42 = vpop.f32.mrf.mxu1  ;;  %v2272_v2 = vadd.f32 %v2271_v54, %v2192_v14 }
 0x30e   :  { %v9400_v56 = vpop.f32.mrf.mxu0 }
 0x30f   :  { %v9433_v58 = vpop.f32.mrf.mxu1  ;;  %v2349_v47 = vadd.f32 %v2348_v13, %v2272_v2 }
 0x315   :  { %v2431_v12 = vpop.f32.mrf.mxu0 }
 0x316   :  { %v2432_v1 = vadd.f32 %v2431_v12, %v2349_v47 }
 0x317   :  { %v9422_v19 = vpop.f32.mrf.mxu0 }
 0x318   :  { %v2507_v61 = vadd.f32 %v2506_v42, %v2432_v1 }
 0x31a   :  { %v2510_v62 = vadd.f32 %v2507_v61, %v953_v21 }
 0x31c   :  { %10527 = vtanh.f32 %v2510_v62 }
 0x329   :  { %v10528_v35 = vpop.eup %10527 }
 0x32a   :  { %v2513_v59 = vmul.f32 %v10528_v35, %v11084_v25 }
 0x32c   :  { %v11244_v49 = vadd.f32 %v2513_v59, %v2512_v15 }
 0x32e   :  { %4613 = vrot.lane.b32.xlu1 %v11244_v49, %s10555_s30  ;;  %2515 = vst.msk [vmem:[%s12849_s10 + $0x10] sm:$0xff] %vm1021_vm2, %v11244_v49  ;;  %v2517_v26 = vsel %vm1021_vm2, %v11244_v49, 0  ;;  %v3006_v19 = vmul.f32 %v11079_v20, %v11244_v49 }
 0x32f   :  { %v2588_v17 = vand.u32 4294901760, %v2517_v26 }
 0x331   :  { %v2589_v18 = vsub.f32 %v2517_v26, %v2588_v17  ;;  %9454 = vmatmul.mubr.f32.vlgmr.msra.gmra.mxu1 %v2588_v17  ;;  %v1017_v26 = vld [vmem:[%s12845_s2 + $0x38] sm:$0xff] }
 0x332   :  { %9468 = vmatpush3.msra.mxu1 %v10810_v3  ;;  %9475 = vmatprep.mubr.msk.f32.mxu1 %vm10554_vm1, %v12868_v7 }
 0x333   :  { %9469 = vmatprep.subr.mxu1 %v12868_v7  ;;  %v2590_v33 = vand.u32 4294901760, %v2589_v18 }
 0x334   :  { %9470 = vmatpush3.msra.mxu1 %v10824_v24 }
 0x335   :  { %9471 = vmatprep.subr.mxu1 %v12868_v7  ;;  %v2591_v6 = vsub.f32 %v2589_v18, %v2590_v33 }
 0x336   :  { %9472 = vmatpush3.msra.mxu1 %v10839_v29 }
 0x337   :  { %9473 = vmatprep.subr.mxu1 %v12868_v7  ;;  %v2592_v30 = vand.u32 4294901760, %v2591_v6 }
 0x338   :  { %9474 = vmatpush3.msra.mxu1 %v10856_v43 }
 0x339   :  { %9476 = vmatmul.mubr.f32.vlgmr.msra.gmra.mxu1 %v2590_v33  ;;  %9489 = vmatprep.subr.mxu1 %v12868_v7 }
 0x33a   :  { %9443 = vmatmul.mubr.f32.vlgmr.msra.gmra.mxu0 %v2592_v30  ;;  %9490 = vmatpush3.msra.mxu1 %v10810_v3  ;;  %v1015_v30 = vld [vmem:[%s12845_s2 + $0x28] sm:$0xff] }
 0x33b   :  { %9457 = vmatpush3.msra.mxu0 %v10822_v23  ;;  %9491 = vmatprep.subr.mxu1 %v12868_v7 }
 0x33c   :  { %9458 = vmatprep.subr.mxu0 %v12868_v7  ;;  %9492 = vmatpush3.msra.mxu1 %v10824_v24 }
 0x33d   :  { %9459 = vmatpush3.msra.mxu0 %v10837_v28  ;;  %9493 = vmatprep.subr.mxu1 %v12868_v7 }
 0x33e   :  { %9460 = vmatprep.subr.mxu0 %v12868_v7  ;;  %9494 = vmatpush3.msra.mxu1 %v10839_v29 }
 0x33f   :  { %9461 = vmatpush3.msra.mxu0 %v10854_v37  ;;  %9495 = vmatprep.subr.mxu1 %v12868_v7 }
 0x340   :  { %9462 = vmatprep.subr.mxu0 %v12868_v7  ;;  %9464 = vmatprep.mubr.msk.f32.mxu0 %vm10554_vm1, %v12868_v7 }
 0x341   :  { %9463 = vmatpush3.msra.mxu0 %v10869_v51  ;;  %9496 = vmatpush3.msra.mxu1 %v10856_v43 }
 0x342   :  { %9497 = vmatprep.mubr.msk.f32.mxu1 %vm10554_vm1, %v12868_v7  ;;  %9465 = vmatmul.mubr.f32.vlgmr.msra.gmra.mxu0 %v2589_v18  ;;  %v1016_v18 = vld [vmem:[%s12845_s2 + $0x30] sm:$0xff] }
 0x343   :  { %9478 = vmatprep.subr.mxu0 %v12868_v7  ;;  %9498 = vmatmul.mubr.f32.vlgmr.msra.gmra.mxu1 %v2588_v17  ;;  %v11385_v6 = vand.u32 4294901760, %v1016_v18 }
 0x344   :  { %9479 = vmatpush3.msra.mxu0 %v10834_v27  ;;  %9486 = vmatprep.mubr.msk.f32.mxu0 %vm10554_vm1, %v12868_v7 }
 0x345   :  { %9480 = vmatprep.subr.mxu0 %v12868_v7  ;;  %9511 = vmatprep.subr.mxu1 %v12868_v7 }
 0x346   :  { %9481 = vmatpush3.msra.mxu0 %v10851_v34  ;;  %9512 = vmatpush3.msra.mxu1 %v10861_v48 }
 0x347   :  { %9482 = vmatprep.subr.mxu0 %v12868_v7  ;;  %9513 = vmatprep.subr.mxu1 %v12868_v7 }
 0x348   :  { %9483 = vmatpush3.msra.mxu0 %v10866_v50  ;;  %9514 = vmatpush3.msra.mxu1 %v10877_v9 }
 0x349   :  { %9484 = vmatprep.subr.mxu0 %v12868_v7  ;;  %9515 = vmatprep.subr.mxu1 %v12868_v7 }
 0x34a   :  { %9485 = vmatpush3.msra.mxu0 %v10882_v53  ;;  %9516 = vmatpush3.msra.mxu1 %v10892_v10 }
 0x34b   :  { %9487 = vmatmul.mubr.f32.vlgmr.msra.gmra.mxu0 %v2588_v17  ;;  %9517 = vmatprep.subr.mxu1 %v12868_v7  ;;  %v11377_v17 = vand.u32 4294901760, %v1017_v26 }
 0x34c   :  { %9518 = vmatpush3.msra.mxu1 %v10904_v16  ;;  %9500 = vmatprep.subr.mxu0 %v12868_v7 }
 0x34d   :  { %9519 = vmatprep.mubr.msk.f32.mxu1 %vm10554_vm1, %v12868_v7  ;;  %9533 = vmatprep.subr.mxu1 %v12868_v7  ;;  %v11383_v33 = vsub.f32 %v1017_v26, %v11377_v17 }
 0x34e   :  { %9501 = vmatpush3.msra.mxu0 %v10810_v3  ;;  %9508 = vmatprep.mubr.msk.f32.mxu0 %vm10554_vm1, %v12868_v7 }
 0x34f   :  { %9502 = vmatprep.subr.mxu0 %v12868_v7 }
 0x350   :  { %9503 = vmatpush3.msra.mxu0 %v10824_v24 }
 0x351   :  { %9504 = vmatprep.subr.mxu0 %v12868_v7 }
 0x352   :  { %9505 = vmatpush3.msra.mxu0 %v10839_v29 }
 0x353   :  { %9506 = vmatprep.subr.mxu0 %v12868_v7 }
 0x354   :  { %9507 = vmatpush3.msra.mxu0 %v10856_v43 }
 0x355   :  { %9522 = vmatprep.subr.mxu0 %v12868_v7 }
 0x3f1   :  { %v2685_v31 = vpop.f32.mrf.mxu1 }
 0x3f3   :  { %v9455_v13 = vpop.f32.mrf.mxu1 }
 0x3f4   :  { %v11396_v13 = vsub.f32 %v1016_v18, %v11385_v6 }
 0x3f9   :  { %v2842_v44 = vpop.f32.mrf.mxu1 }
 0x3fa   :  { %v2594_v41 = vpop.f32.mrf.mxu0 }
 0x3fb   :  { %v9477_v45 = vpop.f32.mrf.mxu1  ;;  %v2686_v42 = vadd.f32 %v2685_v31, %v2594_v41  ;;  %v11393_v31 = vand.u32 4294901760, %v11383_v33  ;;  %v1014_v41 = vld [vmem:[%s12845_s2 + $0x20] sm:$0xff] }
 0x3fc   :  { %v9444_v36 = vpop.f32.mrf.mxu0  ;;  %v11404_v45 = vand.u32 4294901760, %v1014_v41 }
 0x3fd   :  { %v3615_v36 = vsub.f32 %v11383_v33, %v11393_v31 }
 0x402   :  { %v2765_v63 = vpop.f32.mrf.mxu0 }
 0x403   :  { %v3000_v54 = vpop.f32.mrf.mxu1  ;;  %v2766_v56 = vadd.f32 %v2765_v63, %v2686_v42  ;;  %v11410_v63 = vand.u32 4294901760, %v11396_v13  ;;  %v11417_v42 = vsub.f32 %v1014_v41, %v11404_v45 }
 0x404   :  { %v9466_v55 = vpop.f32.mrf.mxu0 }
 0x405   :  { %v9499_v14 = vpop.f32.mrf.mxu1  ;;  %v2843_v58 = vadd.f32 %v2842_v44, %v2766_v56  ;;  %v11398_v44 = vand.u32 4294901760, %v1015_v30  ;;  %v11420_v55 = vand.u32 4294901760, %v3615_v36 }
 0x406   :  { %v3622_v14 = vsub.f32 %v11396_v13, %v11410_v63 }
 0x40b   :  { %v2925_v2 = vpop.f32.mrf.mxu0 }
 0x40c   :  { %v2926_v11 = vadd.f32 %v2925_v2, %v2843_v58  ;;  %v11429_v58 = vand.u32 4294901760, %v11417_v42  ;;  %v11433_v2 = vand.u32 4294901760, %v3622_v14 }
 0x40d   :  { %v9488_v40 = vpop.f32.mrf.mxu0 }
 0x40e   :  { %v3001_v47 = vadd.f32 %v3000_v54, %v2926_v11  ;;  %v11413_v54 = vsub.f32 %v1015_v30, %v11398_v44  ;;  %v3636_v40 = vsub.f32 %v11417_v42, %v11429_v58 }
 0x410   :  { %v3004_v12 = vadd.f32 %v3001_v47, %v11046_v22  ;;  %v11425_v56 = vand.u32 4294901760, %v11413_v54 }
 0x412   :  { %10529 = vtanh.f32 %v3004_v12  ;;  %v3629_v11 = vsub.f32 %v11413_v54, %v11425_v56  ;;  %v11447_v12 = vand.u32 4294901760, %v3636_v40 }
 0x414   :  { %v11443_v47 = vand.u32 4294901760, %v3629_v11 }
 0x41f   :  { %v10530_v1 = vpop.eup %10529 }
 0x420   :  { %v3007_v21 = vmul.f32 %v10530_v1, %v11084_v25 }
 0x422   :  { %v11319_v61 = vadd.f32 %v3007_v21, %v3006_v19 }
 0x424   :  { %5164 = vrot.lane.b32.xlu1 %v11319_v61, %s10555_s30  ;;  %3009 = vst.msk [vmem:[%s12849_s10 + $0x18] sm:$0xff] %vm1021_vm2, %v11319_v61  ;;  %v3011_v22 = vsel %vm1021_vm2, %v11319_v61, 0 }
 0x425   :  { %v3082_v62 = vand.u32 4294901760, %v3011_v22 }
 0x427   :  { %v3083_v35 = vsub.f32 %v3011_v22, %v3082_v62  ;;  %9520 = vmatmul.mubr.f32.vlgmr.msra.gmra.mxu1 %v3082_v62 }
 0x428   :  { %9534 = vmatpush3.msra.mxu1 %v10810_v3  ;;  %9541 = vmatprep.mubr.msk.f32.mxu1 %vm10554_vm1, %v12868_v7 }
 0x429   :  { %9535 = vmatprep.subr.mxu1 %v12868_v7  ;;  %v3084_v15 = vand.u32 4294901760, %v3083_v35 }
 0x42a   :  { %9536 = vmatpush3.msra.mxu1 %v10824_v24 }
 0x42b   :  { %9537 = vmatprep.subr.mxu1 %v12868_v7  ;;  %v3085_v59 = vsub.f32 %v3083_v35, %v3084_v15 }
 0x42c   :  { %9538 = vmatpush3.msra.mxu1 %v10839_v29 }
 0x42d   :  { %9539 = vmatprep.subr.mxu1 %v12868_v7  ;;  %v3086_v49 = vand.u32 4294901760, %v3085_v59 }
 0x42e   :  { %9540 = vmatpush3.msra.mxu1 %v10856_v43 }
 0x42f   :  { %9542 = vmatmul.mubr.f32.vlgmr.msra.gmra.mxu1 %v3084_v15  ;;  %9555 = vmatprep.subr.mxu1 %v12868_v7  ;;  %v11469_v15 = vld [vmem:[%s12846_s4] ss:$0 sm:$0xff] }
 0x430   :  { %9509 = vmatmul.mubr.f32.vlgmr.msra.gmra.mxu0 %v3086_v49  ;;  %9556 = vmatpush3.msra.mxu1 %v10810_v3  ;;  %v204_v59 = vadd.f32 %v11469_v15, %v11008_v4 }
 0x431   :  { %9523 = vmatpush3.msra.mxu0 %v10822_v23  ;;  %9557 = vmatprep.subr.mxu1 %v12868_v7 }
 0x432   :  { %9524 = vmatprep.subr.mxu0 %v12868_v7  ;;  %9558 = vmatpush3.msra.mxu1 %v10824_v24  ;;  %v374_v49 = vadd.f32 %v11010_v5, %v204_v59 }
 0x433   :  { %9525 = vmatpush3.msra.mxu0 %v10837_v28  ;;  %9559 = vmatprep.subr.mxu1 %v12868_v7 }
 0x434   :  { %9526 = vmatprep.subr.mxu0 %v12868_v7  ;;  %9560 = vmatpush3.msra.mxu1 %v10839_v29  ;;  %v518_v30 = vadd.f32 %v11029_v60, %v374_v49  ;;  %v3500_v60 = vmul.f32 %v11079_v20, %v11319_v61 }
 0x435   :  { %9527 = vmatpush3.msra.mxu0 %v10854_v37  ;;  %9561 = vmatprep.subr.mxu1 %v12868_v7 }
 0x436   :  { %9528 = vmatprep.subr.mxu0 %v12868_v7  ;;  %9530 = vmatprep.mubr.msk.f32.mxu0 %vm10554_vm1, %v12868_v7  ;;  %v673_v40 = vadd.f32 %v11031_v0, %v518_v30  ;;  %v3505_v0 = vpop.permute.xlu0 %3504 }
 0x437   :  { %9529 = vmatpush3.msra.mxu0 %v10869_v51  ;;  %9562 = vmatpush3.msra.mxu1 %v10856_v43 }
 0x438   :  { %9563 = vmatprep.mubr.msk.f32.mxu1 %vm10554_vm1, %v12868_v7  ;;  %9531 = vmatmul.mubr.f32.vlgmr.msra.gmra.mxu0 %v3083_v35 }
 0x439   :  { %9544 = vmatprep.subr.mxu0 %v12868_v7  ;;  %9564 = vmatmul.mubr.f32.vlgmr.msra.gmra.mxu1 %v3082_v62 }
 0x43a   :  { %9545 = vmatpush3.msra.mxu0 %v10834_v27  ;;  %9552 = vmatprep.mubr.msk.f32.mxu0 %vm10554_vm1, %v12868_v7 }
 0x43b   :  { %9546 = vmatprep.subr.mxu0 %v12868_v7  ;;  %9585 = vmatprep.subr.mxu1 %v12868_v7 }
 0x43c   :  { %9547 = vmatpush3.msra.mxu0 %v10851_v34  ;;  %9601 = vmatprep.mubr.msk.f32.mxu1 %vm10554_vm1, %v12868_v7 }
 0x43d   :  { %9548 = vmatprep.subr.mxu0 %v12868_v7  ;;  %9586 = vmatpush3.msra.mxu1 %v11420_v55 }
 0x43e   :  { %9549 = vmatpush3.msra.mxu0 %v10866_v50  ;;  %9587 = vmatprep.subr.mxu1 %v12868_v7 }
 0x43f   :  { %9550 = vmatprep.subr.mxu0 %v12868_v7  ;;  %9588 = vmatpush3.msra.mxu1 %v11433_v2 }
 0x440   :  { %9551 = vmatpush3.msra.mxu0 %v10882_v53  ;;  %9589 = vmatprep.subr.mxu1 %v12868_v7 }
 0x441   :  { %9553 = vmatmul.mubr.f32.vlgmr.msra.gmra.mxu0 %v3082_v62  ;;  %9566 = vmatprep.subr.mxu0 %v12868_v7 }
 0x442   :  { %9582 = vmatprep.mubr.msk.f32.mxu0 %vm10554_vm1, %v12868_v7  ;;  %9567 = vmatpush3.msra.mxu0 %v11377_v17 }
 0x443   :  { %9568 = vmatprep.subr.mxu0 %v12868_v7  ;;  %9590 = vmatpush3.msra.mxu1 %v11443_v47 }
 0x444   :  { %9569 = vmatpush3.msra.mxu0 %v11385_v6  ;;  %9591 = vmatprep.subr.mxu1 %v12868_v7 }
 0x445   :  { %9570 = vmatprep.subr.mxu0 %v12868_v7  ;;  %9592 = vmatpush3.msra.mxu1 %v11447_v12 }
 0x446   :  { %9571 = vmatpush3.msra.mxu0 %v11398_v44  ;;  %9593 = vmatprep.subr.mxu1 %v12868_v7 }
 0x447   :  { %9572 = vmatprep.subr.mxu0 %v12868_v7  ;;  %9594 = vmatpush3.msra.mxu1 %v10861_v48 }
 0x448   :  { %9573 = vmatpush3.msra.mxu0 %v11404_v45  ;;  %9595 = vmatprep.subr.mxu1 %v12868_v7 }
 0x449   :  { %9574 = vmatprep.subr.mxu0 %v12868_v7  ;;  %9596 = vmatpush3.msra.mxu1 %v10877_v9 }
 0x44a   :  { %9575 = vmatpush3.msra.mxu0 %v10810_v3  ;;  %9597 = vmatprep.subr.mxu1 %v12868_v7 }
 0x44b   :  { %9576 = vmatprep.subr.mxu0 %v12868_v7  ;;  %9598 = vmatpush3.msra.mxu1 %v10892_v10 }
 0x44c   :  { %9577 = vmatpush3.msra.mxu0 %v10824_v24  ;;  %9599 = vmatprep.subr.mxu1 %v12868_v7 }
 0x44d   :  { %9578 = vmatprep.subr.mxu0 %v12868_v7  ;;  %9600 = vmatpush3.msra.mxu1 %v10904_v16 }
 0x44e   :  { %9579 = vmatpush3.msra.mxu0 %v10839_v29  ;;  %9623 = vmatprep.subr.mxu1 %v12868_v7 }
 0x44f   :  { %9580 = vmatprep.subr.mxu0 %v12868_v7 }
 0x450   :  { %9581 = vmatpush3.msra.mxu0 %v10856_v43 }
 0x451   :  { %9604 = vmatprep.subr.mxu0 %v12868_v7 }
 0x4e7   :  { %v3179_v1 = vpop.f32.mrf.mxu1 }
 0x4e9   :  { %v9521_v19 = vpop.f32.mrf.mxu1 }
 0x4ea   :  { %v827_v19 = vadd.f32 %v11048_v32, %v673_v40 }
 0x4ec   :  { %v965_v4 = vadd.f32 %v11050_v52, %v827_v19 }
 0x4ef   :  { %v3336_v21 = vpop.f32.mrf.mxu1 }
 0x4f0   :  { %v3088_v22 = vpop.f32.mrf.mxu0 }
 0x4f1   :  { %v9543_v62 = vpop.f32.mrf.mxu1  ;;  %v3180_v41 = vadd.f32 %v3179_v1, %v3088_v22 }
 0x4f2   :  { %v9510_v35 = vpop.f32.mrf.mxu0 }
 0x4f8   :  { %v3259_v26 = vpop.f32.mrf.mxu0 }
 0x4f9   :  { %v3494_v18 = vpop.f32.mrf.mxu1  ;;  %v3260_v11 = vadd.f32 %v3259_v26, %v3180_v41 }
 0x4fa   :  { %v9532_v36 = vpop.f32.mrf.mxu0 }
 0x4fb   :  { %v9565_v14 = vpop.f32.mrf.mxu1  ;;  %v3337_v62 = vadd.f32 %v3336_v21, %v3260_v11 }
 0x501   :  { %v3419_v35 = vpop.f32.mrf.mxu0 }
 0x502   :  { %v3420_v8 = vadd.f32 %v3419_v35, %v3337_v62 }
 0x503   :  { %v9554_v39 = vpop.f32.mrf.mxu0 }
 0x504   :  { %v3495_v46 = vadd.f32 %v3494_v18, %v3420_v8 }
 0x506   :  { %v3498_v5 = vadd.f32 %v3495_v46, %v965_v4 }
 0x508   :  { %10531 = vtanh.f32 %v3498_v5 }
 0x515   :  { %v10532_v59 = vpop.eup %10531 }
 0x516   :  { %v3501_v1 = vmul.f32 %v10532_v59, %v11084_v25 }
 0x518   :  { %v11481_v22 = vadd.f32 %v3501_v1, %v3500_v60  ;;  %v11610_v60 = vld [vmem:[%s12850_s5] ss:$0 sm:$0xff] }
 0x519   :  { %v12869_v1 = vld [vmem:[#allocation6_spill] sm:$0xff] }
 0x51a   :  { %5716 = vrot.lane.b32.xlu0 %v11481_v22, %s10555_s30  ;;  %3503 = vst.msk [vmem:[%s12849_s10 + $0x20] sm:$0xff] %vm1021_vm2, %v11481_v22  ;;  %v3507_v32 = vsel %vm1021_vm2, %v11481_v22, %v3505_v0 }
 0x51b   :  { %v3510_v52 = vsel %vm3508_vm3, %v3507_v32, 0 }
 0x51c   :  { %v11493_v46 = vand.u32 4294901760, %v3510_v52 }
 0x51e   :  { %v3586_v8 = vsub.f32 %v3510_v52, %v11493_v46  ;;  %9602 = vmatmul.mubr.f32.vlgmr.msra.gmra.mxu1 %v11493_v46 }
 0x51f   :  { %9624 = vmatpush3.msra.mxu1 %v11377_v17  ;;  %9639 = vmatprep.mubr.msk.f32.mxu1 %vm10554_vm1, %v12868_v7 }
 0x520   :  { %9625 = vmatprep.subr.mxu1 %v12868_v7  ;;  %v3587_v39 = vand.u32 4294901760, %v3586_v8 }
 0x521   :  { %9626 = vmatpush3.msra.mxu1 %v11385_v6 }
 0x522   :  { %9627 = vmatprep.subr.mxu1 %v12868_v7  ;;  %v3588_v20 = vsub.f32 %v3586_v8, %v3587_v39 }
 0x523   :  { %9628 = vmatpush3.msra.mxu1 %v11398_v44 }
 0x524   :  { %9629 = vmatprep.subr.mxu1 %v12868_v7  ;;  %v3589_v25 = vand.u32 4294901760, %v3588_v20 }
 0x525   :  { %9630 = vmatpush3.msra.mxu1 %v11404_v45 }
 0x526   :  { %9631 = vmatprep.subr.mxu1 %v12868_v7  ;;  %9583 = vmatmul.mubr.f32.vlgmr.msra.gmra.mxu0 %v3589_v25 }
 0x527   :  { %9605 = vmatpush3.msra.mxu0 %v11383_v33  ;;  %9632 = vmatpush3.msra.mxu1 %v10810_v3 }
 0x528   :  { %9606 = vmatprep.subr.mxu0 %v12868_v7  ;;  %9633 = vmatprep.subr.mxu1 %v12868_v7 }
 0x529   :  { %9607 = vmatpush3.msra.mxu0 %v11396_v13  ;;  %9634 = vmatpush3.msra.mxu1 %v10824_v24 }
 0x52a   :  { %9608 = vmatprep.subr.mxu0 %v12868_v7  ;;  %9635 = vmatprep.subr.mxu1 %v12868_v7 }
 0x52b   :  { %9609 = vmatpush3.msra.mxu0 %v11413_v54  ;;  %9636 = vmatpush3.msra.mxu1 %v10839_v29 }
 0x52c   :  { %9610 = vmatprep.subr.mxu0 %v12868_v7  ;;  %9637 = vmatprep.subr.mxu1 %v12868_v7 }
 0x52d   :  { %9611 = vmatpush3.msra.mxu0 %v11417_v42  ;;  %9638 = vmatpush3.msra.mxu1 %v10856_v43 }
 0x52e   :  { %9612 = vmatprep.subr.mxu0 %v12868_v7  ;;  %9640 = vmatmul.mubr.f32.vlgmr.msra.gmra.mxu1 %v3587_v39  ;;  %v11624_v39 = vld [vmem:[%s12848_s7] ss:$0 sm:$0xff] }
 0x52f   :  { %9661 = vmatprep.subr.mxu1 %v12868_v7  ;;  %9613 = vmatpush3.msra.mxu0 %v10822_v23 }
 0x530   :  { %9662 = vmatpush3.msra.mxu1 %v11377_v17  ;;  %9614 = vmatprep.subr.mxu0 %v12868_v7 }
 0x531   :  { %9663 = vmatprep.subr.mxu1 %v12868_v7  ;;  %9615 = vmatpush3.msra.mxu0 %v10837_v28 }
 0x532   :  { %9664 = vmatpush3.msra.mxu1 %v11385_v6  ;;  %9616 = vmatprep.subr.mxu0 %v12868_v7 }
 0x533   :  { %9665 = vmatprep.subr.mxu1 %v12868_v7  ;;  %9617 = vmatpush3.msra.mxu0 %v10854_v37 }
 0x534   :  { %9666 = vmatpush3.msra.mxu1 %v11398_v44  ;;  %9618 = vmatprep.subr.mxu0 %v12868_v7 }
 0x535   :  { %9667 = vmatprep.subr.mxu1 %v12868_v7  ;;  %9619 = vmatpush3.msra.mxu0 %v10869_v51 }
 0x536   :  { %9620 = vmatprep.mubr.msk.f32.mxu0 %vm10554_vm1, %v12868_v7  ;;  %9668 = vmatpush3.msra.mxu1 %v11404_v45 }
 0x537   :  { %9621 = vmatmul.mubr.f32.vlgmr.msra.gmra.mxu0 %v3586_v8  ;;  %9642 = vmatprep.subr.mxu0 %v12868_v7 }
 0x538   :  { %9669 = vmatprep.subr.mxu1 %v12868_v7  ;;  %9643 = vmatpush3.msra.mxu0 %v11393_v31 }
 0x539   :  { %9670 = vmatpush3.msra.mxu1 %v10810_v3  ;;  %9644 = vmatprep.subr.mxu0 %v12868_v7 }
 0x53a   :  { %9671 = vmatprep.subr.mxu1 %v12868_v7  ;;  %9645 = vmatpush3.msra.mxu0 %v11410_v63 }
 0x53b   :  { %9672 = vmatpush3.msra.mxu1 %v10824_v24  ;;  %9646 = vmatprep.subr.mxu0 %v12868_v7 }
 0x53c   :  { %9673 = vmatprep.subr.mxu1 %v12868_v7  ;;  %9647 = vmatpush3.msra.mxu0 %v11425_v56 }
 0x53d   :  { %9674 = vmatpush3.msra.mxu1 %v10839_v29  ;;  %9648 = vmatprep.subr.mxu0 %v12868_v7 }
 0x53e   :  { %9675 = vmatprep.subr.mxu1 %v12868_v7  ;;  %9649 = vmatpush3.msra.mxu0 %v11429_v58 }
 0x53f   :  { %9676 = vmatpush3.msra.mxu1 %v10856_v43  ;;  %9677 = vmatprep.mubr.msk.f32.mxu1 %vm10554_vm1, %v12868_v7 }
 0x540   :  { %9650 = vmatprep.subr.mxu0 %v12868_v7  ;;  %9678 = vmatmul.mubr.f32.vlgmr.msra.gmra.mxu1 %v11493_v46 }
 0x541   :  { %9651 = vmatpush3.msra.mxu0 %v10834_v27  ;;  %9658 = vmatprep.mubr.msk.f32.mxu0 %vm10554_vm1, %v12868_v7 }
 0x542   :  { %9652 = vmatprep.subr.mxu0 %v12868_v7  ;;  %9699 = vmatprep.subr.mxu1 %v12868_v7 }
 0x543   :  { %9653 = vmatpush3.msra.mxu0 %v10851_v34  ;;  %9700 = vmatpush3.msra.mxu1 %v11420_v55 }
 0x544   :  { %9654 = vmatprep.subr.mxu0 %v12868_v7  ;;  %9701 = vmatprep.subr.mxu1 %v12868_v7 }
 0x545   :  { %9655 = vmatpush3.msra.mxu0 %v10866_v50  ;;  %9702 = vmatpush3.msra.mxu1 %v11433_v2 }
 0x546   :  { %9656 = vmatprep.subr.mxu0 %v12868_v7  ;;  %9703 = vmatprep.subr.mxu1 %v12868_v7 }
 0x547   :  { %9657 = vmatpush3.msra.mxu0 %v10882_v53  ;;  %9704 = vmatpush3.msra.mxu1 %v11443_v47 }
 0x548   :  { %9659 = vmatmul.mubr.f32.vlgmr.msra.gmra.mxu0 %v11493_v46  ;;  %9705 = vmatprep.subr.mxu1 %v12868_v7  ;;  %v11617_v46 = vld [vmem:[%s12847_s8] ss:$0 sm:$0xff] }
 0x549   :  { %9706 = vmatpush3.msra.mxu1 %v11447_v12  ;;  %9680 = vmatprep.subr.mxu0 %v12868_v7  ;;  %v4058_v8 = vmul.f32 %v11617_v46, %v11481_v22 }
 0x54a   :  { %9707 = vmatprep.subr.mxu1 %v12868_v7  ;;  %9681 = vmatpush3.msra.mxu0 %v11377_v17 }
 0x54b   :  { %9708 = vmatpush3.msra.mxu1 %v10861_v48  ;;  %9682 = vmatprep.subr.mxu0 %v12868_v7 }
 0x54c   :  { %9709 = vmatprep.subr.mxu1 %v12868_v7  ;;  %9683 = vmatpush3.msra.mxu0 %v11385_v6 }
 0x54d   :  { %9710 = vmatpush3.msra.mxu1 %v10877_v9  ;;  %9684 = vmatprep.subr.mxu0 %v12868_v7 }
 0x54e   :  { %9711 = vmatprep.subr.mxu1 %v12868_v7  ;;  %9685 = vmatpush3.msra.mxu0 %v11398_v44 }
 0x54f   :  { %9712 = vmatpush3.msra.mxu1 %v10892_v10  ;;  %9686 = vmatprep.subr.mxu0 %v12868_v7 }
 0x550   :  { %9713 = vmatprep.subr.mxu1 %v12868_v7  ;;  %9687 = vmatpush3.msra.mxu0 %v11404_v45 }
 0x551   :  { %9714 = vmatpush3.msra.mxu1 %v10904_v16  ;;  %9688 = vmatprep.subr.mxu0 %v12868_v7 }
 0x552   :  { %9715 = vmatprep.mubr.msk.f32.mxu1 %vm10554_vm1, %v12868_v7  ;;  %9737 = vmatprep.subr.mxu1 %v12868_v7 }
 0x553   :  { %9689 = vmatpush3.msra.mxu0 %v10810_v3  ;;  %9696 = vmatprep.mubr.msk.f32.mxu0 %vm10554_vm1, %v12868_v7 }
 0x554   :  { %9690 = vmatprep.subr.mxu0 %v12868_v7 }
 0x555   :  { %9691 = vmatpush3.msra.mxu0 %v10824_v24 }
 0x556   :  { %9692 = vmatprep.subr.mxu0 %v12868_v7 }
 0x557   :  { %9693 = vmatpush3.msra.mxu0 %v10839_v29 }
 0x558   :  { %9694 = vmatprep.subr.mxu0 %v12868_v7 }
 0x559   :  { %9695 = vmatpush3.msra.mxu0 %v10856_v43 }
 0x55a   :  { %9718 = vmatprep.subr.mxu0 %v12868_v7 }
 0x5de   :  { %v3702_v61 = vpop.f32.mrf.mxu1 }
 0x5e0   :  { %v9603_v21 = vpop.f32.mrf.mxu1 }
 0x5e6   :  { %v3591_v49 = vpop.f32.mrf.mxu0 }
 0x5e7   :  { %v3703_v11 = vadd.f32 %v3702_v61, %v3591_v49  ;;  %v4063_v61 = vpop.permute.xlu0 %4062 }
 0x5e8   :  { %v9584_v26 = vpop.f32.mrf.mxu0 }
 0x5ee   :  { %v3871_v18 = vpop.f32.mrf.mxu1 }
 0x5f0   :  { %v9641_v30 = vpop.f32.mrf.mxu1 }
 0x5f7   :  { %v3790_v41 = vpop.f32.mrf.mxu0 }
 0x5f8   :  { %v3791_v19 = vadd.f32 %v3790_v41, %v3703_v11 }
 0x5f9   :  { %v9622_v36 = vpop.f32.mrf.mxu0 }
 0x5fa   :  { %v3872_v62 = vadd.f32 %v3871_v18, %v3791_v19 }
 0x600   :  { %v4045_v14 = vpop.f32.mrf.mxu1 }
 0x602   :  { %v9679_v40 = vpop.f32.mrf.mxu1 }
 0x608   :  { %v3966_v35 = vpop.f32.mrf.mxu0 }
 0x609   :  { %v3967_v4 = vadd.f32 %v3966_v35, %v3872_v62 }
 0x60a   :  { %v9660_v5 = vpop.f32.mrf.mxu0 }
 0x60b   :  { %v4046_v59 = vadd.f32 %v4045_v14, %v3967_v4  ;;  %v12870_v5 = vld [vmem:[#allocation2_spill] sm:$0xff] }
 0x60d   :  { %v4049_v0 = vadd.f32 %v4046_v59, %v12869_v1  ;;  %v224_v59 = vadd.f32 %v11469_v15, %v12870_v5  ;;  %v12871_v1 = vld [vmem:[#allocation3_spill] sm:$0xff] }
 0x60f   :  { %v4056_v32 = vadd.f32 %v11610_v60, %v4049_v0  ;;  %v386_v0 = vadd.f32 %v12871_v1, %v224_v59  ;;  %v4614_v1 = vpop.permute.xlu1 %4613 }
 0x611   :  { %10533 = vtanh.f32 %v4056_v32 }
 0x61e   :  { %v10534_v52 = vpop.eup %10533 }
 0x61f   :  { %v4059_v20 = vmul.f32 %v11624_v39, %v10534_v52  ;;  %v12872_v52 = vld [vmem:[#allocation4_spill] sm:$0xff] }
 0x621   :  { %v11627_v25 = vadd.f32 %v4059_v20, %v4058_v8  ;;  %v532_v8 = vadd.f32 %v12872_v52, %v386_v0 }
 0x623   :  { %6268 = vrot.lane.b32.xlu1 %v11627_v25, %s10555_s30  ;;  %4061 = vst.msk [vmem:[%s12849_s10 + $0x28] sm:$0xff] %vm1021_vm2, %v11627_v25  ;;  %v4065_v22 = vsel %vm1021_vm2, %v11627_v25, %v4063_v61 }
 0x624   :  { %v4067_v21 = vsel %vm3508_vm3, %v4065_v22, 0 }
 0x625   :  { %v11639_v49 = vand.u32 4294901760, %v4067_v21 }
 0x627   :  { %v4143_v26 = vsub.f32 %v4067_v21, %v11639_v49  ;;  %9716 = vmatmul.mubr.f32.vlgmr.msra.gmra.mxu1 %v11639_v49  ;;  %v12873_v21 = vld [vmem:[#allocation5_spill] sm:$0xff] }
 0x628   :  { %9738 = vmatpush3.msra.mxu1 %v11377_v17  ;;  %9753 = vmatprep.mubr.msk.f32.mxu1 %vm10554_vm1, %v12868_v7 }
 0x629   :  { %9739 = vmatprep.subr.mxu1 %v12868_v7  ;;  %v4144_v18 = vand.u32 4294901760, %v4143_v26 }
 0x62a   :  { %9740 = vmatpush3.msra.mxu1 %v11385_v6 }
 0x62b   :  { %9741 = vmatprep.subr.mxu1 %v12868_v7  ;;  %v4145_v30 = vsub.f32 %v4143_v26, %v4144_v18 }
 0x62c   :  { %9742 = vmatpush3.msra.mxu1 %v11398_v44 }
 0x62d   :  { %9743 = vmatprep.subr.mxu1 %v12868_v7  ;;  %v4146_v41 = vand.u32 4294901760, %v4145_v30 }
 0x62e   :  { %9744 = vmatpush3.msra.mxu1 %v11404_v45 }
 0x62f   :  { %9745 = vmatprep.subr.mxu1 %v12868_v7  ;;  %9697 = vmatmul.mubr.f32.vlgmr.msra.gmra.mxu0 %v4146_v41 }
 0x630   :  { %9719 = vmatpush3.msra.mxu0 %v11383_v33  ;;  %9746 = vmatpush3.msra.mxu1 %v10810_v3 }
 0x631   :  { %9720 = vmatprep.subr.mxu0 %v12868_v7  ;;  %9747 = vmatprep.subr.mxu1 %v12868_v7 }
 0x632   :  { %9721 = vmatpush3.msra.mxu0 %v11396_v13  ;;  %9748 = vmatpush3.msra.mxu1 %v10824_v24 }
 0x633   :  { %9722 = vmatprep.subr.mxu0 %v12868_v7  ;;  %9749 = vmatprep.subr.mxu1 %v12868_v7 }
 0x634   :  { %9723 = vmatpush3.msra.mxu0 %v11413_v54  ;;  %9750 = vmatpush3.msra.mxu1 %v10839_v29 }
 0x635   :  { %9724 = vmatprep.subr.mxu0 %v12868_v7  ;;  %9751 = vmatprep.subr.mxu1 %v12868_v7 }
 0x636   :  { %9725 = vmatpush3.msra.mxu0 %v11417_v42  ;;  %9752 = vmatpush3.msra.mxu1 %v10856_v43 }
 0x637   :  { %9726 = vmatprep.subr.mxu0 %v12868_v7  ;;  %9754 = vmatmul.mubr.f32.vlgmr.msra.gmra.mxu1 %v4144_v18 }
 0x638   :  { %9775 = vmatprep.subr.mxu1 %v12868_v7  ;;  %9727 = vmatpush3.msra.mxu0 %v10822_v23 }
 0x639   :  { %9776 = vmatpush3.msra.mxu1 %v11377_v17  ;;  %9728 = vmatprep.subr.mxu0 %v12868_v7 }
 0x63a   :  { %9777 = vmatprep.subr.mxu1 %v12868_v7  ;;  %9729 = vmatpush3.msra.mxu0 %v10837_v28 }
 0x63b   :  { %9778 = vmatpush3.msra.mxu1 %v11385_v6  ;;  %9730 = vmatprep.subr.mxu0 %v12868_v7 }
 0x63c   :  { %9779 = vmatprep.subr.mxu1 %v12868_v7  ;;  %9731 = vmatpush3.msra.mxu0 %v10854_v37 }
 0x63d   :  { %9780 = vmatpush3.msra.mxu1 %v11398_v44  ;;  %9732 = vmatprep.subr.mxu0 %v12868_v7 }
 0x63e   :  { %9781 = vmatprep.subr.mxu1 %v12868_v7  ;;  %9733 = vmatpush3.msra.mxu0 %v10869_v51 }
 0x63f   :  { %9734 = vmatprep.mubr.msk.f32.mxu0 %vm10554_vm1, %v12868_v7  ;;  %9782 = vmatpush3.msra.mxu1 %v11404_v45 }
 0x640   :  { %9735 = vmatmul.mubr.f32.vlgmr.msra.gmra.mxu0 %v4143_v26  ;;  %9756 = vmatprep.subr.mxu0 %v12868_v7  ;;  %v12874_v26 = vld [vmem:[#allocation7_spill] sm:$0xff] }
 0x641   :  { %9783 = vmatprep.subr.mxu1 %v12868_v7  ;;  %9757 = vmatpush3.msra.mxu0 %v11393_v31 }
 0x642   :  { %9784 = vmatpush3.msra.mxu1 %v10810_v3  ;;  %9758 = vmatprep.subr.mxu0 %v12868_v7 }
 0x643   :  { %9785 = vmatprep.subr.mxu1 %v12868_v7  ;;  %9759 = vmatpush3.msra.mxu0 %v11410_v63 }
 0x644   :  { %9786 = vmatpush3.msra.mxu1 %v10824_v24  ;;  %9760 = vmatprep.subr.mxu0 %v12868_v7 }
 0x645   :  { %9787 = vmatprep.subr.mxu1 %v12868_v7  ;;  %9761 = vmatpush3.msra.mxu0 %v11425_v56 }
 0x646   :  { %9788 = vmatpush3.msra.mxu1 %v10839_v29  ;;  %9762 = vmatprep.subr.mxu0 %v12868_v7 }
 0x647   :  { %9789 = vmatprep.subr.mxu1 %v12868_v7  ;;  %9763 = vmatpush3.msra.mxu0 %v11429_v58 }
 0x648   :  { %9790 = vmatpush3.msra.mxu1 %v10856_v43  ;;  %9791 = vmatprep.mubr.msk.f32.mxu1 %vm10554_vm1, %v12868_v7 }
 0x649   :  { %9764 = vmatprep.subr.mxu0 %v12868_v7  ;;  %9792 = vmatmul.mubr.f32.vlgmr.msra.gmra.mxu1 %v11639_v49 }
 0x64a   :  { %9765 = vmatpush3.msra.mxu0 %v10834_v27  ;;  %9772 = vmatprep.mubr.msk.f32.mxu0 %vm10554_vm1, %v12868_v7 }
 0x64b   :  { %9766 = vmatprep.subr.mxu0 %v12868_v7  ;;  %9813 = vmatprep.subr.mxu1 %v12868_v7 }
 0x64c   :  { %9767 = vmatpush3.msra.mxu0 %v10851_v34  ;;  %9814 = vmatpush3.msra.mxu1 %v11420_v55 }
 0x64d   :  { %9768 = vmatprep.subr.mxu0 %v12868_v7  ;;  %9815 = vmatprep.subr.mxu1 %v12868_v7 }
 0x64e   :  { %9769 = vmatpush3.msra.mxu0 %v10866_v50  ;;  %9816 = vmatpush3.msra.mxu1 %v11433_v2 }
 0x64f   :  { %9770 = vmatprep.subr.mxu0 %v12868_v7  ;;  %9817 = vmatprep.subr.mxu1 %v12868_v7 }
 0x650   :  { %9771 = vmatpush3.msra.mxu0 %v10882_v53  ;;  %9818 = vmatpush3.msra.mxu1 %v11443_v47 }
 0x651   :  { %9773 = vmatmul.mubr.f32.vlgmr.msra.gmra.mxu0 %v11639_v49  ;;  %9819 = vmatprep.subr.mxu1 %v12868_v7  ;;  %v689_v49 = vadd.f32 %v12873_v21, %v532_v8 }
 0x652   :  { %9820 = vmatpush3.msra.mxu1 %v11447_v12  ;;  %9794 = vmatprep.subr.mxu0 %v12868_v7 }
 0x653   :  { %9821 = vmatprep.subr.mxu1 %v12868_v7  ;;  %9795 = vmatpush3.msra.mxu0 %v11377_v17  ;;  %v839_v18 = vadd.f32 %v12874_v26, %v689_v49 }
 0x654   :  { %9822 = vmatpush3.msra.mxu1 %v10861_v48  ;;  %9796 = vmatprep.subr.mxu0 %v12868_v7 }
 0x655   :  { %9823 = vmatprep.subr.mxu1 %v12868_v7  ;;  %9797 = vmatpush3.msra.mxu0 %v11385_v6 }
 0x656   :  { %9824 = vmatpush3.msra.mxu1 %v10877_v9  ;;  %9798 = vmatprep.subr.mxu0 %v12868_v7 }
 0x657   :  { %9825 = vmatprep.subr.mxu1 %v12868_v7  ;;  %9799 = vmatpush3.msra.mxu0 %v11398_v44 }
 0x658   :  { %9826 = vmatpush3.msra.mxu1 %v10892_v10  ;;  %9800 = vmatprep.subr.mxu0 %v12868_v7 }
 0x659   :  { %9827 = vmatprep.subr.mxu1 %v12868_v7  ;;  %9801 = vmatpush3.msra.mxu0 %v11404_v45 }
 0x65a   :  { %9828 = vmatpush3.msra.mxu1 %v10904_v16  ;;  %9802 = vmatprep.subr.mxu0 %v12868_v7 }
 0x65b   :  { %9829 = vmatprep.mubr.msk.f32.mxu1 %vm10554_vm1, %v12868_v7  ;;  %9851 = vmatprep.subr.mxu1 %v12868_v7 }
 0x65c   :  { %9803 = vmatpush3.msra.mxu0 %v10810_v3  ;;  %9810 = vmatprep.mubr.msk.f32.mxu0 %vm10554_vm1, %v12868_v7 }
 0x65d   :  { %9804 = vmatprep.subr.mxu0 %v12868_v7 }
 0x65e   :  { %9805 = vmatpush3.msra.mxu0 %v10824_v24 }
 0x65f   :  { %9806 = vmatprep.subr.mxu0 %v12868_v7 }
 0x660   :  { %9807 = vmatpush3.msra.mxu0 %v10839_v29 }
 0x661   :  { %9808 = vmatprep.subr.mxu0 %v12868_v7 }
 0x662   :  { %9809 = vmatpush3.msra.mxu0 %v10856_v43 }
 0x663   :  { %9832 = vmatprep.subr.mxu0 %v12868_v7 }
 0x6e7   :  { %v4259_v36 = vpop.f32.mrf.mxu1 }
 0x6e9   :  { %v9717_v14 = vpop.f32.mrf.mxu1 }
 0x6ef   :  { %v4148_v11 = vpop.f32.mrf.mxu0 }
 0x6f0   :  { %v4260_v20 = vadd.f32 %v4259_v36, %v4148_v11  ;;  %v4609_v36 = vmul.f32 %v11617_v46, %v11627_v25 }
 0x6f1   :  { %v9698_v40 = vpop.f32.mrf.mxu0 }
 0x6f7   :  { %v4428_v19 = vpop.f32.mrf.mxu1 }
 0x6f9   :  { %v9755_v62 = vpop.f32.mrf.mxu1 }
 0x6fa   :  { %v12875_v62 = vld [vmem:[#allocation8_spill] sm:$0xff] }
 0x700   :  { %v4347_v35 = vpop.f32.mrf.mxu0 }
 0x701   :  { %v4348_v22 = vadd.f32 %v4347_v35, %v4260_v20 }
 0x702   :  { %v9736_v4 = vpop.f32.mrf.mxu0 }
 0x703   :  { %v4429_v30 = vadd.f32 %v4428_v19, %v4348_v22  ;;  %v977_v4 = vadd.f32 %v12875_v62, %v839_v18 }
 0x709   :  { %v4602_v32 = vpop.f32.mrf.mxu1 }
 0x70b   :  { %v9793_v61 = vpop.f32.mrf.mxu1 }
 0x711   :  { %v4523_v41 = vpop.f32.mrf.mxu0 }
 0x712   :  { %v4524_v14 = vadd.f32 %v4523_v41, %v4429_v30 }
 0x713   :  { %v9774_v40 = vpop.f32.mrf.mxu0 }
 0x714   :  { %v4603_v38 = vadd.f32 %v4602_v32, %v4524_v14 }
 0x716   :  { %v4606_v15 = vadd.f32 %v4603_v38, %v977_v4 }
 0x718   :  { %v4607_v5 = vadd.f32 %v11610_v60, %v4606_v15 }
 0x71a   :  { %10535 = vtanh.f32 %v4607_v5 }
 0x727   :  { %v10536_v59 = vpop.eup %10535 }
 0x728   :  { %v4610_v11 = vmul.f32 %v11624_v39, %v10536_v59 }
 0x72a   :  { %v11764_v35 = vadd.f32 %v4610_v11, %v4609_v36 }
 0x72c   :  { %6820 = vrot.lane.b32.xlu0 %v11764_v35, %s10555_s30  ;;  %4612 = vst.msk [vmem:[%s12849_s10 + $0x30] sm:$0xff] %vm1021_vm2, %v11764_v35  ;;  %v4616_v38 = vsel %vm1021_vm2, %v11764_v35, %v4614_v1 }
 0x72d   :  { %v4618_v19 = vsel %vm3508_vm3, %v4616_v38, 0 }
 0x72e   :  { %v11776_v25 = vand.u32 4294901760, %v4618_v19 }
 0x730   :  { %v4694_v0 = vsub.f32 %v4618_v19, %v11776_v25  ;;  %9830 = vmatmul.mubr.f32.vlgmr.msra.gmra.mxu1 %v11776_v25  ;;  %v5160_v19 = vmul.f32 %v11617_v46, %v11764_v35 }
 0x731   :  { %9852 = vmatpush3.msra.mxu1 %v11377_v17  ;;  %9867 = vmatprep.mubr.msk.f32.mxu1 %vm10554_vm1, %v12868_v7 }
 0x732   :  { %9853 = vmatprep.subr.mxu1 %v12868_v7  ;;  %v4695_v32 = vand.u32 4294901760, %v4694_v0 }
 0x733   :  { %9854 = vmatpush3.msra.mxu1 %v11385_v6 }
 0x734   :  { %9855 = vmatprep.subr.mxu1 %v12868_v7  ;;  %v4696_v52 = vsub.f32 %v4694_v0, %v4695_v32 }
 0x735   :  { %9856 = vmatpush3.msra.mxu1 %v11398_v44 }
 0x736   :  { %9857 = vmatprep.subr.mxu1 %v12868_v7  ;;  %v4697_v8 = vand.u32 4294901760, %v4696_v52 }
 0x737   :  { %9858 = vmatpush3.msra.mxu1 %v11404_v45 }
 0x738   :  { %9859 = vmatprep.subr.mxu1 %v12868_v7  ;;  %9811 = vmatmul.mubr.f32.vlgmr.msra.gmra.mxu0 %v4697_v8 }
 0x739   :  { %9833 = vmatpush3.msra.mxu0 %v11383_v33  ;;  %9860 = vmatpush3.msra.mxu1 %v10810_v3 }
 0x73a   :  { %9834 = vmatprep.subr.mxu0 %v12868_v7  ;;  %9861 = vmatprep.subr.mxu1 %v12868_v7 }
 0x73b   :  { %9835 = vmatpush3.msra.mxu0 %v11396_v13  ;;  %9862 = vmatpush3.msra.mxu1 %v10824_v24 }
 0x73c   :  { %9836 = vmatprep.subr.mxu0 %v12868_v7  ;;  %9863 = vmatprep.subr.mxu1 %v12868_v7 }
 0x73d   :  { %9837 = vmatpush3.msra.mxu0 %v11413_v54  ;;  %9864 = vmatpush3.msra.mxu1 %v10839_v29 }
 0x73e   :  { %9838 = vmatprep.subr.mxu0 %v12868_v7  ;;  %9865 = vmatprep.subr.mxu1 %v12868_v7 }
 0x73f   :  { %9839 = vmatpush3.msra.mxu0 %v11417_v42  ;;  %9866 = vmatpush3.msra.mxu1 %v10856_v43 }
 0x740   :  { %9840 = vmatprep.subr.mxu0 %v12868_v7  ;;  %9868 = vmatmul.mubr.f32.vlgmr.msra.gmra.mxu1 %v4695_v32  ;;  %v5165_v32 = vpop.permute.xlu1 %5164 }
 0x741   :  { %9889 = vmatprep.subr.mxu1 %v12868_v7  ;;  %9841 = vmatpush3.msra.mxu0 %v10822_v23 }
 0x742   :  { %9890 = vmatpush3.msra.mxu1 %v11377_v17  ;;  %9842 = vmatprep.subr.mxu0 %v12868_v7 }
 0x743   :  { %9891 = vmatprep.subr.mxu1 %v12868_v7  ;;  %9843 = vmatpush3.msra.mxu0 %v10837_v28 }
 0x744   :  { %9892 = vmatpush3.msra.mxu1 %v11385_v6  ;;  %9844 = vmatprep.subr.mxu0 %v12868_v7 }
 0x745   :  { %9893 = vmatprep.subr.mxu1 %v12868_v7  ;;  %9845 = vmatpush3.msra.mxu0 %v10854_v37 }
 0x746   :  { %9894 = vmatpush3.msra.mxu1 %v11398_v44  ;;  %9846 = vmatprep.subr.mxu0 %v12868_v7 }
 0x747   :  { %9895 = vmatprep.subr.mxu1 %v12868_v7  ;;  %9847 = vmatpush3.msra.mxu0 %v10869_v51 }
 0x748   :  { %9848 = vmatprep.mubr.msk.f32.mxu0 %vm10554_vm1, %v12868_v7  ;;  %9896 = vmatpush3.msra.mxu1 %v11404_v45 }
 0x749   :  { %9849 = vmatmul.mubr.f32.vlgmr.msra.gmra.mxu0 %v4694_v0  ;;  %9870 = vmatprep.subr.mxu0 %v12868_v7 }
 0x74a   :  { %9897 = vmatprep.subr.mxu1 %v12868_v7  ;;  %9871 = vmatpush3.msra.mxu0 %v11393_v31 }
 0x74b   :  { %9898 = vmatpush3.msra.mxu1 %v10810_v3  ;;  %9872 = vmatprep.subr.mxu0 %v12868_v7 }
 0x74c   :  { %9899 = vmatprep.subr.mxu1 %v12868_v7  ;;  %9873 = vmatpush3.msra.mxu0 %v11410_v63 }
 0x74d   :  { %9900 = vmatpush3.msra.mxu1 %v10824_v24  ;;  %9874 = vmatprep.subr.mxu0 %v12868_v7 }
 0x74e   :  { %9901 = vmatprep.subr.mxu1 %v12868_v7  ;;  %9875 = vmatpush3.msra.mxu0 %v11425_v56 }
 0x74f   :  { %9902 = vmatpush3.msra.mxu1 %v10839_v29  ;;  %9876 = vmatprep.subr.mxu0 %v12868_v7 }
 0x750   :  { %9903 = vmatprep.subr.mxu1 %v12868_v7  ;;  %9877 = vmatpush3.msra.mxu0 %v11429_v58 }
 0x751   :  { %9904 = vmatpush3.msra.mxu1 %v10856_v43  ;;  %9905 = vmatprep.mubr.msk.f32.mxu1 %vm10554_vm1, %v12868_v7 }
 0x752   :  { %9878 = vmatprep.subr.mxu0 %v12868_v7  ;;  %9906 = vmatmul.mubr.f32.vlgmr.msra.gmra.mxu1 %v11776_v25 }
 0x753   :  { %9879 = vmatpush3.msra.mxu0 %v10834_v27  ;;  %9886 = vmatprep.mubr.msk.f32.mxu0 %vm10554_vm1, %v12868_v7 }
 0x754   :  { %9880 = vmatprep.subr.mxu0 %v12868_v7  ;;  %9927 = vmatprep.subr.mxu1 %v12868_v7 }
 0x755   :  { %9881 = vmatpush3.msra.mxu0 %v10851_v34  ;;  %9928 = vmatpush3.msra.mxu1 %v11420_v55 }
 0x756   :  { %9882 = vmatprep.subr.mxu0 %v12868_v7  ;;  %9929 = vmatprep.subr.mxu1 %v12868_v7 }
 0x757   :  { %9883 = vmatpush3.msra.mxu0 %v10866_v50  ;;  %9930 = vmatpush3.msra.mxu1 %v11433_v2 }
 0x758   :  { %9884 = vmatprep.subr.mxu0 %v12868_v7  ;;  %9931 = vmatprep.subr.mxu1 %v12868_v7 }
 0x759   :  { %9885 = vmatpush3.msra.mxu0 %v10882_v53  ;;  %9932 = vmatpush3.msra.mxu1 %v11443_v47 }
 0x75a   :  { %9887 = vmatmul.mubr.f32.vlgmr.msra.gmra.mxu0 %v11776_v25  ;;  %9933 = vmatprep.subr.mxu1 %v12868_v7 }
 0x75b   :  { %9934 = vmatpush3.msra.mxu1 %v11447_v12  ;;  %9908 = vmatprep.subr.mxu0 %v12868_v7 }
 0x75c   :  { %9935 = vmatprep.subr.mxu1 %v12868_v7  ;;  %9909 = vmatpush3.msra.mxu0 %v11377_v17 }
 0x75d   :  { %9936 = vmatpush3.msra.mxu1 %v10861_v48  ;;  %9910 = vmatprep.subr.mxu0 %v12868_v7 }
 0x75e   :  { %9937 = vmatprep.subr.mxu1 %v12868_v7  ;;  %9911 = vmatpush3.msra.mxu0 %v11385_v6 }
 0x75f   :  { %9938 = vmatpush3.msra.mxu1 %v10877_v9  ;;  %9912 = vmatprep.subr.mxu0 %v12868_v7 }
 0x760   :  { %9939 = vmatprep.subr.mxu1 %v12868_v7  ;;  %9913 = vmatpush3.msra.mxu0 %v11398_v44 }
 0x761   :  { %9940 = vmatpush3.msra.mxu1 %v10892_v10  ;;  %9914 = vmatprep.subr.mxu0 %v12868_v7 }
 0x762   :  { %9941 = vmatprep.subr.mxu1 %v12868_v7  ;;  %9915 = vmatpush3.msra.mxu0 %v11404_v45 }
 0x763   :  { %9942 = vmatpush3.msra.mxu1 %v10904_v16  ;;  %9916 = vmatprep.subr.mxu0 %v12868_v7 }
 0x764   :  { %9943 = vmatprep.mubr.msk.f32.mxu1 %vm10554_vm1, %v12868_v7  ;;  %9965 = vmatprep.subr.mxu1 %v12868_v7 }
 0x765   :  { %9917 = vmatpush3.msra.mxu0 %v10810_v3  ;;  %9924 = vmatprep.mubr.msk.f32.mxu0 %vm10554_vm1, %v12868_v7 }
 0x766   :  { %9918 = vmatprep.subr.mxu0 %v12868_v7 }
 0x767   :  { %9919 = vmatpush3.msra.mxu0 %v10824_v24 }
 0x768   :  { %9920 = vmatprep.subr.mxu0 %v12868_v7 }
 0x769   :  { %9921 = vmatpush3.msra.mxu0 %v10839_v29 }
 0x76a   :  { %9922 = vmatprep.subr.mxu0 %v12868_v7 }
 0x76b   :  { %9923 = vmatpush3.msra.mxu0 %v10856_v43 }
 0x76c   :  { %9946 = vmatprep.subr.mxu0 %v12868_v7 }
 0x7f0   :  { %v4810_v20 = vpop.f32.mrf.mxu1 }
 0x7f2   :  { %v9831_v61 = vpop.f32.mrf.mxu1 }
 0x7f8   :  { %v4699_v22 = vpop.f32.mrf.mxu0 }
 0x7f9   :  { %v4811_v14 = vadd.f32 %v4810_v20, %v4699_v22 }
 0x7fa   :  { %v9812_v21 = vpop.f32.mrf.mxu0 }
 0x800   :  { %v4979_v49 = vpop.f32.mrf.mxu1 }
 0x802   :  { %v9869_v26 = vpop.f32.mrf.mxu1 }
 0x809   :  { %v4898_v18 = vpop.f32.mrf.mxu0 }
 0x80a   :  { %v4899_v62 = vadd.f32 %v4898_v18, %v4811_v14 }
 0x80b   :  { %v9850_v30 = vpop.f32.mrf.mxu0 }
 0x80c   :  { %v4980_v4 = vadd.f32 %v4979_v49, %v4899_v62 }
 0x812   :  { %v5153_v41 = vpop.f32.mrf.mxu1 }
 0x814   :  { %v9907_v40 = vpop.f32.mrf.mxu1 }
 0x81a   :  { %v5074_v15 = vpop.f32.mrf.mxu0 }
 0x81b   :  { %v5075_v5 = vadd.f32 %v5074_v15, %v4980_v4 }
 0x81c   :  { %v9888_v59 = vpop.f32.mrf.mxu0 }
 0x81d   :  { %v5154_v36 = vadd.f32 %v5153_v41, %v5075_v5 }
 0x81f   :  { %v5157_v11 = vadd.f32 %v5154_v36, %v11060_v57 }
 0x821   :  { %v5158_v1 = vadd.f32 %v11610_v60, %v5157_v11 }
 0x823   :  { %10537 = vtanh.f32 %v5158_v1 }
 0x830   :  { %v10538_v38 = vpop.eup %10537 }
 0x831   :  { %v5161_v25 = vmul.f32 %v11624_v39, %v10538_v38 }
 0x833   :  { %v11895_v0 = vadd.f32 %v5161_v25, %v5160_v19  ;;  %v12876_v19 = vld [vmem:[#allocation10_spill] sm:$0xff] }
 0x835   :  { %5163 = vst.msk [vmem:[%s12849_s10 + $0x38] sm:$0xff] %vm1021_vm2, %v11895_v0  ;;  %v5167_v57 = vsel %vm1021_vm2, %v11895_v0, %v5165_v32 }
 0x836   :  { %v5169_v52 = vsel %vm3508_vm3, %v5167_v57, 0 }
 0x837   :  { %v11905_v8 = vand.u32 4294901760, %v5169_v52 }
 0x839   :  { %v5245_v35 = vsub.f32 %v5169_v52, %v11905_v8  ;;  %9944 = vmatmul.mubr.f32.vlgmr.msra.gmra.mxu1 %v11905_v8  ;;  %v5711_v52 = vmul.f32 %v11617_v46, %v11895_v0 }
 0x83a   :  { %9966 = vmatpush3.msra.mxu1 %v11377_v17  ;;  %9981 = vmatprep.mubr.msk.f32.mxu1 %vm10554_vm1, %v12868_v7 }
 0x83b   :  { %9967 = vmatprep.subr.mxu1 %v12868_v7  ;;  %v5246_v20 = vand.u32 4294901760, %v5245_v35 }
 0x83c   :  { %9968 = vmatpush3.msra.mxu1 %v11385_v6 }
 0x83d   :  { %9969 = vmatprep.subr.mxu1 %v12868_v7  ;;  %v5247_v61 = vsub.f32 %v5245_v35, %v5246_v20 }
 0x83e   :  { %9970 = vmatpush3.msra.mxu1 %v11398_v44 }
 0x83f   :  { %9971 = vmatprep.subr.mxu1 %v12868_v7  ;;  %v5248_v22 = vand.u32 4294901760, %v5247_v61 }
 0x840   :  { %9972 = vmatpush3.msra.mxu1 %v11404_v45 }
 0x841   :  { %9973 = vmatprep.subr.mxu1 %v12868_v7  ;;  %9925 = vmatmul.mubr.f32.vlgmr.msra.gmra.mxu0 %v5248_v22 }
 0x842   :  { %9947 = vmatpush3.msra.mxu0 %v11383_v33  ;;  %9974 = vmatpush3.msra.mxu1 %v10810_v3 }
 0x843   :  { %9948 = vmatprep.subr.mxu0 %v12868_v7  ;;  %9975 = vmatprep.subr.mxu1 %v12868_v7 }
 0x844   :  { %9949 = vmatpush3.msra.mxu0 %v11396_v13  ;;  %9976 = vmatpush3.msra.mxu1 %v10824_v24 }
 0x845   :  { %9950 = vmatprep.subr.mxu0 %v12868_v7  ;;  %9977 = vmatprep.subr.mxu1 %v12868_v7 }
 0x846   :  { %9951 = vmatpush3.msra.mxu0 %v11413_v54  ;;  %9978 = vmatpush3.msra.mxu1 %v10839_v29 }
 0x847   :  { %9952 = vmatprep.subr.mxu0 %v12868_v7  ;;  %9979 = vmatprep.subr.mxu1 %v12868_v7 }
 0x848   :  { %9953 = vmatpush3.msra.mxu0 %v11417_v42  ;;  %9980 = vmatpush3.msra.mxu1 %v10856_v43 }
 0x849   :  { %9954 = vmatprep.subr.mxu0 %v12868_v7  ;;  %9982 = vmatmul.mubr.f32.vlgmr.msra.gmra.mxu1 %v5246_v20  ;;  %v5717_v20 = vpop.permute.xlu0 %5716 }
 0x84a   :  { %10003 = vmatprep.subr.mxu1 %v12868_v7  ;;  %9955 = vmatpush3.msra.mxu0 %v10822_v23 }
 0x84b   :  { %10004 = vmatpush3.msra.mxu1 %v11377_v17  ;;  %9956 = vmatprep.subr.mxu0 %v12868_v7 }
 0x84c   :  { %10005 = vmatprep.subr.mxu1 %v12868_v7  ;;  %9957 = vmatpush3.msra.mxu0 %v10837_v28 }
 0x84d   :  { %10006 = vmatpush3.msra.mxu1 %v11385_v6  ;;  %9958 = vmatprep.subr.mxu0 %v12868_v7 }
 0x84e   :  { %10007 = vmatprep.subr.mxu1 %v12868_v7  ;;  %9959 = vmatpush3.msra.mxu0 %v10854_v37 }
 0x84f   :  { %10008 = vmatpush3.msra.mxu1 %v11398_v44  ;;  %9960 = vmatprep.subr.mxu0 %v12868_v7 }
 0x850   :  { %10009 = vmatprep.subr.mxu1 %v12868_v7  ;;  %9961 = vmatpush3.msra.mxu0 %v10869_v51 }
 0x851   :  { %9962 = vmatprep.mubr.msk.f32.mxu0 %vm10554_vm1, %v12868_v7  ;;  %10010 = vmatpush3.msra.mxu1 %v11404_v45 }
 0x852   :  { %9963 = vmatmul.mubr.f32.vlgmr.msra.gmra.mxu0 %v5245_v35  ;;  %9984 = vmatprep.subr.mxu0 %v12868_v7 }
 0x853   :  { %10011 = vmatprep.subr.mxu1 %v12868_v7  ;;  %9985 = vmatpush3.msra.mxu0 %v11393_v31 }
 0x854   :  { %10012 = vmatpush3.msra.mxu1 %v10810_v3  ;;  %9986 = vmatprep.subr.mxu0 %v12868_v7 }
 0x855   :  { %10013 = vmatprep.subr.mxu1 %v12868_v7  ;;  %9987 = vmatpush3.msra.mxu0 %v11410_v63 }
 0x856   :  { %10014 = vmatpush3.msra.mxu1 %v10824_v24  ;;  %9988 = vmatprep.subr.mxu0 %v12868_v7 }
 0x857   :  { %10015 = vmatprep.subr.mxu1 %v12868_v7  ;;  %9989 = vmatpush3.msra.mxu0 %v11425_v56 }
 0x858   :  { %10016 = vmatpush3.msra.mxu1 %v10839_v29  ;;  %9990 = vmatprep.subr.mxu0 %v12868_v7 }
 0x859   :  { %10017 = vmatprep.subr.mxu1 %v12868_v7  ;;  %9991 = vmatpush3.msra.mxu0 %v11429_v58 }
 0x85a   :  { %10018 = vmatpush3.msra.mxu1 %v10856_v43  ;;  %10019 = vmatprep.mubr.msk.f32.mxu1 %vm10554_vm1, %v12868_v7 }
 0x85b   :  { %9992 = vmatprep.subr.mxu0 %v12868_v7  ;;  %10020 = vmatmul.mubr.f32.vlgmr.msra.gmra.mxu1 %v11905_v8 }
 0x85c   :  { %9993 = vmatpush3.msra.mxu0 %v10834_v27  ;;  %10000 = vmatprep.mubr.msk.f32.mxu0 %vm10554_vm1, %v12868_v7 }
 0x85d   :  { %9994 = vmatprep.subr.mxu0 %v12868_v7  ;;  %10041 = vmatprep.subr.mxu1 %v12868_v7 }
 0x85e   :  { %9995 = vmatpush3.msra.mxu0 %v10851_v34  ;;  %10042 = vmatpush3.msra.mxu1 %v11420_v55 }
 0x85f   :  { %9996 = vmatprep.subr.mxu0 %v12868_v7  ;;  %10043 = vmatprep.subr.mxu1 %v12868_v7 }
 0x860   :  { %9997 = vmatpush3.msra.mxu0 %v10866_v50  ;;  %10044 = vmatpush3.msra.mxu1 %v11433_v2 }
 0x861   :  { %9998 = vmatprep.subr.mxu0 %v12868_v7  ;;  %10045 = vmatprep.subr.mxu1 %v12868_v7 }
 0x862   :  { %9999 = vmatpush3.msra.mxu0 %v10882_v53  ;;  %10046 = vmatpush3.msra.mxu1 %v11443_v47 }
 0x863   :  { %10001 = vmatmul.mubr.f32.vlgmr.msra.gmra.mxu0 %v11905_v8  ;;  %10047 = vmatprep.subr.mxu1 %v12868_v7 }
 0x864   :  { %10048 = vmatpush3.msra.mxu1 %v11447_v12  ;;  %10022 = vmatprep.subr.mxu0 %v12868_v7 }
 0x865   :  { %10049 = vmatprep.subr.mxu1 %v12868_v7  ;;  %10023 = vmatpush3.msra.mxu0 %v11377_v17 }
 0x866   :  { %10050 = vmatpush3.msra.mxu1 %v10861_v48  ;;  %10024 = vmatprep.subr.mxu0 %v12868_v7 }
 0x867   :  { %10051 = vmatprep.subr.mxu1 %v12868_v7  ;;  %10025 = vmatpush3.msra.mxu0 %v11385_v6 }
 0x868   :  { %10052 = vmatpush3.msra.mxu1 %v10877_v9  ;;  %10026 = vmatprep.subr.mxu0 %v12868_v7 }
 0x869   :  { %10053 = vmatprep.subr.mxu1 %v12868_v7  ;;  %10027 = vmatpush3.msra.mxu0 %v11398_v44 }
 0x86a   :  { %10054 = vmatpush3.msra.mxu1 %v10892_v10  ;;  %10028 = vmatprep.subr.mxu0 %v12868_v7 }
 0x86b   :  { %10055 = vmatprep.subr.mxu1 %v12868_v7  ;;  %10029 = vmatpush3.msra.mxu0 %v11404_v45 }
 0x86c   :  { %10056 = vmatpush3.msra.mxu1 %v10904_v16  ;;  %10030 = vmatprep.subr.mxu0 %v12868_v7 }
 0x86d   :  { %10057 = vmatprep.mubr.msk.f32.mxu1 %vm10554_vm1, %v12868_v7  ;;  %10079 = vmatprep.subr.mxu1 %v12868_v7 }
 0x86e   :  { %10031 = vmatpush3.msra.mxu0 %v10810_v3  ;;  %10038 = vmatprep.mubr.msk.f32.mxu0 %vm10554_vm1, %v12868_v7 }
 0x86f   :  { %10032 = vmatprep.subr.mxu0 %v12868_v7 }
 0x870   :  { %10033 = vmatpush3.msra.mxu0 %v10824_v24 }
 0x871   :  { %10034 = vmatprep.subr.mxu0 %v12868_v7 }
 0x872   :  { %10035 = vmatpush3.msra.mxu0 %v10839_v29 }
 0x873   :  { %10036 = vmatprep.subr.mxu0 %v12868_v7 }
 0x874   :  { %10037 = vmatpush3.msra.mxu0 %v10856_v43 }
 0x875   :  { %10060 = vmatprep.subr.mxu0 %v12868_v7 }
 0x8f9   :  { %v5361_v21 = vpop.f32.mrf.mxu1 }
 0x8fb   :  { %v9945_v49 = vpop.f32.mrf.mxu1 }
 0x901   :  { %v5250_v26 = vpop.f32.mrf.mxu0 }
 0x902   :  { %v5362_v4 = vadd.f32 %v5361_v21, %v5250_v26 }
 0x903   :  { %v9926_v18 = vpop.f32.mrf.mxu0 }
 0x909   :  { %v5530_v30 = vpop.f32.mrf.mxu1 }
 0x90b   :  { %v9983_v41 = vpop.f32.mrf.mxu1 }
 0x912   :  { %v5449_v14 = vpop.f32.mrf.mxu0 }
 0x913   :  { %v5450_v5 = vadd.f32 %v5449_v14, %v5362_v4 }
 0x914   :  { %v9964_v40 = vpop.f32.mrf.mxu0 }
 0x915   :  { %v5531_v59 = vadd.f32 %v5530_v30, %v5450_v5 }
 0x91b   :  { %v5704_v62 = vpop.f32.mrf.mxu1 }
 0x91d   :  { %v10021_v15 = vpop.f32.mrf.mxu1 }
 0x923   :  { %v5625_v36 = vpop.f32.mrf.mxu0 }
 0x924   :  { %v5626_v11 = vadd.f32 %v5625_v36, %v5531_v59 }
 0x925   :  { %v10002_v1 = vpop.f32.mrf.mxu0 }
 0x926   :  { %v5705_v38 = vadd.f32 %v5704_v62, %v5626_v11 }
 0x928   :  { %v5708_v25 = vadd.f32 %v5705_v38, %v12876_v19 }
 0x92a   :  { %v5709_v32 = vadd.f32 %v11610_v60, %v5708_v25  ;;  %v12877_v25 = vld [vmem:[#allocation9_spill] sm:$0xff] }
 0x92c   :  { %10539 = vtanh.f32 %v5709_v32 }
 0x939   :  { %v10540_v57 = vpop.eup %10539 }
 0x93a   :  { %v5712_v8 = vmul.f32 %v11624_v39, %v10540_v57  ;;  %v12152_v57 = vld [vmem:[%s12850_s5] ss:$0 sm:$0xff] }
 0x93c   :  { %v12024_v35 = vadd.f32 %v5712_v8, %v5711_v52 }
 0x93e   :  { %5714 = vst.msk [vmem:[%s12849_s10 + $0x40] sm:$0xff] %vm1021_vm2, %v12024_v35  ;;  %v5719_v61 = vsel %vm1021_vm2, %v12024_v35, %v5717_v20  ;;  %v12158_v20 = vld [vmem:[%s12847_s8] ss:$0 sm:$0xff] }
 0x93f   :  { %v5721_v60 = vsel %vm3508_vm3, %v5719_v61, 0  ;;  %v6263_v61 = vmul.f32 %v12158_v20, %v12024_v35 }
 0x940   :  { %v12034_v22 = vand.u32 4294901760, %v5721_v60 }
 0x942   :  { %v5797_v46 = vsub.f32 %v5721_v60, %v12034_v22  ;;  %10058 = vmatmul.mubr.f32.vlgmr.msra.gmra.mxu1 %v12034_v22  ;;  %v12165_v60 = vld [vmem:[%s12848_s7] ss:$0 sm:$0xff] }
 0x943   :  { %10080 = vmatpush3.msra.mxu1 %v11377_v17  ;;  %10095 = vmatprep.mubr.msk.f32.mxu1 %vm10554_vm1, %v12868_v7 }
 0x944   :  { %10081 = vmatprep.subr.mxu1 %v12868_v7  ;;  %v5798_v39 = vand.u32 4294901760, %v5797_v46 }
 0x945   :  { %10082 = vmatpush3.msra.mxu1 %v11385_v6 }
 0x946   :  { %10083 = vmatprep.subr.mxu1 %v12868_v7  ;;  %v5799_v0 = vsub.f32 %v5797_v46, %v5798_v39 }
 0x947   :  { %10084 = vmatpush3.msra.mxu1 %v11398_v44 }
 0x948   :  { %10085 = vmatprep.subr.mxu1 %v12868_v7  ;;  %v5800_v21 = vand.u32 4294901760, %v5799_v0 }
 0x949   :  { %10086 = vmatpush3.msra.mxu1 %v11404_v45 }
 0x94a   :  { %10087 = vmatprep.subr.mxu1 %v12868_v7  ;;  %10039 = vmatmul.mubr.f32.vlgmr.msra.gmra.mxu0 %v5800_v21 }
 0x94b   :  { %10061 = vmatpush3.msra.mxu0 %v11383_v33  ;;  %10088 = vmatpush3.msra.mxu1 %v10810_v3 }
 0x94c   :  { %10062 = vmatprep.subr.mxu0 %v12868_v7  ;;  %10089 = vmatprep.subr.mxu1 %v12868_v7 }
 0x94d   :  { %10063 = vmatpush3.msra.mxu0 %v11396_v13  ;;  %10090 = vmatpush3.msra.mxu1 %v10824_v24 }
 0x94e   :  { %10064 = vmatprep.subr.mxu0 %v12868_v7  ;;  %10091 = vmatprep.subr.mxu1 %v12868_v7 }
 0x94f   :  { %10065 = vmatpush3.msra.mxu0 %v11413_v54  ;;  %10092 = vmatpush3.msra.mxu1 %v10839_v29 }
 0x950   :  { %10066 = vmatprep.subr.mxu0 %v12868_v7  ;;  %10093 = vmatprep.subr.mxu1 %v12868_v7 }
 0x951   :  { %10067 = vmatpush3.msra.mxu0 %v11417_v42  ;;  %10094 = vmatpush3.msra.mxu1 %v10856_v43 }
 0x952   :  { %10068 = vmatprep.subr.mxu0 %v12868_v7  ;;  %10096 = vmatmul.mubr.f32.vlgmr.msra.gmra.mxu1 %v5798_v39  ;;  %v6269_v39 = vpop.permute.xlu1 %6268 }
 0x953   :  { %10117 = vmatprep.subr.mxu1 %v12868_v7  ;;  %10069 = vmatpush3.msra.mxu0 %v10822_v23 }
 0x954   :  { %10118 = vmatpush3.msra.mxu1 %v11377_v17  ;;  %10070 = vmatprep.subr.mxu0 %v12868_v7 }
 0x955   :  { %10119 = vmatprep.subr.mxu1 %v12868_v7  ;;  %10071 = vmatpush3.msra.mxu0 %v10837_v28 }
 0x956   :  { %10120 = vmatpush3.msra.mxu1 %v11385_v6  ;;  %10072 = vmatprep.subr.mxu0 %v12868_v7 }
 0x957   :  { %10121 = vmatprep.subr.mxu1 %v12868_v7  ;;  %10073 = vmatpush3.msra.mxu0 %v10854_v37 }
 0x958   :  { %10122 = vmatpush3.msra.mxu1 %v11398_v44  ;;  %10074 = vmatprep.subr.mxu0 %v12868_v7 }
 0x959   :  { %10123 = vmatprep.subr.mxu1 %v12868_v7  ;;  %10075 = vmatpush3.msra.mxu0 %v10869_v51 }
 0x95a   :  { %10076 = vmatprep.mubr.msk.f32.mxu0 %vm10554_vm1, %v12868_v7  ;;  %10124 = vmatpush3.msra.mxu1 %v11404_v45 }
 0x95b   :  { %10077 = vmatmul.mubr.f32.vlgmr.msra.gmra.mxu0 %v5797_v46  ;;  %10098 = vmatprep.subr.mxu0 %v12868_v7 }
 0x95c   :  { %10125 = vmatprep.subr.mxu1 %v12868_v7  ;;  %10099 = vmatpush3.msra.mxu0 %v11393_v31 }
 0x95d   :  { %10126 = vmatpush3.msra.mxu1 %v10810_v3  ;;  %10100 = vmatprep.subr.mxu0 %v12868_v7 }
 0x95e   :  { %10127 = vmatprep.subr.mxu1 %v12868_v7  ;;  %10101 = vmatpush3.msra.mxu0 %v11410_v63 }
 0x95f   :  { %10128 = vmatpush3.msra.mxu1 %v10824_v24  ;;  %10102 = vmatprep.subr.mxu0 %v12868_v7 }
 0x960   :  { %10129 = vmatprep.subr.mxu1 %v12868_v7  ;;  %10103 = vmatpush3.msra.mxu0 %v11425_v56 }
 0x961   :  { %10130 = vmatpush3.msra.mxu1 %v10839_v29  ;;  %10104 = vmatprep.subr.mxu0 %v12868_v7 }
 0x962   :  { %10131 = vmatprep.subr.mxu1 %v12868_v7  ;;  %10105 = vmatpush3.msra.mxu0 %v11429_v58 }
 0x963   :  { %10132 = vmatpush3.msra.mxu1 %v10856_v43  ;;  %10133 = vmatprep.mubr.msk.f32.mxu1 %vm10554_vm1, %v12868_v7 }
 0x964   :  { %10106 = vmatprep.subr.mxu0 %v12868_v7  ;;  %10134 = vmatmul.mubr.f32.vlgmr.msra.gmra.mxu1 %v12034_v22 }
 0x965   :  { %10107 = vmatpush3.msra.mxu0 %v10834_v27  ;;  %10114 = vmatprep.mubr.msk.f32.mxu0 %vm10554_vm1, %v12868_v7 }
 0x966   :  { %10108 = vmatprep.subr.mxu0 %v12868_v7  ;;  %10155 = vmatprep.subr.mxu1 %v12868_v7 }
 0x967   :  { %10109 = vmatpush3.msra.mxu0 %v10851_v34  ;;  %10156 = vmatpush3.msra.mxu1 %v11420_v55 }
 0x968   :  { %10110 = vmatprep.subr.mxu0 %v12868_v7  ;;  %10157 = vmatprep.subr.mxu1 %v12868_v7 }
 0x969   :  { %10111 = vmatpush3.msra.mxu0 %v10866_v50  ;;  %10158 = vmatpush3.msra.mxu1 %v11433_v2 }
 0x96a   :  { %10112 = vmatprep.subr.mxu0 %v12868_v7  ;;  %10159 = vmatprep.subr.mxu1 %v12868_v7 }
 0x96b   :  { %10113 = vmatpush3.msra.mxu0 %v10882_v53  ;;  %10160 = vmatpush3.msra.mxu1 %v11443_v47 }
 0x96c   :  { %10115 = vmatmul.mubr.f32.vlgmr.msra.gmra.mxu0 %v12034_v22  ;;  %10161 = vmatprep.subr.mxu1 %v12868_v7 }
 0x96d   :  { %10162 = vmatpush3.msra.mxu1 %v11447_v12  ;;  %10136 = vmatprep.subr.mxu0 %v12868_v7 }
 0x96e   :  { %10163 = vmatprep.subr.mxu1 %v12868_v7  ;;  %10137 = vmatpush3.msra.mxu0 %v11377_v17 }
 0x96f   :  { %10164 = vmatpush3.msra.mxu1 %v10861_v48  ;;  %10138 = vmatprep.subr.mxu0 %v12868_v7 }
 0x970   :  { %10165 = vmatprep.subr.mxu1 %v12868_v7  ;;  %10139 = vmatpush3.msra.mxu0 %v11385_v6 }
 0x971   :  { %10166 = vmatpush3.msra.mxu1 %v10877_v9  ;;  %10140 = vmatprep.subr.mxu0 %v12868_v7 }
 0x972   :  { %10167 = vmatprep.subr.mxu1 %v12868_v7  ;;  %10141 = vmatpush3.msra.mxu0 %v11398_v44 }
 0x973   :  { %10168 = vmatpush3.msra.mxu1 %v10892_v10  ;;  %10142 = vmatprep.subr.mxu0 %v12868_v7 }
 0x974   :  { %10169 = vmatprep.subr.mxu1 %v12868_v7  ;;  %10143 = vmatpush3.msra.mxu0 %v11404_v45 }
 0x975   :  { %10170 = vmatpush3.msra.mxu1 %v10904_v16  ;;  %10144 = vmatprep.subr.mxu0 %v12868_v7 }
 0x976   :  { %10171 = vmatprep.mubr.msk.f32.mxu1 %vm10554_vm1, %v12868_v7  ;;  %10193 = vmatprep.subr.mxu1 %v12868_v7 }
 0x977   :  { %10145 = vmatpush3.msra.mxu0 %v10810_v3  ;;  %10152 = vmatprep.mubr.msk.f32.mxu0 %vm10554_vm1, %v12868_v7 }
 0x978   :  { %10146 = vmatprep.subr.mxu0 %v12868_v7 }
 0x979   :  { %10147 = vmatpush3.msra.mxu0 %v10824_v24 }
 0x97a   :  { %10148 = vmatprep.subr.mxu0 %v12868_v7 }
 0x97b   :  { %10149 = vmatpush3.msra.mxu0 %v10839_v29 }
 0x97c   :  { %10150 = vmatprep.subr.mxu0 %v12868_v7 }
 0x97d   :  { %10151 = vmatpush3.msra.mxu0 %v10856_v43 }
 0x97e   :  { %10174 = vmatprep.subr.mxu0 %v12868_v7 }
 0xa02   :  { %v5913_v49 = vpop.f32.mrf.mxu1 }
 0xa04   :  { %v10059_v26 = vpop.f32.mrf.mxu1 }
 0xa0a   :  { %v5802_v18 = vpop.f32.mrf.mxu0 }
 0xa0b   :  { %v5914_v15 = vadd.f32 %v5913_v49, %v5802_v18 }
 0xa0c   :  { %v10040_v30 = vpop.f32.mrf.mxu0 }
 0xa12   :  { %v6082_v41 = vpop.f32.mrf.mxu1 }
 0xa14   :  { %v10097_v14 = vpop.f32.mrf.mxu1 }
 0xa1b   :  { %v6001_v40 = vpop.f32.mrf.mxu0 }
 0xa1c   :  { %v6002_v59 = vadd.f32 %v6001_v40, %v5914_v15 }
 0xa1d   :  { %v10078_v62 = vpop.f32.mrf.mxu0 }
 0xa1e   :  { %v6083_v36 = vadd.f32 %v6082_v41, %v6002_v59 }
 0xa24   :  { %v6256_v4 = vpop.f32.mrf.mxu1 }
 0xa26   :  { %v10135_v5 = vpop.f32.mrf.mxu1 }
 0xa2c   :  { %v6177_v11 = vpop.f32.mrf.mxu0 }
 0xa2d   :  { %v6178_v1 = vadd.f32 %v6177_v11, %v6083_v36  ;;  %v12878_v11 = vld [vmem:[#allocation12_spill] sm:$0xff] }
 0xa2e   :  { %v10116_v38 = vpop.f32.mrf.mxu0 }
 0xa2f   :  { %v6257_v19 = vadd.f32 %v6256_v4, %v6178_v1 }
 0xa31   :  { %v6260_v32 = vadd.f32 %v6257_v19, %v12877_v25 }
 0xa33   :  { %v6261_v52 = vadd.f32 %v12152_v57, %v6260_v32 }
 0xa35   :  { %10541 = vtanh.f32 %v6261_v52 }
 0xa42   :  { %v10542_v8 = vpop.eup %10541 }
 0xa43   :  { %v6264_v22 = vmul.f32 %v12165_v60, %v10542_v8  ;;  %v6821_v8 = vpop.permute.xlu0 %6820 }
 0xa45   :  { %v12168_v46 = vadd.f32 %v6264_v22, %v6263_v61 }
 0xa47   :  { %6266 = vst.msk [vmem:[%s12849_s10 + $0x48] sm:$0xff] %vm1021_vm2, %v12168_v46  ;;  %v6271_v0 = vsel %vm1021_vm2, %v12168_v46, %v6269_v39  ;;  %v6815_v25 = vmul.f32 %v12158_v20, %v12168_v46 }
 0xa48   :  { %v6273_v35 = vsel %vm3508_vm3, %v6271_v0, 0 }
 0xa49   :  { %v12178_v21 = vand.u32 4294901760, %v6273_v35 }
 0xa4b   :  { %v6349_v49 = vsub.f32 %v6273_v35, %v12178_v21  ;;  %10172 = vmatmul.mubr.f32.vlgmr.msra.gmra.mxu1 %v12178_v21 }
 0xa4c   :  { %10194 = vmatpush3.msra.mxu1 %v11377_v17  ;;  %10209 = vmatprep.mubr.msk.f32.mxu1 %vm10554_vm1, %v12868_v7 }
 0xa4d   :  { %10195 = vmatprep.subr.mxu1 %v12868_v7  ;;  %v6350_v26 = vand.u32 4294901760, %v6349_v49 }
 0xa4e   :  { %10196 = vmatpush3.msra.mxu1 %v11385_v6 }
 0xa4f   :  { %10197 = vmatprep.subr.mxu1 %v12868_v7  ;;  %v6351_v18 = vsub.f32 %v6349_v49, %v6350_v26 }
 0xa50   :  { %10198 = vmatpush3.msra.mxu1 %v11398_v44 }
 0xa51   :  { %10199 = vmatprep.subr.mxu1 %v12868_v7  ;;  %v6352_v30 = vand.u32 4294901760, %v6351_v18 }
 0xa52   :  { %10200 = vmatpush3.msra.mxu1 %v11404_v45 }
 0xa53   :  { %10201 = vmatprep.subr.mxu1 %v12868_v7  ;;  %10153 = vmatmul.mubr.f32.vlgmr.msra.gmra.mxu0 %v6352_v30 }
 0xa54   :  { %10175 = vmatpush3.msra.mxu0 %v11383_v33  ;;  %10202 = vmatpush3.msra.mxu1 %v10810_v3 }
 0xa55   :  { %10176 = vmatprep.subr.mxu0 %v12868_v7  ;;  %10203 = vmatprep.subr.mxu1 %v12868_v7 }
 0xa56   :  { %10177 = vmatpush3.msra.mxu0 %v11396_v13  ;;  %10204 = vmatpush3.msra.mxu1 %v10824_v24 }
 0xa57   :  { %10178 = vmatprep.subr.mxu0 %v12868_v7  ;;  %10205 = vmatprep.subr.mxu1 %v12868_v7 }
 0xa58   :  { %10179 = vmatpush3.msra.mxu0 %v11413_v54  ;;  %10206 = vmatpush3.msra.mxu1 %v10839_v29 }
 0xa59   :  { %10180 = vmatprep.subr.mxu0 %v12868_v7  ;;  %10207 = vmatprep.subr.mxu1 %v12868_v7 }
 0xa5a   :  { %10181 = vmatpush3.msra.mxu0 %v11417_v42  ;;  %10208 = vmatpush3.msra.mxu1 %v10856_v43 }
 0xa5b   :  { %10182 = vmatprep.subr.mxu0 %v12868_v7  ;;  %10210 = vmatmul.mubr.f32.vlgmr.msra.gmra.mxu1 %v6350_v26 }
 0xa5c   :  { %10231 = vmatprep.subr.mxu1 %v12868_v7  ;;  %10183 = vmatpush3.msra.mxu0 %v10822_v23 }
 0xa5d   :  { %10232 = vmatpush3.msra.mxu1 %v11377_v17  ;;  %10184 = vmatprep.subr.mxu0 %v12868_v7 }
 0xa5e   :  { %10233 = vmatprep.subr.mxu1 %v12868_v7  ;;  %10185 = vmatpush3.msra.mxu0 %v10837_v28 }
 0xa5f   :  { %10234 = vmatpush3.msra.mxu1 %v11385_v6  ;;  %10186 = vmatprep.subr.mxu0 %v12868_v7 }
 0xa60   :  { %10235 = vmatprep.subr.mxu1 %v12868_v7  ;;  %10187 = vmatpush3.msra.mxu0 %v10854_v37 }
 0xa61   :  { %10236 = vmatpush3.msra.mxu1 %v11398_v44  ;;  %10188 = vmatprep.subr.mxu0 %v12868_v7 }
 0xa62   :  { %10237 = vmatprep.subr.mxu1 %v12868_v7  ;;  %10189 = vmatpush3.msra.mxu0 %v10869_v51 }
 0xa63   :  { %10190 = vmatprep.mubr.msk.f32.mxu0 %vm10554_vm1, %v12868_v7  ;;  %10238 = vmatpush3.msra.mxu1 %v11404_v45 }
 0xa64   :  { %10191 = vmatmul.mubr.f32.vlgmr.msra.gmra.mxu0 %v6349_v49  ;;  %10212 = vmatprep.subr.mxu0 %v12868_v7  ;;  %v7386_v49 = vld [vmem:[%s12851_s3 + $0x18] sm:$0xff] }
 0xa65   :  { %10239 = vmatprep.subr.mxu1 %v12868_v7  ;;  %10213 = vmatpush3.msra.mxu0 %v11393_v31 }
 0xa66   :  { %10240 = vmatpush3.msra.mxu1 %v10810_v3  ;;  %10214 = vmatprep.subr.mxu0 %v12868_v7 }
 0xa67   :  { %10241 = vmatprep.subr.mxu1 %v12868_v7  ;;  %10215 = vmatpush3.msra.mxu0 %v11410_v63 }
 0xa68   :  { %10242 = vmatpush3.msra.mxu1 %v10824_v24  ;;  %10216 = vmatprep.subr.mxu0 %v12868_v7 }
 0xa69   :  { %10243 = vmatprep.subr.mxu1 %v12868_v7  ;;  %10217 = vmatpush3.msra.mxu0 %v11425_v56 }
 0xa6a   :  { %10244 = vmatpush3.msra.mxu1 %v10839_v29  ;;  %10218 = vmatprep.subr.mxu0 %v12868_v7 }
 0xa6b   :  { %10245 = vmatprep.subr.mxu1 %v12868_v7  ;;  %10219 = vmatpush3.msra.mxu0 %v11429_v58 }
 0xa6c   :  { %10246 = vmatpush3.msra.mxu1 %v10856_v43  ;;  %10247 = vmatprep.mubr.msk.f32.mxu1 %vm10554_vm1, %v12868_v7 }
 0xa6d   :  { %10220 = vmatprep.subr.mxu0 %v12868_v7  ;;  %10248 = vmatmul.mubr.f32.vlgmr.msra.gmra.mxu1 %v12178_v21 }
 0xa6e   :  { %10221 = vmatpush3.msra.mxu0 %v10834_v27  ;;  %10228 = vmatprep.mubr.msk.f32.mxu0 %vm10554_vm1, %v12868_v7 }
 0xa6f   :  { %10222 = vmatprep.subr.mxu0 %v12868_v7  ;;  %10269 = vmatprep.subr.mxu1 %v12868_v7 }
 0xa70   :  { %10223 = vmatpush3.msra.mxu0 %v10851_v34  ;;  %10270 = vmatpush3.msra.mxu1 %v11420_v55 }
 0xa71   :  { %10224 = vmatprep.subr.mxu0 %v12868_v7  ;;  %10271 = vmatprep.subr.mxu1 %v12868_v7 }
 0xa72   :  { %10225 = vmatpush3.msra.mxu0 %v10866_v50  ;;  %10272 = vmatpush3.msra.mxu1 %v11433_v2 }
 0xa73   :  { %10226 = vmatprep.subr.mxu0 %v12868_v7  ;;  %10273 = vmatprep.subr.mxu1 %v12868_v7 }
 0xa74   :  { %10227 = vmatpush3.msra.mxu0 %v10882_v53  ;;  %10274 = vmatpush3.msra.mxu1 %v11443_v47 }
 0xa75   :  { %10229 = vmatmul.mubr.f32.vlgmr.msra.gmra.mxu0 %v12178_v21  ;;  %10275 = vmatprep.subr.mxu1 %v12868_v7 }
 0xa76   :  { %10276 = vmatpush3.msra.mxu1 %v11447_v12  ;;  %10250 = vmatprep.subr.mxu0 %v12868_v7 }
 0xa77   :  { %10277 = vmatprep.subr.mxu1 %v12868_v7  ;;  %10251 = vmatpush3.msra.mxu0 %v11377_v17 }
 0xa78   :  { %10278 = vmatpush3.msra.mxu1 %v10861_v48  ;;  %10252 = vmatprep.subr.mxu0 %v12868_v7 }
 0xa79   :  { %10279 = vmatprep.subr.mxu1 %v12868_v7  ;;  %10253 = vmatpush3.msra.mxu0 %v11385_v6 }
 0xa7a   :  { %10280 = vmatpush3.msra.mxu1 %v10877_v9  ;;  %10254 = vmatprep.subr.mxu0 %v12868_v7 }
 0xa7b   :  { %10281 = vmatprep.subr.mxu1 %v12868_v7  ;;  %10255 = vmatpush3.msra.mxu0 %v11398_v44 }
 0xa7c   :  { %10282 = vmatpush3.msra.mxu1 %v10892_v10  ;;  %10256 = vmatprep.subr.mxu0 %v12868_v7 }
 0xa7d   :  { %10283 = vmatprep.subr.mxu1 %v12868_v7  ;;  %10257 = vmatpush3.msra.mxu0 %v11404_v45 }
 0xa7e   :  { %10284 = vmatpush3.msra.mxu1 %v10904_v16  ;;  %10258 = vmatprep.subr.mxu0 %v12868_v7 }
 0xa7f   :  { %10285 = vmatprep.mubr.msk.f32.mxu1 %vm10554_vm1, %v12868_v7  ;;  %10307 = vmatprep.subr.mxu1 %v12868_v7 }
 0xa80   :  { %10259 = vmatpush3.msra.mxu0 %v10810_v3  ;;  %10266 = vmatprep.mubr.msk.f32.mxu0 %vm10554_vm1, %v12868_v7 }
 0xa81   :  { %10260 = vmatprep.subr.mxu0 %v12868_v7 }
 0xa82   :  { %10261 = vmatpush3.msra.mxu0 %v10824_v24 }
 0xa83   :  { %10262 = vmatprep.subr.mxu0 %v12868_v7 }
 0xa84   :  { %10263 = vmatpush3.msra.mxu0 %v10839_v29 }
 0xa85   :  { %10264 = vmatprep.subr.mxu0 %v12868_v7 }
 0xa86   :  { %10265 = vmatpush3.msra.mxu0 %v10856_v43 }
 0xa87   :  { %10288 = vmatprep.subr.mxu0 %v12868_v7 }
 0xb0b   :  { %v6465_v48 = vpop.f32.mrf.mxu1 }
 0xb0d   :  { %v10173_v9 = vpop.f32.mrf.mxu1 }
 0xb13   :  { %v6354_v10 = vpop.f32.mrf.mxu0 }
 0xb14   :  { %v6466_v14 = vadd.f32 %v6465_v48, %v6354_v10 }
 0xb15   :  { %v10154_v16 = vpop.f32.mrf.mxu0 }
 0xb16   :  { %v7372_v16 = vld [vmem:[%s12849_s10 + $0x8] sm:$0xff] }
 0xb1b   :  { %v6634_v55 = vpop.f32.mrf.mxu1 }
 0xb1d   :  { %v10211_v2 = vpop.f32.mrf.mxu1 }
 0xb1e   :  { %v7398_v2 = vsel %vm1021_vm2, %v7372_v16, 0 }
 0xb24   :  { %v6553_v47 = vpop.f32.mrf.mxu0 }
 0xb25   :  { %v6554_v62 = vadd.f32 %v6553_v47, %v6466_v14  ;;  %v12443_v14 = vand.u32 4294901760, %v7398_v2 }
 0xb26   :  { %v10192_v12 = vpop.f32.mrf.mxu0 }
 0xb27   :  { %v6635_v4 = vadd.f32 %v6634_v55, %v6554_v62 }
 0xb2d   :  { %v6808_v41 = vpop.f32.mrf.mxu1 }
 0xb2f   :  { %v10249_v40 = vpop.f32.mrf.mxu1 }
 0xb35   :  { %v6729_v15 = vpop.f32.mrf.mxu0 }
 0xb36   :  { %v6730_v5 = vadd.f32 %v6729_v15, %v6635_v4 }
 0xb37   :  { %v10230_v59 = vpop.f32.mrf.mxu0 }
 0xb38   :  { %v6809_v36 = vadd.f32 %v6808_v41, %v6730_v5  ;;  %v7376_v5 = vld [vmem:[%s12849_s10 + $0x28] sm:$0xff] }
 0xb3a   :  { %v6812_v1 = vadd.f32 %v6809_v36, %v12878_v11  ;;  %v7377_v11 = vld [vmem:[%s12849_s10 + $0x30] sm:$0xff] }
 0xb3c   :  { %v6813_v38 = vadd.f32 %v12152_v57, %v6812_v1 }
 0xb3e   :  { %10543 = vtanh.f32 %v6813_v38 }
 0xb4b   :  { %v10544_v19 = vpop.eup %10543 }
 0xb4c   :  { %v6816_v32 = vmul.f32 %v12165_v60, %v10544_v19 }
 0xb4e   :  { %v12297_v52 = vadd.f32 %v6816_v32, %v6815_v25  ;;  %v7410_v25 = vsel %vm1021_vm2, %v7376_v5, 0  ;;  %v7413_v32 = vsel %vm1021_vm2, %v7377_v11, 0 }
 0xb50   :  { %6818 = vst.msk [vmem:[%s12849_s10 + $0x50] sm:$0xff] %vm1021_vm2, %v12297_v52  ;;  %v6823_v61 = vsel %vm1021_vm2, %v12297_v52, %v6821_v8 }
 0xb51   :  { %v6825_v22 = vsel %vm3508_vm3, %v6823_v61, 0 }
 0xb52   :  { %v12307_v39 = vand.u32 4294901760, %v6825_v22 }
 0xb54   :  { %v6901_v46 = vsub.f32 %v6825_v22, %v12307_v39  ;;  %10286 = vmatmul.mubr.f32.vlgmr.msra.gmra.mxu1 %v12307_v39  ;;  %v7379_v22 = vld [vmem:[%s12849_s10 + $0x40] sm:$0xff] }
 0xb55   :  { %10308 = vmatpush3.msra.mxu1 %v11377_v17  ;;  %10323 = vmatprep.mubr.msk.f32.mxu1 %vm10554_vm1, %v12868_v7 }
 0xb56   :  { %10309 = vmatprep.subr.mxu1 %v12868_v7  ;;  %v6902_v0 = vand.u32 4294901760, %v6901_v46 }
 0xb57   :  { %10310 = vmatpush3.msra.mxu1 %v11385_v6 }
 0xb58   :  { %10311 = vmatprep.subr.mxu1 %v12868_v7  ;;  %v6903_v35 = vsub.f32 %v6901_v46, %v6902_v0 }
 0xb59   :  { %10312 = vmatpush3.msra.mxu1 %v11398_v44 }
 0xb5a   :  { %10313 = vmatprep.subr.mxu1 %v12868_v7  ;;  %v6904_v21 = vand.u32 4294901760, %v6903_v35  ;;  %v12500_v35 = vand.u32 4294901760, %v7413_v32 }
 0xb5b   :  { %10314 = vmatpush3.msra.mxu1 %v11404_v45 }
 0xb5c   :  { %10315 = vmatprep.subr.mxu1 %v12868_v7  ;;  %10267 = vmatmul.mubr.f32.vlgmr.msra.gmra.mxu0 %v6904_v21 }
 0xb5d   :  { %10289 = vmatpush3.msra.mxu0 %v11383_v33  ;;  %10316 = vmatpush3.msra.mxu1 %v10810_v3  ;;  %v7385_v33 = vld [vmem:[%s12851_s3 + $0x10] sm:$0xff] }
 0xb5e   :  { %10290 = vmatprep.subr.mxu0 %v12868_v7  ;;  %10317 = vmatprep.subr.mxu1 %v12868_v7  ;;  %v12349_v26 = vand.u32 4294901760, %v7385_v33 }
 0xb5f   :  { %10291 = vmatpush3.msra.mxu0 %v11396_v13  ;;  %10318 = vmatpush3.msra.mxu1 %v10824_v24  ;;  %v12341_v13 = vand.u32 4294901760, %v7386_v49 }
 0xb60   :  { %10292 = vmatprep.subr.mxu0 %v12868_v7  ;;  %10319 = vmatprep.subr.mxu1 %v12868_v7 }
 0xb61   :  { %10293 = vmatpush3.msra.mxu0 %v11413_v54  ;;  %10320 = vmatpush3.msra.mxu1 %v10839_v29  ;;  %v7384_v54 = vld [vmem:[%s12851_s3 + $0x8] sm:$0xff]  ;;  %v12359_v18 = vsub.f32 %v7386_v49, %v12341_v13 }
 0xb62   :  { %10294 = vmatprep.subr.mxu0 %v12868_v7  ;;  %10321 = vmatprep.subr.mxu1 %v12868_v7  ;;  %v12361_v30 = vand.u32 4294901760, %v7384_v54 }
 0xb63   :  { %10295 = vmatpush3.msra.mxu0 %v11417_v42  ;;  %10322 = vmatpush3.msra.mxu1 %v10856_v43  ;;  %v7383_v42 = vld [vmem:[%s12851_s3] sm:$0xff] }
 0xb64   :  { %10296 = vmatprep.subr.mxu0 %v12868_v7  ;;  %10324 = vmatmul.mubr.f32.vlgmr.msra.gmra.mxu1 %v6902_v0 }
 0xb65   :  { %10345 = vmatprep.subr.mxu1 %v12868_v7  ;;  %10297 = vmatpush3.msra.mxu0 %v10822_v23  ;;  %v7371_v23 = vld [vmem:[%s12849_s10] sm:$0xff] }
 0xb66   :  { %10346 = vmatpush3.msra.mxu1 %v11377_v17  ;;  %10298 = vmatprep.subr.mxu0 %v12868_v7  ;;  %v12371_v17 = vsub.f32 %v7385_v33, %v12349_v26  ;;  %v7395_v48 = vsel %vm1021_vm2, %v7371_v23, 0 }
 0xb67   :  { %10347 = vmatprep.subr.mxu1 %v12868_v7  ;;  %10299 = vmatpush3.msra.mxu0 %v10837_v28  ;;  %v12373_v28 = vand.u32 4294901760, %v7383_v42  ;;  %v12402_v9 = vand.u32 4294901760, %v7395_v48 }
 0xb68   :  { %10348 = vmatpush3.msra.mxu1 %v11385_v6  ;;  %10300 = vmatprep.subr.mxu0 %v12868_v7  ;;  %v12380_v6 = vand.u32 4294901760, %v12359_v18 }
 0xb69   :  { %10349 = vmatprep.subr.mxu1 %v12868_v7  ;;  %10301 = vmatpush3.msra.mxu0 %v10854_v37  ;;  %v12383_v37 = vsub.f32 %v7384_v54, %v12361_v30  ;;  %v12431_v12 = vsub.f32 %v7395_v48, %v12402_v9  ;;  %v7381_v54 = vld [vmem:[%s12849_s10 + $0x50] sm:$0xff] }
 0xb6a   :  { %10350 = vmatpush3.msra.mxu1 %v11398_v44  ;;  %10302 = vmatprep.subr.mxu0 %v12868_v7  ;;  %v12391_v44 = vand.u32 4294901760, %v12371_v17 }
 0xb6b   :  { %10351 = vmatprep.subr.mxu1 %v12868_v7  ;;  %10303 = vmatpush3.msra.mxu0 %v10869_v51  ;;  %v12394_v51 = vsub.f32 %v7383_v42, %v12373_v28  ;;  %v12405_v10 = vand.u32 4294901760, %v12383_v37  ;;  %v7501_v62 = vand.u32 4294901760, %v12431_v12 }
 0xb6c   :  { %10304 = vmatprep.mubr.msk.f32.mxu0 %vm10554_vm1, %v12868_v7  ;;  %10352 = vmatpush3.msra.mxu1 %v11404_v45  ;;  %v7647_v45 = vsub.f32 %v12359_v18, %v12380_v6 }
 0xb6d   :  { %10305 = vmatmul.mubr.f32.vlgmr.msra.gmra.mxu0 %v6901_v46  ;;  %10326 = vmatprep.subr.mxu0 %v12868_v7  ;;  %v12420_v55 = vand.u32 4294901760, %v12394_v51  ;;  %v7502_v38 = vsub.f32 %v12431_v12, %v7501_v62 }
 0xb6e   :  { %10353 = vmatprep.subr.mxu1 %v12868_v7  ;;  %10327 = vmatpush3.msra.mxu0 %v11393_v31  ;;  %v7373_v31 = vld [vmem:[%s12849_s10 + $0x10] sm:$0xff] }
 0xb6f   :  { %10354 = vmatpush3.msra.mxu1 %v10810_v3  ;;  %10328 = vmatprep.subr.mxu0 %v12868_v7  ;;  %v7654_v3 = vsub.f32 %v12371_v17, %v12391_v44  ;;  %v7401_v47 = vsel %vm1021_vm2, %v7373_v31, 0  ;;  %v7668_v41 = vsub.f32 %v12394_v51, %v12420_v55  ;;  %v7503_v0 = vand.u32 4294901760, %v7502_v38 }
 0xb70   :  { %10355 = vmatprep.subr.mxu1 %v12868_v7  ;;  %10329 = vmatpush3.msra.mxu0 %v11410_v63  ;;  %v7661_v63 = vsub.f32 %v12383_v37, %v12405_v10  ;;  %v12445_v40 = vand.u32 4294901760, %v7401_v47 }
 0xb71   :  { %10356 = vmatpush3.msra.mxu1 %v10824_v24  ;;  %10330 = vmatprep.subr.mxu0 %v12868_v7  ;;  %v7648_v24 = vand.u32 4294901760, %v7647_v45  ;;  %v7669_v59 = vand.u32 4294901760, %v7668_v41 }
 0xb72   :  { %10357 = vmatprep.subr.mxu1 %v12868_v7  ;;  %10331 = vmatpush3.msra.mxu0 %v11425_v56  ;;  %v7374_v56 = vld [vmem:[%s12849_s10 + $0x18] sm:$0xff]  ;;  %v12465_v36 = vsub.f32 %v7401_v47, %v12445_v40 }
 0xb73   :  { %10358 = vmatpush3.msra.mxu1 %v10839_v29  ;;  %10332 = vmatprep.subr.mxu0 %v12868_v7  ;;  %v7655_v29 = vand.u32 4294901760, %v7654_v3  ;;  %v7404_v4 = vsel %vm1021_vm2, %v7374_v56, 0  ;;  %v12536_v3 = vsub.f32 %v7413_v32, %v12500_v35 }
 0xb74   :  { %10359 = vmatprep.subr.mxu1 %v12868_v7  ;;  %10333 = vmatpush3.msra.mxu0 %v11429_v58  ;;  %v7375_v58 = vld [vmem:[%s12849_s10 + $0x20] sm:$0xff]  ;;  %v12471_v1 = vand.u32 4294901760, %v7404_v4  ;;  %v7521_v61 = vand.u32 4294901760, %v12465_v36 }
 0xb75   :  { %10360 = vmatpush3.msra.mxu1 %v10856_v43  ;;  %10361 = vmatprep.mubr.msk.f32.mxu1 %vm10554_vm1, %v12868_v7  ;;  %v7662_v43 = vand.u32 4294901760, %v7661_v63  ;;  %v7407_v15 = vsel %vm1021_vm2, %v7375_v58, 0 }
 0xb76   :  { %10334 = vmatprep.subr.mxu0 %v12868_v7  ;;  %10362 = vmatmul.mubr.f32.vlgmr.msra.gmra.mxu1 %v12307_v39  ;;  %v12477_v19 = vand.u32 4294901760, %v7407_v15  ;;  %v12497_v46 = vsub.f32 %v7404_v4, %v12471_v1  ;;  %v7522_v33 = vsub.f32 %v12465_v36, %v7521_v61 }
 0xb77   :  { %10390 = vmatprep.subr.mxu1 %v7648_v24  ;;  %10335 = vmatpush3.msra.mxu0 %v10834_v27  ;;  %v12462_v27 = vsub.f32 %v7398_v2, %v12443_v14  ;;  %v7425_v2 = vsel %vm1021_vm2, %v7381_v54, 0 }
 0xb78   :  { %10391 = vmatpush3.msra.mxu1 %v7648_v24  ;;  %10398 = vmatprep.mubr.f32.mxu1 %v12402_v9  ;;  %v12504_v49 = vsub.f32 %v7407_v15, %v12477_v19  ;;  %v7531_v23 = vand.u32 4294901760, %v12497_v46  ;;  %v7523_v24 = vand.u32 4294901760, %v7522_v33  ;;  %v12560_v4 = vand.u32 4294901760, %v7425_v2 }
 0xb79   :  { %10336 = vmatprep.subr.mxu0 %v12868_v7  ;;  %10392 = vmatprep.subr.mxu1 %v7655_v29  ;;  %v7511_v8 = vand.u32 4294901760, %v12462_v27 }
 0xb7a   :  { %10337 = vmatpush3.msra.mxu0 %v10851_v34  ;;  %10393 = vmatpush3.msra.mxu1 %v7655_v29  ;;  %v7378_v34 = vld [vmem:[%s12849_s10 + $0x38] sm:$0xff]  ;;  %v7541_v45 = vand.u32 4294901760, %v12504_v49  ;;  %v7532_v63 = vsub.f32 %v12497_v46, %v7531_v23 }
 0xb7b   :  { %10338 = vmatprep.subr.mxu0 %v12868_v7  ;;  %10394 = vmatprep.subr.mxu1 %v7662_v43  ;;  %v7416_v21 = vsel %vm1021_vm2, %v7378_v34, 0 }
 0xb7c   :  { %10339 = vmatpush3.msra.mxu0 %v10866_v50  ;;  %10395 = vmatpush3.msra.mxu1 %v7662_v43  ;;  %v12494_v50 = vand.u32 4294901760, %v7410_v25  ;;  %v12528_v48 = vand.u32 4294901760, %v7416_v21  ;;  %v7542_v58 = vsub.f32 %v12504_v49, %v7541_v45  ;;  %v7561_v43 = vand.u32 4294901760, %v12536_v3 }
 0xb7d   :  { %10340 = vmatprep.subr.mxu0 %v12868_v7  ;;  %10396 = vmatprep.subr.mxu1 %v7669_v59  ;;  %v7533_v5 = vand.u32 4294901760, %v7532_v63 }
 0xb7e   :  { %10341 = vmatpush3.msra.mxu0 %v10882_v53  ;;  %10342 = vmatprep.mubr.msk.f32.mxu0 %vm10554_vm1, %v12868_v7  ;;  %v7419_v53 = vsel %vm1021_vm2, %v7379_v22, 0  ;;  %v7380_v7 = vld [vmem:[%s12849_s10 + $0x48] sm:$0xff]  ;;  %v12525_v42 = vsub.f32 %v7410_v25, %v12494_v50  ;;  %v12549_v56 = vsub.f32 %v7416_v21, %v12528_v48  ;;  %v7543_v25 = vand.u32 4294901760, %v7542_v58 }
 0xb7f   :  { %10397 = vmatpush3.msra.mxu1 %v7669_v59  ;;  %10343 = vmatmul.mubr.f32.vlgmr.msra.gmra.mxu0 %v12307_v39  ;;  %v7512_v39 = vsub.f32 %v12462_v27, %v7511_v8  ;;  %v12532_v16 = vand.u32 4294901760, %v7419_v53  ;;  %v7422_v31 = vsel %vm1021_vm2, %v7380_v7, 0  ;;  %v7562_v32 = vsub.f32 %v12536_v3, %v7561_v43 }
 0xb80   :  { %10364 = vmatprep.subr.mxu0 %v12341_v13  ;;  %10399 = vmatmul.mubr.f32.vlgmr.msra.gmra.mxu1 %v12443_v14  ;;  %v7551_v29 = vand.u32 4294901760, %v12525_v42  ;;  %v12552_v41 = vand.u32 4294901760, %v7422_v31  ;;  %v7571_v38 = vand.u32 4294901760, %v12549_v56  ;;  %v12582_v22 = vsub.f32 %v7425_v2, %v12560_v4 }
 0xb81   :  { %10365 = vmatpush3.msra.mxu0 %v12341_v13  ;;  %10372 = vmatprep.mubr.f32.mxu0 %v7503_v0  ;;  %v7513_v47 = vand.u32 4294901760, %v7512_v39  ;;  %v12563_v15 = vsub.f32 %v7419_v53, %v12532_v16 }
 0xb82   :  { %10401 = vmatprep.mubr.f32.mxu1 %v12445_v40  ;;  %10366 = vmatprep.subr.mxu0 %v12349_v26  ;;  %v7552_v59 = vsub.f32 %v12525_v42, %v7551_v29  ;;  %v12572_v11 = vsub.f32 %v7422_v31, %v12552_v41  ;;  %v7572_v21 = vsub.f32 %v12549_v56, %v7571_v38  ;;  %v12856_v39 = vand.u32 4294901760, %v12582_v22 }
 0xb83   :  { %10367 = vmatpush3.msra.mxu0 %v12349_v26  ;;  %10442 = vmatprep.subr.mxu1 %v12341_v13  ;;  %v7581_v34 = vand.u32 4294901760, %v12563_v15 }
 0xb84   :  { %10368 = vmatprep.subr.mxu0 %v12361_v30  ;;  %10402 = vmatmul.mubr.f32.gmra.mxu1 %v12471_v1  ;;  %v7553_v0 = vand.u32 4294901760, %v7552_v59  ;;  %v7591_v53 = vand.u32 4294901760, %v12572_v11  ;;  %v7573_v33 = vand.u32 4294901760, %v7572_v21 }
 0xb85   :  { %10369 = vmatpush3.msra.mxu0 %v12361_v30  ;;  %10404 = vmatprep.mubr.f32.mxu1 %v12477_v19  ;;  %v7582_v7 = vsub.f32 %v12563_v15, %v7581_v34 }
 0xb86   :  { %10370 = vmatprep.subr.mxu0 %v12373_v28  ;;  %10443 = vmatpush3.msra.mxu1 %v12341_v13  ;;  %v7592_v54 = vsub.f32 %v12572_v11, %v7591_v53 }
 0xb87   :  { %10371 = vmatpush3.msra.mxu0 %v12373_v28  ;;  %10444 = vmatprep.subr.mxu1 %v12349_v26  ;;  %v7583_v31 = vand.u32 4294901760, %v7582_v7 }
 0xb88   :  { %10373 = vmatmul.mubr.f32.vlgmr.msra.gmra.mxu0 %v7513_v47  ;;  %10405 = vmatmul.mubr.f32.gmra.mxu1 %v12494_v50  ;;  %v7593_v2 = vand.u32 4294901760, %v7592_v54 }
 0xb89   :  { %10375 = vmatprep.mubr.f32.mxu0 %v7523_v24  ;;  %10407 = vmatprep.mubr.f32.mxu1 %v12500_v35 }
 0xb8a   :  { %10416 = vmatprep.subr.mxu0 %v12359_v18  ;;  %10445 = vmatpush3.msra.mxu1 %v12349_v26 }
 0xb8b   :  { %10417 = vmatpush3.msra.mxu0 %v12359_v18  ;;  %10446 = vmatprep.subr.mxu1 %v12361_v30  ;;  %v7563_v18 = vand.u32 4294901760, %v7562_v32 }
 0xb8c   :  { %10376 = vmatmul.mubr.f32.gmra.mxu0 %v7533_v5  ;;  %10408 = vmatmul.mubr.f32.gmra.mxu1 %v12528_v48 }
 0xb8d   :  { %10378 = vmatprep.mubr.f32.mxu0 %v7543_v25  ;;  %10410 = vmatprep.mubr.f32.mxu1 %v12532_v16 }
 0xb8e   :  { %10418 = vmatprep.subr.mxu0 %v12371_v17  ;;  %10447 = vmatpush3.msra.mxu1 %v12361_v30 }
 0xb8f   :  { %10419 = vmatpush3.msra.mxu0 %v12371_v17  ;;  %10448 = vmatprep.subr.mxu1 %v12373_v28  ;;  %v7602_v17 = vsub.f32 %v12582_v22, %v12856_v39 }
 0xb90   :  { %10379 = vmatmul.mubr.f32.gmra.mxu0 %v7553_v0  ;;  %10411 = vmatmul.mubr.f32.gmra.mxu1 %v12552_v41 }
 0xb91   :  { %10381 = vmatprep.mubr.f32.mxu0 %v7563_v18  ;;  %10413 = vmatprep.mubr.f32.mxu1 %v12560_v4  ;;  %v7603_v47 = vand.u32 4294901760, %v7602_v17  ;;  %v12879_v17 = vld [vmem:[#allocation11_spill] sm:$0xff] }
 0xb92   :  { %10420 = vmatprep.subr.mxu0 %v12383_v37  ;;  %10449 = vmatpush3.msra.mxu1 %v12373_v28 }
 0xb93   :  { %10421 = vmatpush3.msra.mxu0 %v12383_v37  ;;  %10494 = vmatprep.subr.mxu1 %v12341_v13 }
 0xb94   :  { %10382 = vmatmul.mubr.f32.gmra.mxu0 %v7573_v33  ;;  %10422 = vmatprep.subr.mxu0 %v12394_v51 }
 0xb95   :  { %10384 = vmatprep.mubr.f32.mxu0 %v7583_v31  ;;  %10423 = vmatpush3.msra.mxu0 %v12394_v51 }
 0xb96   :  { %10468 = vmatprep.subr.mxu0 %v12380_v6 }
 0xb98   :  { %10385 = vmatmul.mubr.f32.gmra.mxu0 %v7593_v2 }
 0xb99   :  { %10387 = vmatprep.mubr.f32.mxu0 %v7603_v47 }
 0xc14   :  { %v7017_v24 = vpop.f32.mrf.mxu1 }
 0xc16   :  { %v10287_v63 = vpop.f32.mrf.mxu1 }
 0xc1c   :  { %v6906_v58 = vpop.f32.mrf.mxu0 }
 0xc1d   :  { %v7018_v21 = vadd.f32 %v7017_v24, %v6906_v58 }
 0xc1e   :  { %v10268_v5 = vpop.f32.mrf.mxu0 }
 0xc1f   :  { %v7367_v5 = vmul.f32 %v12158_v20, %v12297_v52 }
 0xc24   :  { %v7186_v59 = vpop.f32.mrf.mxu1 }
 0xc26   :  { %v10325_v37 = vpop.f32.mrf.mxu1 }
 0xc2d   :  { %v7105_v25 = vpop.f32.mrf.mxu0 }
 0xc2e   :  { %v7106_v7 = vadd.f32 %v7105_v25, %v7018_v21 }
 0xc2f   :  { %v10306_v32 = vpop.f32.mrf.mxu0 }
 0xc30   :  { %v7187_v33 = vadd.f32 %v7186_v59, %v7106_v7 }
 0xc36   :  { %v7360_v0 = vpop.f32.mrf.mxu1 }
 0xc38   :  { %v10363_v18 = vpop.f32.mrf.mxu1 }
 0xc3f   :  { %v7281_v51 = vpop.f32.mrf.mxu0 }
 0xc40   :  { %v7282_v54 = vadd.f32 %v7281_v51, %v7187_v33 }
 0xc41   :  { %v10344_v31 = vpop.f32.mrf.mxu0 }
 0xc42   :  { %v7361_v39 = vadd.f32 %v7360_v0, %v7282_v54 }
 0xc44   :  { %v7364_v2 = vadd.f32 %v7361_v39, %v12879_v17 }
 0xc46   :  { %v7365_v47 = vadd.f32 %v12152_v57, %v7364_v2 }
 0xc48   :  { %10545 = vtanh.f32 %v7365_v47 }
 0xc55   :  { %v10546_v63 = vpop.eup %10545 }
 0xc56   :  { %v7368_v37 = vmul.f32 %v12165_v60, %v10546_v63 }
 0xc58   :  { %v7369_v32 = vadd.f32 %v7368_v37, %v7367_v5 }
 0xc5a   :  { %7370 = vst.msk [vmem:[%s12849_s10 + $0x58] sm:$0xff] %vm1021_vm2, %v7369_v32 }
 0xc61   :  { %v7382_v24 = vld [vmem:[%s12849_s10 + $0x58] sm:$0xff] }
 0xc62   :  { %v7428_v39 = vsel %vm1021_vm2, %v7382_v24, 0 }
 0xc63   :  { %v12628_v57 = vand.u32 4294901760, %v7428_v39 }
 0xc65   :  { %v7610_v58 = vsub.f32 %v7428_v39, %v12628_v57  ;;  %10414 = vmatmul.mubr.f32.gmra.mxu1 %v12628_v57 }
 0xc66   :  { %10450 = vmatprep.mubr.f32.mxu1 %v7501_v62 }
 0xc67   :  { %v7611_v20 = vand.u32 4294901760, %v7610_v58 }
 0xc69   :  { %10451 = vmatmul.mubr.f32.vlgmr.msra.gmra.mxu1 %v7511_v8  ;;  %v7612_v60 = vsub.f32 %v7610_v58, %v7611_v20 }
 0xc6a   :  { %10453 = vmatprep.mubr.f32.mxu1 %v7521_v61  ;;  %10495 = vmatpush3.msra.mxu1 %v12341_v13  ;;  %v12880_v13 = vand.u32 4294901760, %v12582_v22 }
 0xc6b   :  { %v7613_v52 = vand.u32 4294901760, %v7612_v60  ;;  %10496 = vmatprep.subr.mxu1 %v12349_v26 }
 0xc6c   :  { %10497 = vmatpush3.msra.mxu1 %v12349_v26  ;;  %v10400_v26 = vpop.f32.mrf.mxu1 }
 0xc6d   :  { %10388 = vmatmul.mubr.f32.gmra.mxu0 %v7613_v52  ;;  %10454 = vmatmul.mubr.f32.gmra.mxu1 %v7531_v23 }
 0xc6e   :  { %10424 = vmatprep.mubr.f32.mxu0 %v12431_v12  ;;  %10456 = vmatprep.mubr.f32.mxu1 %v7541_v45 }
 0xc6f   :  { %10498 = vmatprep.subr.mxu1 %v12361_v30 }
 0xc70   :  { %10499 = vmatpush3.msra.mxu1 %v12361_v30  ;;  %v7706_v30 = vpop.f32.mrf.mxu1 }
 0xc71   :  { %10425 = vmatmul.mubr.f32.vlgmr.msra.gmra.mxu0 %v12462_v27  ;;  %10457 = vmatmul.mubr.f32.gmra.mxu1 %v7551_v29 }
 0xc72   :  { %10469 = vmatpush3.msra.mxu0 %v12380_v6  ;;  %10427 = vmatprep.mubr.f32.mxu0 %v12465_v36  ;;  %v10374_v6 = vpop.f32.mrf.mxu0 }
 0xc73   :  { %10459 = vmatprep.mubr.f32.mxu1 %v7561_v43  ;;  %10470 = vmatprep.subr.mxu0 %v12391_v44 }
 0xc74   :  { %10471 = vmatpush3.msra.mxu0 %v12391_v44  ;;  %10500 = vmatprep.subr.mxu1 %v12373_v28 }
 0xc75   :  { %10428 = vmatmul.mubr.f32.gmra.mxu0 %v12497_v46  ;;  %10460 = vmatmul.mubr.f32.gmra.mxu1 %v7571_v38 }
 0xc76   :  { %10430 = vmatprep.mubr.f32.mxu0 %v12504_v49  ;;  %10462 = vmatprep.mubr.f32.mxu1 %v7581_v34 }
 0xc77   :  { %10472 = vmatprep.subr.mxu0 %v12405_v10  ;;  %10501 = vmatpush3.msra.mxu1 %v12373_v28  ;;  %v10403_v28 = vpop.f32.mrf.mxu1 }
 0xc78   :  { %10473 = vmatpush3.msra.mxu0 %v12405_v10 }
 0xc79   :  { %10431 = vmatmul.mubr.f32.gmra.mxu0 %v12525_v42  ;;  %10463 = vmatmul.mubr.f32.gmra.mxu1 %v7591_v53  ;;  %v7718_v44 = vpop.f32.mrf.mxu1  ;;  %v12742_v53 = vld [vmem:[%s12852_s6] ss:$0 sm:$0xff] }
 0xc7a   :  { %10433 = vmatprep.mubr.f32.mxu0 %v12536_v3  ;;  %10465 = vmatprep.mubr.f32.mxu1 %v12880_v13  ;;  %v7516_v18 = vadd.f32 %v10374_v6, %v12742_v53 }
 0xc7b   :  { %10474 = vmatprep.subr.mxu0 %v12420_v55  ;;  %v12703_v10 = vpop.f32.mrf.mxu1 }
 0xc7c   :  { %10475 = vmatpush3.msra.mxu0 %v12420_v55  ;;  %v7713_v2 = vadd.f32 %v10400_v26, %v7516_v18 }
 0xc7d   :  { %10434 = vmatmul.mubr.f32.gmra.mxu0 %v12549_v56  ;;  %10466 = vmatmul.mubr.f32.gmra.mxu1 %v7611_v20  ;;  %v12705_v12 = vpop.f32.mrf.mxu1 }
 0xc7e   :  { %10436 = vmatprep.mubr.f32.mxu0 %v12563_v15  ;;  %10502 = vmatprep.mubr.f32.mxu1 %v12402_v9 }
 0xc81   :  { %10437 = vmatmul.mubr.f32.gmra.mxu0 %v12572_v11  ;;  %10503 = vmatmul.mubr.f32.vlgmr.msra.gmra.mxu1 %v12443_v14 }
 0xc82   :  { %10439 = vmatprep.mubr.f32.mxu0 %v12582_v22  ;;  %10505 = vmatprep.mubr.f32.mxu1 %v12445_v40 }
 0xc85   :  { %10440 = vmatmul.mubr.f32.gmra.mxu0 %v7610_v58  ;;  %10506 = vmatmul.mubr.f32.gmra.mxu1 %v12471_v1 }
 0xc86   :  { %10476 = vmatprep.mubr.f32.mxu0 %v12402_v9  ;;  %10508 = vmatprep.mubr.f32.mxu1 %v12477_v19  ;;  %v7505_v9 = vpop.f32.mrf.mxu0 }
 0xc87   :  { %v7506_v51 = vadd.f32 %v12742_v53, %v7505_v9 }
 0xc88   :  { %v10377_v55 = vpop.f32.mrf.mxu0 }
 0xc89   :  { %10477 = vmatmul.mubr.f32.vlgmr.msra.gmra.mxu0 %v12443_v14  ;;  %10509 = vmatmul.mubr.f32.gmra.mxu1 %v12494_v50  ;;  %v7536_v17 = vadd.f32 %v10377_v55, %v12742_v53  ;;  %v7707_v32 = vadd.f32 %v7706_v30, %v7506_v51 }
 0xc8a   :  { %10479 = vmatprep.mubr.f32.mxu0 %v12445_v40  ;;  %10511 = vmatprep.mubr.f32.mxu1 %v12500_v35  ;;  %v7525_v14 = vpop.f32.mrf.mxu0  ;;  %v12707_v40 = vpop.f32.mrf.mxu1 }
 0xc8b   :  { %v7526_v5 = vadd.f32 %v12742_v53, %v7525_v14  ;;  %v7725_v20 = vadd.f32 %v10403_v28, %v7536_v17 }
 0xc8c   :  { %v10380_v62 = vpop.f32.mrf.mxu0  ;;  %v12709_v27 = vpop.f32.mrf.mxu1 }
 0xc8d   :  { %10480 = vmatmul.mubr.f32.gmra.mxu0 %v12471_v1  ;;  %10512 = vmatmul.mubr.f32.gmra.mxu1 %v12528_v48  ;;  %v7719_v6 = vadd.f32 %v7718_v44, %v7526_v5 }
 0xc8e   :  { %10482 = vmatprep.mubr.f32.mxu0 %v12477_v19  ;;  %10514 = vmatprep.mubr.f32.mxu1 %v12532_v16  ;;  %v7545_v36 = vpop.f32.mrf.mxu0  ;;  %v12711_v1 = vpop.f32.mrf.mxu1 }
 0xc8f   :  { %v7546_v60 = vadd.f32 %v12742_v53, %v7545_v36 }
 0xc90   :  { %v10383_v19 = vpop.f32.mrf.mxu0  ;;  %v12713_v8 = vpop.f32.mrf.mxu1 }
 0xc91   :  { %10483 = vmatmul.mubr.f32.gmra.mxu0 %v12494_v50  ;;  %10515 = vmatmul.mubr.f32.gmra.mxu1 %v12552_v41  ;;  %v7576_v55 = vadd.f32 %v10383_v19, %v12742_v53  ;;  %v7731_v28 = vadd.f32 %v12705_v12, %v7546_v60 }
 0xc92   :  { %10485 = vmatprep.mubr.f32.mxu0 %v12500_v35  ;;  %10517 = vmatprep.mubr.f32.mxu1 %v12560_v4  ;;  %v7565_v61 = vpop.f32.mrf.mxu0 }
 0xc94   :  { %v12717_v46 = vpop.f32.mrf.mxu0 }
 0xc95   :  { %10486 = vmatmul.mubr.f32.gmra.mxu0 %v12528_v48  ;;  %10518 = vmatmul.mubr.f32.gmra.mxu1 %v12628_v57  ;;  %v7596_v19 = vadd.f32 %v12717_v46, %v12742_v53 }
 0xc96   :  { %10488 = vmatprep.mubr.f32.mxu0 %v12532_v16  ;;  %v12721_v42 = vpop.f32.mrf.mxu0 }
 0xc99   :  { %10489 = vmatmul.mubr.f32.gmra.mxu0 %v12552_v41 }
 0xc9a   :  { %10491 = vmatprep.mubr.f32.mxu0 %v12560_v4 }
 0xc9d   :  { %10492 = vmatmul.mubr.f32.gmra.mxu0 %v12628_v57  ;;  %v7556_v57 = vadd.f32 %v10380_v62, %v12742_v53  ;;  %v7566_v62 = vadd.f32 %v12742_v53, %v7565_v61 }
 0xc9f   :  { %v7737_v18 = vadd.f32 %v12703_v10, %v7556_v57 }
 0xd25   :  { %v12715_v50 = vpop.f32.mrf.mxu1 }
 0xd27   :  { %v12719_v35 = vpop.f32.mrf.mxu1 }
 0xd29   :  { %v10452_v49 = vpop.f32.mrf.mxu1 }
 0xd2b   :  { %v8006_v23 = vpop.f32.mrf.mxu1 }
 0xd2d   :  { %v12723_v48 = vpop.f32.mrf.mxu0  ;;  %v10455_v45 = vpop.f32.mrf.mxu1 }
 0xd2f   :  { %v12725_v16 = vpop.f32.mrf.mxu0  ;;  %v12727_v3 = vpop.f32.mrf.mxu1 }
 0xd31   :  { %v10426_v56 = vpop.f32.mrf.mxu0  ;;  %v12729_v29 = vpop.f32.mrf.mxu1 }
 0xd32   :  { %v7860_v37 = vadd.f32 %v10426_v56, %v7713_v2 }
 0xd33   :  { %v7852_v41 = vpop.f32.mrf.mxu0  ;;  %v12731_v43 = vpop.f32.mrf.mxu1 }
 0xd34   :  { %v7853_v58 = vadd.f32 %v7852_v41, %v7707_v32  ;;  %v8015_v9 = vadd.f32 %v10452_v49, %v7860_v37 }
 0xd35   :  { %v10429_v4 = vpop.f32.mrf.mxu0  ;;  %v12733_v15 = vpop.f32.mrf.mxu1 }
 0xd36   :  { %v7874_v26 = vadd.f32 %v10429_v4, %v7725_v20  ;;  %v8007_v2 = vadd.f32 %v8006_v23, %v7853_v58 }
 0xd37   :  { %v7866_v11 = vpop.f32.mrf.mxu0  ;;  %v12735_v38 = vpop.f32.mrf.mxu1 }
 0xd38   :  { %v7867_v30 = vadd.f32 %v7866_v11, %v7719_v6  ;;  %v8031_v49 = vadd.f32 %v10455_v45, %v7874_v26  ;;  %v7749_v11 = vadd.f32 %v12707_v40, %v7576_v55  ;;  %v7586_v45 = vadd.f32 %v12742_v53, %v12721_v42 }
 0xd39   :  { %v10432_v34 = vpop.f32.mrf.mxu0  ;;  %v12737_v22 = vpop.f32.mrf.mxu1 }
 0xd3a   :  { %v7888_v17 = vadd.f32 %v10432_v34, %v7737_v18  ;;  %v8023_v23 = vadd.f32 %v12727_v3, %v7867_v30  ;;  %v7743_v34 = vadd.f32 %v12709_v27, %v7566_v62  ;;  %v7761_v3 = vadd.f32 %v12711_v1, %v7596_v19 }
 0xd3b   :  { %v7880_v59 = vpop.f32.mrf.mxu0  ;;  %v12744_v25 = vpop.f32.mrf.mxu1  ;;  %v7755_v20 = vadd.f32 %v12713_v8, %v7586_v45 }
 0xd3c   :  { %v7881_v37 = vadd.f32 %v7880_v59, %v7731_v28  ;;  %v8047_v32 = vadd.f32 %v12729_v29, %v7888_v17  ;;  %v7606_v29 = vadd.f32 %v12742_v53, %v12725_v16 }
 0xd3d   :  { %v10435_v0 = vpop.f32.mrf.mxu0  ;;  %v12746_v21 = vpop.f32.mrf.mxu1 }
 0xd3f   :  { %v7894_v7 = vpop.f32.mrf.mxu0  ;;  %v12749_v33 = vpop.f32.mrf.mxu1 }
 0xd40   :  { %v7895_v58 = vadd.f32 %v7894_v7, %v7743_v34 }
 0xd41   :  { %v12752_v54 = vpop.f32.mrf.mxu0  ;;  %v10504_v31 = vpop.f32.mrf.mxu1 }
 0xd42   :  { %v7916_v1 = vadd.f32 %v12752_v54, %v7761_v3  ;;  %v8055_v54 = vadd.f32 %v12735_v38, %v7895_v58 }
 0xd43   :  { %v12755_v47 = vpop.f32.mrf.mxu0  ;;  %v8318_v63 = vpop.f32.mrf.mxu1 }
 0xd44   :  { %v7909_v16 = vadd.f32 %v12755_v47, %v7755_v20 }
 0xd45   :  { %v12758_v24 = vpop.f32.mrf.mxu0  ;;  %v10507_v39 = vpop.f32.mrf.mxu1 }
 0xd47   :  { %v12762_v52 = vpop.f32.mrf.mxu0  ;;  %v8330_v13 = vpop.f32.mrf.mxu1 }
 0xd49   :  { %v10478_v14 = vpop.f32.mrf.mxu0  ;;  %v10510_v56 = vpop.f32.mrf.mxu1 }
 0xd4a   :  { %v8184_v51 = vadd.f32 %v10478_v14, %v8015_v9  ;;  %v7767_v9 = vadd.f32 %v12719_v35, %v7606_v29  ;;  %v8079_v14 = vadd.f32 %v12737_v22, %v7916_v1 }
 0xd4b   :  { %v8177_v36 = vpop.f32.mrf.mxu0  ;;  %v8342_v41 = vpop.f32.mrf.mxu1 }
 0xd4c   :  { %v8325_v4 = vadd.f32 %v10504_v31, %v8184_v51  ;;  %v8178_v44 = vadd.f32 %v8177_v36, %v8007_v2  ;;  %v7902_v31 = vadd.f32 %v10435_v0, %v7749_v11  ;;  %v7923_v18 = vadd.f32 %v12762_v52, %v7767_v9 }
 0xd4d   :  { %v10481_v5 = vpop.f32.mrf.mxu0  ;;  %v10513_v10 = vpop.f32.mrf.mxu1 }
 0xd4e   :  { %8390 = vst.msk [vmem:[%s12853_s9 + $0x8] sm:$0xff] %vm8388_vm4, %v8325_v4  ;;  %v8319_v12 = vadd.f32 %v8318_v63, %v8178_v44  ;;  %v8196_v61 = vadd.f32 %v10481_v5, %v8031_v49  ;;  %v7616_v63 = vadd.f32 %v12723_v48, %v12742_v53 }
 0xd4f   :  { %v8189_v46 = vpop.f32.mrf.mxu0  ;;  %v8354_v57 = vpop.f32.mrf.mxu1 }
 0xd50   :  { %8389 = vst.msk [vmem:[%s12853_s9] sm:$0xff] %vm8388_vm4, %v8319_v12  ;;  %v8337_v40 = vadd.f32 %v10507_v39, %v8196_v61  ;;  %v8190_v59 = vadd.f32 %v8189_v46, %v8023_v23  ;;  %v8039_v39 = vadd.f32 %v12731_v43, %v7881_v37  ;;  %v7773_v26 = vadd.f32 %v12715_v50, %v7616_v63 }
 0xd51   :  { %v10484_v42 = vpop.f32.mrf.mxu0  ;;  %v10516_v43 = vpop.f32.mrf.mxu1 }
 0xd52   :  { %8392 = vst.msk [vmem:[%s12853_s9 + $0x18] sm:$0xff] %vm8388_vm4, %v8337_v40  ;;  %v8331_v27 = vadd.f32 %v8330_v13, %v8190_v59  ;;  %v8208_v0 = vadd.f32 %v10484_v42, %v8047_v32  ;;  %v8063_v13 = vadd.f32 %v12733_v15, %v7902_v31  ;;  %v7930_v15 = vadd.f32 %v12758_v24, %v7773_v26 }
 0xd53   :  { %v8201_v48 = vpop.f32.mrf.mxu0  ;;  %v8071_v24 = vadd.f32 %v12744_v25, %v7909_v16  ;;  %v8087_v25 = vadd.f32 %v12749_v33, %v7923_v18 }
 0xd54   :  { %8391 = vst.msk [vmem:[%s12853_s9 + $0x10] sm:$0xff] %vm8388_vm4, %v8331_v27  ;;  %v8349_v7 = vadd.f32 %v10510_v56, %v8208_v0  ;;  %v8202_v60 = vadd.f32 %v8201_v48, %v8039_v39  ;;  %v8366_v56 = vpop.f32.mrf.mxu1  ;;  %v8095_v62 = vadd.f32 %v12746_v21, %v7930_v15 }
 0xd55   :  { %v10487_v6 = vpop.f32.mrf.mxu0 }
 0xd56   :  { %8394 = vst.msk [vmem:[%s12853_s9 + $0x28] sm:$0xff] %vm8388_vm4, %v8349_v7  ;;  %v8343_v8 = vadd.f32 %v8342_v41, %v8202_v60  ;;  %v8220_v53 = vadd.f32 %v10487_v6, %v8063_v13  ;;  %v10519_v52 = vpop.f32.mrf.mxu1 }
 0xd57   :  { %v8213_v55 = vpop.f32.mrf.mxu0 }
 0xd58   :  { %8393 = vst.msk [vmem:[%s12853_s9 + $0x20] sm:$0xff] %vm8388_vm4, %v8343_v8  ;;  %v8361_v50 = vadd.f32 %v10513_v10, %v8220_v53  ;;  %v8214_v47 = vadd.f32 %v8213_v55, %v8055_v54  ;;  %v8378_v21 = vpop.f32.mrf.mxu1 }
 0xd59   :  { %v10490_v30 = vpop.f32.mrf.mxu0 }
 0xd5a   :  { %8396 = vst.msk [vmem:[%s12853_s9 + $0x38] sm:$0xff] %vm8388_vm4, %v8361_v50  ;;  %v8355_v35 = vadd.f32 %v8354_v57, %v8214_v47  ;;  %v8232_v38 = vadd.f32 %v10490_v30, %v8079_v14 }
 0xd5b   :  { %v8225_v51 = vpop.f32.mrf.mxu0 }
 0xd5c   :  { %8395 = vst.msk [vmem:[%s12853_s9 + $0x30] sm:$0xff] %vm8388_vm4, %v8355_v35  ;;  %v8373_v22 = vadd.f32 %v10516_v43, %v8232_v38  ;;  %v8226_v2 = vadd.f32 %v8225_v51, %v8071_v24 }
 0xd5d   :  { %v10493_v28 = vpop.f32.mrf.mxu0 }
 0xd5e   :  { %8398 = vst.msk [vmem:[%s12853_s9 + $0x48] sm:$0xff] %vm8388_vm4, %v8373_v22  ;;  %v8367_v36 = vadd.f32 %v8366_v56, %v8226_v2  ;;  %v8244_v41 = vadd.f32 %v10493_v28, %v8095_v62 }
 0xd5f   :  { %v8237_v17 = vpop.f32.mrf.mxu0 }
 0xd60   :  { %8397 = vst.msk [vmem:[%s12853_s9 + $0x40] sm:$0xff] %vm8388_vm4, %v8367_v36  ;;  %v8385_v4 = vadd.f32 %v10519_v52, %v8244_v41  ;;  %v8238_v44 = vadd.f32 %v8237_v17, %v8087_v25 }
 0xd62   :  { %8400 = vst.msk [vmem:[%s12853_s9 + $0x58] sm:$0xff] %vm8388_vm4, %v8385_v4  ;;  %v8379_v49 = vadd.f32 %v8378_v21, %v8238_v44 }
 0xd64   :  { %8399 = vst.msk [vmem:[%s12853_s9 + $0x50] sm:$0xff] %vm8388_vm4, %v8379_v49 }

</bundles_post_ra>
